<compile_context>
chip_gen: v5e
topology: v5e:2x2
jax: 0.10.0
libtpu: 0.0.40
codegen_flags: <defaults>
</compile_context>

<pallas_src>
import functools
import math

import jax
import jax.numpy as jnp
from jax.experimental import pallas as pl
from jax.experimental.pallas import tpu as pltpu

WINDOW_SIZE = 11
SIGMA = 1.5
C1 = 0.01 ** 2
C2 = 0.03 ** 2


def gaussian_weights_py(window_size=WINDOW_SIZE, sigma=SIGMA):
    """1D Gaussian weights as compile-time Python floats (sum to 1)."""
    vals = [math.exp(-float((x - window_size // 2) ** 2) / (2.0 * sigma ** 2))
            for x in range(window_size)]
    s = sum(vals)
    return tuple(v / s for v in vals)


def gaussian_window_jnp(window_size=WINDOW_SIZE, sigma=SIGMA):
    """2D Gaussian window (for the pure-JAX reference)."""
    g = jnp.asarray(gaussian_weights_py(window_size, sigma), dtype=jnp.float32)
    return jnp.outer(g, g)


def _ssim_block_kernel(p1_ref, p2_ref, out_ref,
                       x11_s, x22_s, x12_s,
                       v1_s, v2_s, v11_s, v22_s, v12_s,
                       *, H, W, win, weights):
    """Processes P zero-padded (b, c) planes per grid step.

    p1_ref/p2_ref : VMEM (P, Hp, Wp) padded img1/img2 planes
    out_ref       : VMEM (1, 8, 128) partial SSIM sum (lane-dense broadcast)
    x??_s         : VMEM (P, Hp, Wp) scratch -- product planes, computed once
    v?_s          : VMEM (P, H, Wp) scratch -- vertically filtered planes
    """
    P, Hp, Wp = p1_ref.shape

    # --- product planes, computed exactly once (no per-tap squaring) ---
    x1 = p1_ref[...]                     # (P, Hp, Wp) f32
    x2 = p2_ref[...]
    x11_s[...] = x1 * x1
    x22_s[...] = x2 * x2
    x12_s[...] = x1 * x2

    # --- vertical (sublane-direction) 1D Gaussian pass: 11 taps, 5 planes ---
    a1 = jnp.zeros((P, H, Wp), jnp.float32)
    a2 = jnp.zeros((P, H, Wp), jnp.float32)
    a11 = jnp.zeros((P, H, Wp), jnp.float32)
    a22 = jnp.zeros((P, H, Wp), jnp.float32)
    a12 = jnp.zeros((P, H, Wp), jnp.float32)
    for dy in range(win):
        w = weights[dy]                  # compile-time float constant
        a1 = a1 + w * p1_ref[:, dy:dy + H, :]
        a2 = a2 + w * p2_ref[:, dy:dy + H, :]
        a11 = a11 + w * x11_s[:, dy:dy + H, :]
        a22 = a22 + w * x22_s[:, dy:dy + H, :]
        a12 = a12 + w * x12_s[:, dy:dy + H, :]
    v1_s[...] = a1
    v2_s[...] = a2
    v11_s[...] = a11
    v22_s[...] = a22
    v12_s[...] = a12

    # --- horizontal (lane-direction) 1D Gaussian pass: 11 taps, 5 planes ---
    mu1 = jnp.zeros((P, H, W), jnp.float32)
    mu2 = jnp.zeros((P, H, W), jnp.float32)
    e11 = jnp.zeros((P, H, W), jnp.float32)
    e22 = jnp.zeros((P, H, W), jnp.float32)
    e12 = jnp.zeros((P, H, W), jnp.float32)
    for dx in range(win):
        w = weights[dx]
        mu1 = mu1 + w * v1_s[:, :, dx:dx + W]
        mu2 = mu2 + w * v2_s[:, :, dx:dx + W]
        e11 = e11 + w * v11_s[:, :, dx:dx + W]
        e22 = e22 + w * v22_s[:, :, dx:dx + W]
        e12 = e12 + w * v12_s[:, :, dx:dx + W]

    # --- SSIM elementwise math ---
    mu1_sq = mu1 * mu1
    mu2_sq = mu2 * mu2
    mu12 = mu1 * mu2
    sigma1_sq = e11 - mu1_sq
    sigma2_sq = e22 - mu2_sq
    sigma12 = e12 - mu12

    num = (2.0 * mu12 + C1) * (2.0 * sigma12 + C2)
    den = (mu1_sq + mu2_sq + C1) * (sigma1_sq + sigma2_sq + C2)
    ssim_map = num / den  # exact divide keeps the result well inside 1e-3 tol

    # Per-block partial sum; wrapper reads [i, 0, 0] and does the global mean.
    out_ref[...] = jnp.full(out_ref.shape, jnp.sum(ssim_map), jnp.float32)


def _pick_planes_per_block(num_planes, hp, wp, h):
    """Largest divisor of num_planes that fits a conservative VMEM budget and
    (when possible) leaves >= 2 grid blocks so v7x can split them across cores."""
    # per plane: 2 double-buffered padded inputs + 3 product + 5 vertical scratch
    bytes_per_plane = 4 * (2 * 2 * hp * wp + 3 * hp * wp + 5 * h * wp)
    budget = 4 * 1024 * 1024
    cap = max(1, min(num_planes, budget // max(bytes_per_plane, 1)))
    if num_planes > 1:
        cap = min(cap, (num_planes + 1) // 2)   # keep >= 2 blocks for megacore
    for p in range(int(cap), 0, -1):
        if num_planes % p == 0:
            return p
    return 1


def ssim_pallas(img1, img2, window_size=WINDOW_SIZE):
    """SSIM(img1, img2) -> scalar f32. Inputs are NCHW (size_average=True)."""
    B, C, H, W = img1.shape
    pad = window_size // 2
    Hp, Wp = H + 2 * pad, W + 2 * pad
    weights = gaussian_weights_py(window_size)
    BC = B * C

    p1 = jnp.pad(img1.astype(jnp.float32),
                 ((0, 0), (0, 0), (pad, pad), (pad, pad))).reshape(BC, Hp, Wp)
    p2 = jnp.pad(img2.astype(jnp.float32),
                 ((0, 0), (0, 0), (pad, pad), (pad, pad))).reshape(BC, Hp, Wp)

    P = _pick_planes_per_block(BC, Hp, Wp, H)
    nblk = BC // P

    kernel = functools.partial(_ssim_block_kernel,
                               H=H, W=W, win=window_size, weights=weights)

    partials = pl.pallas_call(
        kernel,
        out_shape=jax.ShapeDtypeStruct((nblk, 8, 128), jnp.float32),
        grid=(nblk,),
        in_specs=[
            pl.BlockSpec((P, Hp, Wp), lambda i: (i, 0, 0)),
            pl.BlockSpec((P, Hp, Wp), lambda i: (i, 0, 0)),
        ],
        out_specs=pl.BlockSpec((1, 8, 128), lambda i: (i, 0, 0)),
        scratch_shapes=[
            pltpu.VMEM((P, Hp, Wp), jnp.float32),   # x1*x1
            pltpu.VMEM((P, Hp, Wp), jnp.float32),   # x2*x2
            pltpu.VMEM((P, Hp, Wp), jnp.float32),   # x1*x2
            pltpu.VMEM((P, H, Wp), jnp.float32),    # vert(x1)
            pltpu.VMEM((P, H, Wp), jnp.float32),    # vert(x2)
            pltpu.VMEM((P, H, Wp), jnp.float32),    # vert(x1*x1)
            pltpu.VMEM((P, H, Wp), jnp.float32),    # vert(x2*x2)
            pltpu.VMEM((P, H, Wp), jnp.float32),    # vert(x1*x2)
        ],
        compiler_params=pltpu.CompilerParams(
            dimension_semantics=("parallel",)),
    )(p1, p2)

    # size_average=True -> mean over every element of the SSIM map.
    return jnp.sum(partials[:, 0, 0]) / jnp.float32(BC * H * W)


def ssim_reference(img1, img2, window_size=WINDOW_SIZE):
    """Pure-JAX reference matching the PyTorch _ssim semantics."""
    B, C, H, W = img1.shape
    pad = window_size // 2
    win2d = gaussian_window_jnp(window_size)
    w = jnp.broadcast_to(win2d[None, None], (C, 1, window_size, window_size))

    def conv(x):
        return jax.lax.conv_general_dilated(
            x.astype(jnp.float32), w, (1, 1),
            [(pad, pad), (pad, pad)],
            feature_group_count=C,
            dimension_numbers=("NCHW", "OIHW", "NCHW"),
            precision=jax.lax.Precision.HIGHEST)

    img1 = img1.astype(jnp.float32)
    img2 = img2.astype(jnp.float32)
    mu1, mu2 = conv(img1), conv(img2)
    mu1_sq, mu2_sq, mu12 = mu1 * mu1, mu2 * mu2, mu1 * mu2
    sigma1_sq = conv(img1 * img1) - mu1_sq
    sigma2_sq = conv(img2 * img2) - mu2_sq
    sigma12 = conv(img1 * img2) - mu12
    num = (2.0 * mu12 + C1) * (2.0 * sigma12 + C2)
    den = (mu1_sq + mu2_sq + C1) * (sigma1_sq + sigma2_sq + C2)
    return jnp.mean(num / den)


if __name__ == "__main__":
    key = jax.random.PRNGKey(0)
    k1, k2 = jax.random.split(key)
    # NCHW, channels=3 (module default), small spatial size.
    B, C, H, W = 2, 3, 16, 16
    img1 = jax.random.uniform(k1, (B, C, H, W), dtype=jnp.float32)
    img2 = jax.random.uniform(k2, (B, C, H, W), dtype=jnp.float32)

    out = jax.block_until_ready(ssim_pallas(img1, img2))
    ref = jax.block_until_ready(ssim_reference(img1, img2))

    assert out.shape == (), out.shape
    assert jnp.allclose(out, ref, rtol=1e-3, atol=1e-3), (out, ref)
    print("KERNEL_OK")
</pallas_src>

<mosaic_0001>
module attributes {stable_mosaic.version = 11 : i64} {
  func.func @_ssim_block_kernel(%arg0: i32, %arg1: memref<3x26x26xf32, #tpu.memory_space<vmem>>, %arg2: memref<3x26x26xf32, #tpu.memory_space<vmem>>, %arg3: memref<1x8x128xf32, #tpu.memory_space<vmem>>, %arg4: memref<3x26x26xf32, #tpu.memory_space<vmem>>, %arg5: memref<3x26x26xf32, #tpu.memory_space<vmem>>, %arg6: memref<3x26x26xf32, #tpu.memory_space<vmem>>, %arg7: memref<3x16x26xf32, #tpu.memory_space<vmem>>, %arg8: memref<3x16x26xf32, #tpu.memory_space<vmem>>, %arg9: memref<3x16x26xf32, #tpu.memory_space<vmem>>, %arg10: memref<3x16x26xf32, #tpu.memory_space<vmem>>, %arg11: memref<3x16x26xf32, #tpu.memory_space<vmem>>) attributes {dimension_semantics = [#tpu.dimension_semantics<parallel>], iteration_bounds = array<i64: 2>, scalar_prefetch = 0 : i64, scratch_operands = 8 : i64, tpu.core_type = #tpu.core_type<tc>, window_params = [{transform_indices = @transform_0, window_bounds = array<i64: 3, 26, 26>}, {transform_indices = @transform_1, window_bounds = array<i64: 3, 26, 26>}, {transform_indices = @transform_2, window_bounds = array<i64: 1, 8, 128>}]} {
    %c0 = arith.constant 0 : index
    %c0_0 = arith.constant 0 : index
    %c0_1 = arith.constant 0 : index
    %0 = vector.load %arg1[%c0, %c0_0, %c0_1] : memref<3x26x26xf32, #tpu.memory_space<vmem>>, vector<3x26x26xf32>
    %c0_2 = arith.constant 0 : index
    %c0_3 = arith.constant 0 : index
    %c0_4 = arith.constant 0 : index
    %1 = vector.load %arg2[%c0_2, %c0_3, %c0_4] : memref<3x26x26xf32, #tpu.memory_space<vmem>>, vector<3x26x26xf32>
    %2 = arith.mulf %0, %0 : vector<3x26x26xf32>
    %c0_5 = arith.constant 0 : index
    %c0_6 = arith.constant 0 : index
    %c0_7 = arith.constant 0 : index
    %3 = vector.load %arg4[%c0_5, %c0_6, %c0_7] : memref<3x26x26xf32, #tpu.memory_space<vmem>>, vector<3x26x26xf32>
    tpu.vector_store %arg4[%c0_5, %c0_6, %c0_7], %2 {strides = array<i32>} : memref<3x26x26xf32, #tpu.memory_space<vmem>>, vector<3x26x26xf32>,
    %4 = arith.mulf %1, %1 : vector<3x26x26xf32>
    %c0_8 = arith.constant 0 : index
    %c0_9 = arith.constant 0 : index
    %c0_10 = arith.constant 0 : index
    %5 = vector.load %arg5[%c0_8, %c0_9, %c0_10] : memref<3x26x26xf32, #tpu.memory_space<vmem>>, vector<3x26x26xf32>
    tpu.vector_store %arg5[%c0_8, %c0_9, %c0_10], %4 {strides = array<i32>} : memref<3x26x26xf32, #tpu.memory_space<vmem>>, vector<3x26x26xf32>,
    %6 = arith.mulf %0, %1 : vector<3x26x26xf32>
    %c0_11 = arith.constant 0 : index
    %c0_12 = arith.constant 0 : index
    %c0_13 = arith.constant 0 : index
    %7 = vector.load %arg6[%c0_11, %c0_12, %c0_13] : memref<3x26x26xf32, #tpu.memory_space<vmem>>, vector<3x26x26xf32>
    tpu.vector_store %arg6[%c0_11, %c0_12, %c0_13], %6 {strides = array<i32>} : memref<3x26x26xf32, #tpu.memory_space<vmem>>, vector<3x26x26xf32>,
    %cst = arith.constant 0.000000e+00 : f32
    %8 = vector.broadcast %cst : f32 to vector<3x16x26xf32>
    %cst_14 = arith.constant 0.000000e+00 : f32
    %9 = vector.broadcast %cst_14 : f32 to vector<3x16x26xf32>
    %cst_15 = arith.constant 0.000000e+00 : f32
    %10 = vector.broadcast %cst_15 : f32 to vector<3x16x26xf32>
    %cst_16 = arith.constant 0.000000e+00 : f32
    %11 = vector.broadcast %cst_16 : f32 to vector<3x16x26xf32>
    %cst_17 = arith.constant 0.000000e+00 : f32
    %12 = vector.broadcast %cst_17 : f32 to vector<3x16x26xf32>
    %c0_18 = arith.constant 0 : index
    %c0_19 = arith.constant 0 : index
    %c0_20 = arith.constant 0 : index
    %13 = vector.load %arg1[%c0_18, %c0_19, %c0_20] : memref<3x26x26xf32, #tpu.memory_space<vmem>>, vector<3x16x26xf32>
    %cst_21 = arith.constant 0.00102838012 : f32
    %14 = vector.broadcast %cst_21 : f32 to vector<3x16x26xf32>
    %15 = arith.mulf %14, %13 : vector<3x16x26xf32>
    %16 = arith.addf %8, %15 : vector<3x16x26xf32>
    %c0_22 = arith.constant 0 : index
    %c0_23 = arith.constant 0 : index
    %c0_24 = arith.constant 0 : index
    %17 = vector.load %arg2[%c0_22, %c0_23, %c0_24] : memref<3x26x26xf32, #tpu.memory_space<vmem>>, vector<3x16x26xf32>
    %cst_25 = arith.constant 0.00102838012 : f32
    %18 = vector.broadcast %cst_25 : f32 to vector<3x16x26xf32>
    %19 = arith.mulf %18, %17 : vector<3x16x26xf32>
    %20 = arith.addf %9, %19 : vector<3x16x26xf32>
    %c0_26 = arith.constant 0 : index
    %c0_27 = arith.constant 0 : index
    %c0_28 = arith.constant 0 : index
    %21 = vector.load %arg4[%c0_26, %c0_27, %c0_28] : memref<3x26x26xf32, #tpu.memory_space<vmem>>, vector<3x16x26xf32>
    %cst_29 = arith.constant 0.00102838012 : f32
    %22 = vector.broadcast %cst_29 : f32 to vector<3x16x26xf32>
    %23 = arith.mulf %22, %21 : vector<3x16x26xf32>
    %24 = arith.addf %10, %23 : vector<3x16x26xf32>
    %c0_30 = arith.constant 0 : index
    %c0_31 = arith.constant 0 : index
    %c0_32 = arith.constant 0 : index
    %25 = vector.load %arg5[%c0_30, %c0_31, %c0_32] : memref<3x26x26xf32, #tpu.memory_space<vmem>>, vector<3x16x26xf32>
    %cst_33 = arith.constant 0.00102838012 : f32
    %26 = vector.broadcast %cst_33 : f32 to vector<3x16x26xf32>
    %27 = arith.mulf %26, %25 : vector<3x16x26xf32>
    %28 = arith.addf %11, %27 : vector<3x16x26xf32>
    %c0_34 = arith.constant 0 : index
    %c0_35 = arith.constant 0 : index
    %c0_36 = arith.constant 0 : index
    %29 = vector.load %arg6[%c0_34, %c0_35, %c0_36] : memref<3x26x26xf32, #tpu.memory_space<vmem>>, vector<3x16x26xf32>
    %cst_37 = arith.constant 0.00102838012 : f32
    %30 = vector.broadcast %cst_37 : f32 to vector<3x16x26xf32>
    %31 = arith.mulf %30, %29 : vector<3x16x26xf32>
    %32 = arith.addf %12, %31 : vector<3x16x26xf32>
    %c0_38 = arith.constant 0 : index
    %c1 = arith.constant 1 : index
    %c0_39 = arith.constant 0 : index
    %33 = vector.load %arg1[%c0_38, %c1, %c0_39] : memref<3x26x26xf32, #tpu.memory_space<vmem>>, vector<3x16x26xf32>
    %cst_40 = arith.constant 0.00759875821 : f32
    %34 = vector.broadcast %cst_40 : f32 to vector<3x16x26xf32>
    %35 = arith.mulf %34, %33 : vector<3x16x26xf32>
    %36 = arith.addf %16, %35 : vector<3x16x26xf32>
    %c0_41 = arith.constant 0 : index
    %c1_42 = arith.constant 1 : index
    %c0_43 = arith.constant 0 : index
    %37 = vector.load %arg2[%c0_41, %c1_42, %c0_43] : memref<3x26x26xf32, #tpu.memory_space<vmem>>, vector<3x16x26xf32>
    %cst_44 = arith.constant 0.00759875821 : f32
    %38 = vector.broadcast %cst_44 : f32 to vector<3x16x26xf32>
    %39 = arith.mulf %38, %37 : vector<3x16x26xf32>
    %40 = arith.addf %20, %39 : vector<3x16x26xf32>
    %c0_45 = arith.constant 0 : index
    %c1_46 = arith.constant 1 : index
    %c0_47 = arith.constant 0 : index
    %41 = vector.load %arg4[%c0_45, %c1_46, %c0_47] : memref<3x26x26xf32, #tpu.memory_space<vmem>>, vector<3x16x26xf32>
    %cst_48 = arith.constant 0.00759875821 : f32
    %42 = vector.broadcast %cst_48 : f32 to vector<3x16x26xf32>
    %43 = arith.mulf %42, %41 : vector<3x16x26xf32>
    %44 = arith.addf %24, %43 : vector<3x16x26xf32>
    %c0_49 = arith.constant 0 : index
    %c1_50 = arith.constant 1 : index
    %c0_51 = arith.constant 0 : index
    %45 = vector.load %arg5[%c0_49, %c1_50, %c0_51] : memref<3x26x26xf32, #tpu.memory_space<vmem>>, vector<3x16x26xf32>
    %cst_52 = arith.constant 0.00759875821 : f32
    %46 = vector.broadcast %cst_52 : f32 to vector<3x16x26xf32>
    %47 = arith.mulf %46, %45 : vector<3x16x26xf32>
    %48 = arith.addf %28, %47 : vector<3x16x26xf32>
    %c0_53 = arith.constant 0 : index
    %c1_54 = arith.constant 1 : index
    %c0_55 = arith.constant 0 : index
    %49 = vector.load %arg6[%c0_53, %c1_54, %c0_55] : memref<3x26x26xf32, #tpu.memory_space<vmem>>, vector<3x16x26xf32>
    %cst_56 = arith.constant 0.00759875821 : f32
    %50 = vector.broadcast %cst_56 : f32 to vector<3x16x26xf32>
    %51 = arith.mulf %50, %49 : vector<3x16x26xf32>
    %52 = arith.addf %32, %51 : vector<3x16x26xf32>
    %c0_57 = arith.constant 0 : index
    %c2 = arith.constant 2 : index
    %c0_58 = arith.constant 0 : index
    %53 = vector.load %arg1[%c0_57, %c2, %c0_58] : memref<3x26x26xf32, #tpu.memory_space<vmem>>, vector<3x16x26xf32>
    %cst_59 = arith.constant 0.0360007733 : f32
    %54 = vector.broadcast %cst_59 : f32 to vector<3x16x26xf32>
    %55 = arith.mulf %54, %53 : vector<3x16x26xf32>
    %56 = arith.addf %36, %55 : vector<3x16x26xf32>
    %c0_60 = arith.constant 0 : index
    %c2_61 = arith.constant 2 : index
    %c0_62 = arith.constant 0 : index
    %57 = vector.load %arg2[%c0_60, %c2_61, %c0_62] : memref<3x26x26xf32, #tpu.memory_space<vmem>>, vector<3x16x26xf32>
    %cst_63 = arith.constant 0.0360007733 : f32
    %58 = vector.broadcast %cst_63 : f32 to vector<3x16x26xf32>
    %59 = arith.mulf %58, %57 : vector<3x16x26xf32>
    %60 = arith.addf %40, %59 : vector<3x16x26xf32>
    %c0_64 = arith.constant 0 : index
    %c2_65 = arith.constant 2 : index
    %c0_66 = arith.constant 0 : index
    %61 = vector.load %arg4[%c0_64, %c2_65, %c0_66] : memref<3x26x26xf32, #tpu.memory_space<vmem>>, vector<3x16x26xf32>
    %cst_67 = arith.constant 0.0360007733 : f32
    %62 = vector.broadcast %cst_67 : f32 to vector<3x16x26xf32>
    %63 = arith.mulf %62, %61 : vector<3x16x26xf32>
    %64 = arith.addf %44, %63 : vector<3x16x26xf32>
    %c0_68 = arith.constant 0 : index
    %c2_69 = arith.constant 2 : index
    %c0_70 = arith.constant 0 : index
    %65 = vector.load %arg5[%c0_68, %c2_69, %c0_70] : memref<3x26x26xf32, #tpu.memory_space<vmem>>, vector<3x16x26xf32>
    %cst_71 = arith.constant 0.0360007733 : f32
    %66 = vector.broadcast %cst_71 : f32 to vector<3x16x26xf32>
    %67 = arith.mulf %66, %65 : vector<3x16x26xf32>
    %68 = arith.addf %48, %67 : vector<3x16x26xf32>
    %c0_72 = arith.constant 0 : index
    %c2_73 = arith.constant 2 : index
    %c0_74 = arith.constant 0 : index
    %69 = vector.load %arg6[%c0_72, %c2_73, %c0_74] : memref<3x26x26xf32, #tpu.memory_space<vmem>>, vector<3x16x26xf32>
    %cst_75 = arith.constant 0.0360007733 : f32
    %70 = vector.broadcast %cst_75 : f32 to vector<3x16x26xf32>
    %71 = arith.mulf %70, %69 : vector<3x16x26xf32>
    %72 = arith.addf %52, %71 : vector<3x16x26xf32>
    %c0_76 = arith.constant 0 : index
    %c3 = arith.constant 3 : index
    %c0_77 = arith.constant 0 : index
    %73 = vector.load %arg1[%c0_76, %c3, %c0_77] : memref<3x26x26xf32, #tpu.memory_space<vmem>>, vector<3x16x26xf32>
    %cst_78 = arith.constant 0.109360687 : f32
    %74 = vector.broadcast %cst_78 : f32 to vector<3x16x26xf32>
    %75 = arith.mulf %74, %73 : vector<3x16x26xf32>
    %76 = arith.addf %56, %75 : vector<3x16x26xf32>
    %c0_79 = arith.constant 0 : index
    %c3_80 = arith.constant 3 : index
    %c0_81 = arith.constant 0 : index
    %77 = vector.load %arg2[%c0_79, %c3_80, %c0_81] : memref<3x26x26xf32, #tpu.memory_space<vmem>>, vector<3x16x26xf32>
    %cst_82 = arith.constant 0.109360687 : f32
    %78 = vector.broadcast %cst_82 : f32 to vector<3x16x26xf32>
    %79 = arith.mulf %78, %77 : vector<3x16x26xf32>
    %80 = arith.addf %60, %79 : vector<3x16x26xf32>
    %c0_83 = arith.constant 0 : index
    %c3_84 = arith.constant 3 : index
    %c0_85 = arith.constant 0 : index
    %81 = vector.load %arg4[%c0_83, %c3_84, %c0_85] : memref<3x26x26xf32, #tpu.memory_space<vmem>>, vector<3x16x26xf32>
    %cst_86 = arith.constant 0.109360687 : f32
    %82 = vector.broadcast %cst_86 : f32 to vector<3x16x26xf32>
    %83 = arith.mulf %82, %81 : vector<3x16x26xf32>
    %84 = arith.addf %64, %83 : vector<3x16x26xf32>
    %c0_87 = arith.constant 0 : index
    %c3_88 = arith.constant 3 : index
    %c0_89 = arith.constant 0 : index
    %85 = vector.load %arg5[%c0_87, %c3_88, %c0_89] : memref<3x26x26xf32, #tpu.memory_space<vmem>>, vector<3x16x26xf32>
    %cst_90 = arith.constant 0.109360687 : f32
    %86 = vector.broadcast %cst_90 : f32 to vector<3x16x26xf32>
    %87 = arith.mulf %86, %85 : vector<3x16x26xf32>
    %88 = arith.addf %68, %87 : vector<3x16x26xf32>
    %c0_91 = arith.constant 0 : index
    %c3_92 = arith.constant 3 : index
    %c0_93 = arith.constant 0 : index
    %89 = vector.load %arg6[%c0_91, %c3_92, %c0_93] : memref<3x26x26xf32, #tpu.memory_space<vmem>>, vector<3x16x26xf32>
    %cst_94 = arith.constant 0.109360687 : f32
    %90 = vector.broadcast %cst_94 : f32 to vector<3x16x26xf32>
    %91 = arith.mulf %90, %89 : vector<3x16x26xf32>
    %92 = arith.addf %72, %91 : vector<3x16x26xf32>
    %c0_95 = arith.constant 0 : index
    %c4 = arith.constant 4 : index
    %c0_96 = arith.constant 0 : index
    %93 = vector.load %arg1[%c0_95, %c4, %c0_96] : memref<3x26x26xf32, #tpu.memory_space<vmem>>, vector<3x16x26xf32>
    %cst_97 = arith.constant 0.213005543 : f32
    %94 = vector.broadcast %cst_97 : f32 to vector<3x16x26xf32>
    %95 = arith.mulf %94, %93 : vector<3x16x26xf32>
    %96 = arith.addf %76, %95 : vector<3x16x26xf32>
    %c0_98 = arith.constant 0 : index
    %c4_99 = arith.constant 4 : index
    %c0_100 = arith.constant 0 : index
    %97 = vector.load %arg2[%c0_98, %c4_99, %c0_100] : memref<3x26x26xf32, #tpu.memory_space<vmem>>, vector<3x16x26xf32>
    %cst_101 = arith.constant 0.213005543 : f32
    %98 = vector.broadcast %cst_101 : f32 to vector<3x16x26xf32>
    %99 = arith.mulf %98, %97 : vector<3x16x26xf32>
    %100 = arith.addf %80, %99 : vector<3x16x26xf32>
    %c0_102 = arith.constant 0 : index
    %c4_103 = arith.constant 4 : index
    %c0_104 = arith.constant 0 : index
    %101 = vector.load %arg4[%c0_102, %c4_103, %c0_104] : memref<3x26x26xf32, #tpu.memory_space<vmem>>, vector<3x16x26xf32>
    %cst_105 = arith.constant 0.213005543 : f32
    %102 = vector.broadcast %cst_105 : f32 to vector<3x16x26xf32>
    %103 = arith.mulf %102, %101 : vector<3x16x26xf32>
    %104 = arith.addf %84, %103 : vector<3x16x26xf32>
    %c0_106 = arith.constant 0 : index
    %c4_107 = arith.constant 4 : index
    %c0_108 = arith.constant 0 : index
    %105 = vector.load %arg5[%c0_106, %c4_107, %c0_108] : memref<3x26x26xf32, #tpu.memory_space<vmem>>, vector<3x16x26xf32>
    %cst_109 = arith.constant 0.213005543 : f32
    %106 = vector.broadcast %cst_109 : f32 to vector<3x16x26xf32>
    %107 = arith.mulf %106, %105 : vector<3x16x26xf32>
    %108 = arith.addf %88, %107 : vector<3x16x26xf32>
    %c0_110 = arith.constant 0 : index
    %c4_111 = arith.constant 4 : index
    %c0_112 = arith.constant 0 : index
    %109 = vector.load %arg6[%c0_110, %c4_111, %c0_112] : memref<3x26x26xf32, #tpu.memory_space<vmem>>, vector<3x16x26xf32>
    %cst_113 = arith.constant 0.213005543 : f32
    %110 = vector.broadcast %cst_113 : f32 to vector<3x16x26xf32>
    %111 = arith.mulf %110, %109 : vector<3x16x26xf32>
    %112 = arith.addf %92, %111 : vector<3x16x26xf32>
    %c0_114 = arith.constant 0 : index
    %c5 = arith.constant 5 : index
    %c0_115 = arith.constant 0 : index
    %113 = vector.load %arg1[%c0_114, %c5, %c0_115] : memref<3x26x26xf32, #tpu.memory_space<vmem>>, vector<3x16x26xf32>
    %cst_116 = arith.constant 0.266011715 : f32
    %114 = vector.broadcast %cst_116 : f32 to vector<3x16x26xf32>
    %115 = arith.mulf %114, %113 : vector<3x16x26xf32>
    %116 = arith.addf %96, %115 : vector<3x16x26xf32>
    %c0_117 = arith.constant 0 : index
    %c5_118 = arith.constant 5 : index
    %c0_119 = arith.constant 0 : index
    %117 = vector.load %arg2[%c0_117, %c5_118, %c0_119] : memref<3x26x26xf32, #tpu.memory_space<vmem>>, vector<3x16x26xf32>
    %cst_120 = arith.constant 0.266011715 : f32
    %118 = vector.broadcast %cst_120 : f32 to vector<3x16x26xf32>
    %119 = arith.mulf %118, %117 : vector<3x16x26xf32>
    %120 = arith.addf %100, %119 : vector<3x16x26xf32>
    %c0_121 = arith.constant 0 : index
    %c5_122 = arith.constant 5 : index
    %c0_123 = arith.constant 0 : index
    %121 = vector.load %arg4[%c0_121, %c5_122, %c0_123] : memref<3x26x26xf32, #tpu.memory_space<vmem>>, vector<3x16x26xf32>
    %cst_124 = arith.constant 0.266011715 : f32
    %122 = vector.broadcast %cst_124 : f32 to vector<3x16x26xf32>
    %123 = arith.mulf %122, %121 : vector<3x16x26xf32>
    %124 = arith.addf %104, %123 : vector<3x16x26xf32>
    %c0_125 = arith.constant 0 : index
    %c5_126 = arith.constant 5 : index
    %c0_127 = arith.constant 0 : index
    %125 = vector.load %arg5[%c0_125, %c5_126, %c0_127] : memref<3x26x26xf32, #tpu.memory_space<vmem>>, vector<3x16x26xf32>
    %cst_128 = arith.constant 0.266011715 : f32
    %126 = vector.broadcast %cst_128 : f32 to vector<3x16x26xf32>
    %127 = arith.mulf %126, %125 : vector<3x16x26xf32>
    %128 = arith.addf %108, %127 : vector<3x16x26xf32>
    %c0_129 = arith.constant 0 : index
    %c5_130 = arith.constant 5 : index
    %c0_131 = arith.constant 0 : index
    %129 = vector.load %arg6[%c0_129, %c5_130, %c0_131] : memref<3x26x26xf32, #tpu.memory_space<vmem>>, vector<3x16x26xf32>
    %cst_132 = arith.constant 0.266011715 : f32
    %130 = vector.broadcast %cst_132 : f32 to vector<3x16x26xf32>
    %131 = arith.mulf %130, %129 : vector<3x16x26xf32>
    %132 = arith.addf %112, %131 : vector<3x16x26xf32>
    %c0_133 = arith.constant 0 : index
    %c6 = arith.constant 6 : index
    %c0_134 = arith.constant 0 : index
    %133 = vector.load %arg1[%c0_133, %c6, %c0_134] : memref<3x26x26xf32, #tpu.memory_space<vmem>>, vector<3x16x26xf32>
    %cst_135 = arith.constant 0.213005543 : f32
    %134 = vector.broadcast %cst_135 : f32 to vector<3x16x26xf32>
    %135 = arith.mulf %134, %133 : vector<3x16x26xf32>
    %136 = arith.addf %116, %135 : vector<3x16x26xf32>
    %c0_136 = arith.constant 0 : index
    %c6_137 = arith.constant 6 : index
    %c0_138 = arith.constant 0 : index
    %137 = vector.load %arg2[%c0_136, %c6_137, %c0_138] : memref<3x26x26xf32, #tpu.memory_space<vmem>>, vector<3x16x26xf32>
    %cst_139 = arith.constant 0.213005543 : f32
    %138 = vector.broadcast %cst_139 : f32 to vector<3x16x26xf32>
    %139 = arith.mulf %138, %137 : vector<3x16x26xf32>
    %140 = arith.addf %120, %139 : vector<3x16x26xf32>
    %c0_140 = arith.constant 0 : index
    %c6_141 = arith.constant 6 : index
    %c0_142 = arith.constant 0 : index
    %141 = vector.load %arg4[%c0_140, %c6_141, %c0_142] : memref<3x26x26xf32, #tpu.memory_space<vmem>>, vector<3x16x26xf32>
    %cst_143 = arith.constant 0.213005543 : f32
    %142 = vector.broadcast %cst_143 : f32 to vector<3x16x26xf32>
    %143 = arith.mulf %142, %141 : vector<3x16x26xf32>
    %144 = arith.addf %124, %143 : vector<3x16x26xf32>
    %c0_144 = arith.constant 0 : index
    %c6_145 = arith.constant 6 : index
    %c0_146 = arith.constant 0 : index
    %145 = vector.load %arg5[%c0_144, %c6_145, %c0_146] : memref<3x26x26xf32, #tpu.memory_space<vmem>>, vector<3x16x26xf32>
    %cst_147 = arith.constant 0.213005543 : f32
    %146 = vector.broadcast %cst_147 : f32 to vector<3x16x26xf32>
    %147 = arith.mulf %146, %145 : vector<3x16x26xf32>
    %148 = arith.addf %128, %147 : vector<3x16x26xf32>
    %c0_148 = arith.constant 0 : index
    %c6_149 = arith.constant 6 : index
    %c0_150 = arith.constant 0 : index
    %149 = vector.load %arg6[%c0_148, %c6_149, %c0_150] : memref<3x26x26xf32, #tpu.memory_space<vmem>>, vector<3x16x26xf32>
    %cst_151 = arith.constant 0.213005543 : f32
    %150 = vector.broadcast %cst_151 : f32 to vector<3x16x26xf32>
    %151 = arith.mulf %150, %149 : vector<3x16x26xf32>
    %152 = arith.addf %132, %151 : vector<3x16x26xf32>
    %c0_152 = arith.constant 0 : index
    %c7 = arith.constant 7 : index
    %c0_153 = arith.constant 0 : index
    %153 = vector.load %arg1[%c0_152, %c7, %c0_153] : memref<3x26x26xf32, #tpu.memory_space<vmem>>, vector<3x16x26xf32>
    %cst_154 = arith.constant 0.109360687 : f32
    %154 = vector.broadcast %cst_154 : f32 to vector<3x16x26xf32>
    %155 = arith.mulf %154, %153 : vector<3x16x26xf32>
    %156 = arith.addf %136, %155 : vector<3x16x26xf32>
    %c0_155 = arith.constant 0 : index
    %c7_156 = arith.constant 7 : index
    %c0_157 = arith.constant 0 : index
    %157 = vector.load %arg2[%c0_155, %c7_156, %c0_157] : memref<3x26x26xf32, #tpu.memory_space<vmem>>, vector<3x16x26xf32>
    %cst_158 = arith.constant 0.109360687 : f32
    %158 = vector.broadcast %cst_158 : f32 to vector<3x16x26xf32>
    %159 = arith.mulf %158, %157 : vector<3x16x26xf32>
    %160 = arith.addf %140, %159 : vector<3x16x26xf32>
    %c0_159 = arith.constant 0 : index
    %c7_160 = arith.constant 7 : index
    %c0_161 = arith.constant 0 : index
    %161 = vector.load %arg4[%c0_159, %c7_160, %c0_161] : memref<3x26x26xf32, #tpu.memory_space<vmem>>, vector<3x16x26xf32>
    %cst_162 = arith.constant 0.109360687 : f32
    %162 = vector.broadcast %cst_162 : f32 to vector<3x16x26xf32>
    %163 = arith.mulf %162, %161 : vector<3x16x26xf32>
    %164 = arith.addf %144, %163 : vector<3x16x26xf32>
    %c0_163 = arith.constant 0 : index
    %c7_164 = arith.constant 7 : index
    %c0_165 = arith.constant 0 : index
    %165 = vector.load %arg5[%c0_163, %c7_164, %c0_165] : memref<3x26x26xf32, #tpu.memory_space<vmem>>, vector<3x16x26xf32>
    %cst_166 = arith.constant 0.109360687 : f32
    %166 = vector.broadcast %cst_166 : f32 to vector<3x16x26xf32>
    %167 = arith.mulf %166, %165 : vector<3x16x26xf32>
    %168 = arith.addf %148, %167 : vector<3x16x26xf32>
    %c0_167 = arith.constant 0 : index
    %c7_168 = arith.constant 7 : index
    %c0_169 = arith.constant 0 : index
    %169 = vector.load %arg6[%c0_167, %c7_168, %c0_169] : memref<3x26x26xf32, #tpu.memory_space<vmem>>, vector<3x16x26xf32>
    %cst_170 = arith.constant 0.109360687 : f32
    %170 = vector.broadcast %cst_170 : f32 to vector<3x16x26xf32>
    %171 = arith.mulf %170, %169 : vector<3x16x26xf32>
    %172 = arith.addf %152, %171 : vector<3x16x26xf32>
    %c0_171 = arith.constant 0 : index
    %c8 = arith.constant 8 : index
    %c0_172 = arith.constant 0 : index
    %173 = vector.load %arg1[%c0_171, %c8, %c0_172] : memref<3x26x26xf32, #tpu.memory_space<vmem>>, vector<3x16x26xf32>
    %cst_173 = arith.constant 0.0360007733 : f32
    %174 = vector.broadcast %cst_173 : f32 to vector<3x16x26xf32>
    %175 = arith.mulf %174, %173 : vector<3x16x26xf32>
    %176 = arith.addf %156, %175 : vector<3x16x26xf32>
    %c0_174 = arith.constant 0 : index
    %c8_175 = arith.constant 8 : index
    %c0_176 = arith.constant 0 : index
    %177 = vector.load %arg2[%c0_174, %c8_175, %c0_176] : memref<3x26x26xf32, #tpu.memory_space<vmem>>, vector<3x16x26xf32>
    %cst_177 = arith.constant 0.0360007733 : f32
    %178 = vector.broadcast %cst_177 : f32 to vector<3x16x26xf32>
    %179 = arith.mulf %178, %177 : vector<3x16x26xf32>
    %180 = arith.addf %160, %179 : vector<3x16x26xf32>
    %c0_178 = arith.constant 0 : index
    %c8_179 = arith.constant 8 : index
    %c0_180 = arith.constant 0 : index
    %181 = vector.load %arg4[%c0_178, %c8_179, %c0_180] : memref<3x26x26xf32, #tpu.memory_space<vmem>>, vector<3x16x26xf32>
    %cst_181 = arith.constant 0.0360007733 : f32
    %182 = vector.broadcast %cst_181 : f32 to vector<3x16x26xf32>
    %183 = arith.mulf %182, %181 : vector<3x16x26xf32>
    %184 = arith.addf %164, %183 : vector<3x16x26xf32>
    %c0_182 = arith.constant 0 : index
    %c8_183 = arith.constant 8 : index
    %c0_184 = arith.constant 0 : index
    %185 = vector.load %arg5[%c0_182, %c8_183, %c0_184] : memref<3x26x26xf32, #tpu.memory_space<vmem>>, vector<3x16x26xf32>
    %cst_185 = arith.constant 0.0360007733 : f32
    %186 = vector.broadcast %cst_185 : f32 to vector<3x16x26xf32>
    %187 = arith.mulf %186, %185 : vector<3x16x26xf32>
    %188 = arith.addf %168, %187 : vector<3x16x26xf32>
    %c0_186 = arith.constant 0 : index
    %c8_187 = arith.constant 8 : index
    %c0_188 = arith.constant 0 : index
    %189 = vector.load %arg6[%c0_186, %c8_187, %c0_188] : memref<3x26x26xf32, #tpu.memory_space<vmem>>, vector<3x16x26xf32>
    %cst_189 = arith.constant 0.0360007733 : f32
    %190 = vector.broadcast %cst_189 : f32 to vector<3x16x26xf32>
    %191 = arith.mulf %190, %189 : vector<3x16x26xf32>
    %192 = arith.addf %172, %191 : vector<3x16x26xf32>
    %c0_190 = arith.constant 0 : index
    %c9 = arith.constant 9 : index
    %c0_191 = arith.constant 0 : index
    %193 = vector.load %arg1[%c0_190, %c9, %c0_191] : memref<3x26x26xf32, #tpu.memory_space<vmem>>, vector<3x16x26xf32>
    %cst_192 = arith.constant 0.00759875821 : f32
    %194 = vector.broadcast %cst_192 : f32 to vector<3x16x26xf32>
    %195 = arith.mulf %194, %193 : vector<3x16x26xf32>
    %196 = arith.addf %176, %195 : vector<3x16x26xf32>
    %c0_193 = arith.constant 0 : index
    %c9_194 = arith.constant 9 : index
    %c0_195 = arith.constant 0 : index
    %197 = vector.load %arg2[%c0_193, %c9_194, %c0_195] : memref<3x26x26xf32, #tpu.memory_space<vmem>>, vector<3x16x26xf32>
    %cst_196 = arith.constant 0.00759875821 : f32
    %198 = vector.broadcast %cst_196 : f32 to vector<3x16x26xf32>
    %199 = arith.mulf %198, %197 : vector<3x16x26xf32>
    %200 = arith.addf %180, %199 : vector<3x16x26xf32>
    %c0_197 = arith.constant 0 : index
    %c9_198 = arith.constant 9 : index
    %c0_199 = arith.constant 0 : index
    %201 = vector.load %arg4[%c0_197, %c9_198, %c0_199] : memref<3x26x26xf32, #tpu.memory_space<vmem>>, vector<3x16x26xf32>
    %cst_200 = arith.constant 0.00759875821 : f32
    %202 = vector.broadcast %cst_200 : f32 to vector<3x16x26xf32>
    %203 = arith.mulf %202, %201 : vector<3x16x26xf32>
    %204 = arith.addf %184, %203 : vector<3x16x26xf32>
    %c0_201 = arith.constant 0 : index
    %c9_202 = arith.constant 9 : index
    %c0_203 = arith.constant 0 : index
    %205 = vector.load %arg5[%c0_201, %c9_202, %c0_203] : memref<3x26x26xf32, #tpu.memory_space<vmem>>, vector<3x16x26xf32>
    %cst_204 = arith.constant 0.00759875821 : f32
    %206 = vector.broadcast %cst_204 : f32 to vector<3x16x26xf32>
    %207 = arith.mulf %206, %205 : vector<3x16x26xf32>
    %208 = arith.addf %188, %207 : vector<3x16x26xf32>
    %c0_205 = arith.constant 0 : index
    %c9_206 = arith.constant 9 : index
    %c0_207 = arith.constant 0 : index
    %209 = vector.load %arg6[%c0_205, %c9_206, %c0_207] : memref<3x26x26xf32, #tpu.memory_space<vmem>>, vector<3x16x26xf32>
    %cst_208 = arith.constant 0.00759875821 : f32
    %210 = vector.broadcast %cst_208 : f32 to vector<3x16x26xf32>
    %211 = arith.mulf %210, %209 : vector<3x16x26xf32>
    %212 = arith.addf %192, %211 : vector<3x16x26xf32>
    %c0_209 = arith.constant 0 : index
    %c10 = arith.constant 10 : index
    %c0_210 = arith.constant 0 : index
    %213 = vector.load %arg1[%c0_209, %c10, %c0_210] : memref<3x26x26xf32, #tpu.memory_space<vmem>>, vector<3x16x26xf32>
    %cst_211 = arith.constant 0.00102838012 : f32
    %214 = vector.broadcast %cst_211 : f32 to vector<3x16x26xf32>
    %215 = arith.mulf %214, %213 : vector<3x16x26xf32>
    %216 = arith.addf %196, %215 : vector<3x16x26xf32>
    %c0_212 = arith.constant 0 : index
    %c10_213 = arith.constant 10 : index
    %c0_214 = arith.constant 0 : index
    %217 = vector.load %arg2[%c0_212, %c10_213, %c0_214] : memref<3x26x26xf32, #tpu.memory_space<vmem>>, vector<3x16x26xf32>
    %cst_215 = arith.constant 0.00102838012 : f32
    %218 = vector.broadcast %cst_215 : f32 to vector<3x16x26xf32>
    %219 = arith.mulf %218, %217 : vector<3x16x26xf32>
    %220 = arith.addf %200, %219 : vector<3x16x26xf32>
    %c0_216 = arith.constant 0 : index
    %c10_217 = arith.constant 10 : index
    %c0_218 = arith.constant 0 : index
    %221 = vector.load %arg4[%c0_216, %c10_217, %c0_218] : memref<3x26x26xf32, #tpu.memory_space<vmem>>, vector<3x16x26xf32>
    %cst_219 = arith.constant 0.00102838012 : f32
    %222 = vector.broadcast %cst_219 : f32 to vector<3x16x26xf32>
    %223 = arith.mulf %222, %221 : vector<3x16x26xf32>
    %224 = arith.addf %204, %223 : vector<3x16x26xf32>
    %c0_220 = arith.constant 0 : index
    %c10_221 = arith.constant 10 : index
    %c0_222 = arith.constant 0 : index
    %225 = vector.load %arg5[%c0_220, %c10_221, %c0_222] : memref<3x26x26xf32, #tpu.memory_space<vmem>>, vector<3x16x26xf32>
    %cst_223 = arith.constant 0.00102838012 : f32
    %226 = vector.broadcast %cst_223 : f32 to vector<3x16x26xf32>
    %227 = arith.mulf %226, %225 : vector<3x16x26xf32>
    %228 = arith.addf %208, %227 : vector<3x16x26xf32>
    %c0_224 = arith.constant 0 : index
    %c10_225 = arith.constant 10 : index
    %c0_226 = arith.constant 0 : index
    %229 = vector.load %arg6[%c0_224, %c10_225, %c0_226] : memref<3x26x26xf32, #tpu.memory_space<vmem>>, vector<3x16x26xf32>
    %cst_227 = arith.constant 0.00102838012 : f32
    %230 = vector.broadcast %cst_227 : f32 to vector<3x16x26xf32>
    %231 = arith.mulf %230, %229 : vector<3x16x26xf32>
    %232 = arith.addf %212, %231 : vector<3x16x26xf32>
    %c0_228 = arith.constant 0 : index
    %c0_229 = arith.constant 0 : index
    %c0_230 = arith.constant 0 : index
    %233 = vector.load %arg7[%c0_228, %c0_229, %c0_230] : memref<3x16x26xf32, #tpu.memory_space<vmem>>, vector<3x16x26xf32>
    tpu.vector_store %arg7[%c0_228, %c0_229, %c0_230], %216 {strides = array<i32>} : memref<3x16x26xf32, #tpu.memory_space<vmem>>, vector<3x16x26xf32>,
    %c0_231 = arith.constant 0 : index
    %c0_232 = arith.constant 0 : index
    %c0_233 = arith.constant 0 : index
    %234 = vector.load %arg8[%c0_231, %c0_232, %c0_233] : memref<3x16x26xf32, #tpu.memory_space<vmem>>, vector<3x16x26xf32>
    tpu.vector_store %arg8[%c0_231, %c0_232, %c0_233], %220 {strides = array<i32>} : memref<3x16x26xf32, #tpu.memory_space<vmem>>, vector<3x16x26xf32>,
    %c0_234 = arith.constant 0 : index
    %c0_235 = arith.constant 0 : index
    %c0_236 = arith.constant 0 : index
    %235 = vector.load %arg9[%c0_234, %c0_235, %c0_236] : memref<3x16x26xf32, #tpu.memory_space<vmem>>, vector<3x16x26xf32>
    tpu.vector_store %arg9[%c0_234, %c0_235, %c0_236], %224 {strides = array<i32>} : memref<3x16x26xf32, #tpu.memory_space<vmem>>, vector<3x16x26xf32>,
    %c0_237 = arith.constant 0 : index
    %c0_238 = arith.constant 0 : index
    %c0_239 = arith.constant 0 : index
    %236 = vector.load %arg10[%c0_237, %c0_238, %c0_239] : memref<3x16x26xf32, #tpu.memory_space<vmem>>, vector<3x16x26xf32>
    tpu.vector_store %arg10[%c0_237, %c0_238, %c0_239], %228 {strides = array<i32>} : memref<3x16x26xf32, #tpu.memory_space<vmem>>, vector<3x16x26xf32>,
    %c0_240 = arith.constant 0 : index
    %c0_241 = arith.constant 0 : index
    %c0_242 = arith.constant 0 : index
    %237 = vector.load %arg11[%c0_240, %c0_241, %c0_242] : memref<3x16x26xf32, #tpu.memory_space<vmem>>, vector<3x16x26xf32>
    tpu.vector_store %arg11[%c0_240, %c0_241, %c0_242], %232 {strides = array<i32>} : memref<3x16x26xf32, #tpu.memory_space<vmem>>, vector<3x16x26xf32>,
    %cst_243 = arith.constant 0.000000e+00 : f32
    %238 = vector.broadcast %cst_243 : f32 to vector<3x16x16xf32>
    %cst_244 = arith.constant 0.000000e+00 : f32
    %239 = vector.broadcast %cst_244 : f32 to vector<3x16x16xf32>
    %cst_245 = arith.constant 0.000000e+00 : f32
    %240 = vector.broadcast %cst_245 : f32 to vector<3x16x16xf32>
    %cst_246 = arith.constant 0.000000e+00 : f32
    %241 = vector.broadcast %cst_246 : f32 to vector<3x16x16xf32>
    %cst_247 = arith.constant 0.000000e+00 : f32
    %242 = vector.broadcast %cst_247 : f32 to vector<3x16x16xf32>
    %c0_248 = arith.constant 0 : index
    %c0_249 = arith.constant 0 : index
    %c0_250 = arith.constant 0 : index
    %243 = vector.load %arg7[%c0_248, %c0_249, %c0_250] : memref<3x16x26xf32, #tpu.memory_space<vmem>>, vector<3x16x16xf32>
    %cst_251 = arith.constant 0.00102838012 : f32
    %244 = vector.broadcast %cst_251 : f32 to vector<3x16x16xf32>
    %245 = arith.mulf %244, %243 : vector<3x16x16xf32>
    %246 = arith.addf %238, %245 : vector<3x16x16xf32>
    %c0_252 = arith.constant 0 : index
    %c0_253 = arith.constant 0 : index
    %c0_254 = arith.constant 0 : index
    %247 = vector.load %arg8[%c0_252, %c0_253, %c0_254] : memref<3x16x26xf32, #tpu.memory_space<vmem>>, vector<3x16x16xf32>
    %cst_255 = arith.constant 0.00102838012 : f32
    %248 = vector.broadcast %cst_255 : f32 to vector<3x16x16xf32>
    %249 = arith.mulf %248, %247 : vector<3x16x16xf32>
    %250 = arith.addf %239, %249 : vector<3x16x16xf32>
    %c0_256 = arith.constant 0 : index
    %c0_257 = arith.constant 0 : index
    %c0_258 = arith.constant 0 : index
    %251 = vector.load %arg9[%c0_256, %c0_257, %c0_258] : memref<3x16x26xf32, #tpu.memory_space<vmem>>, vector<3x16x16xf32>
    %cst_259 = arith.constant 0.00102838012 : f32
    %252 = vector.broadcast %cst_259 : f32 to vector<3x16x16xf32>
    %253 = arith.mulf %252, %251 : vector<3x16x16xf32>
    %254 = arith.addf %240, %253 : vector<3x16x16xf32>
    %c0_260 = arith.constant 0 : index
    %c0_261 = arith.constant 0 : index
    %c0_262 = arith.constant 0 : index
    %255 = vector.load %arg10[%c0_260, %c0_261, %c0_262] : memref<3x16x26xf32, #tpu.memory_space<vmem>>, vector<3x16x16xf32>
    %cst_263 = arith.constant 0.00102838012 : f32
    %256 = vector.broadcast %cst_263 : f32 to vector<3x16x16xf32>
    %257 = arith.mulf %256, %255 : vector<3x16x16xf32>
    %258 = arith.addf %241, %257 : vector<3x16x16xf32>
    %c0_264 = arith.constant 0 : index
    %c0_265 = arith.constant 0 : index
    %c0_266 = arith.constant 0 : index
    %259 = vector.load %arg11[%c0_264, %c0_265, %c0_266] : memref<3x16x26xf32, #tpu.memory_space<vmem>>, vector<3x16x16xf32>
    %cst_267 = arith.constant 0.00102838012 : f32
    %260 = vector.broadcast %cst_267 : f32 to vector<3x16x16xf32>
    %261 = arith.mulf %260, %259 : vector<3x16x16xf32>
    %262 = arith.addf %242, %261 : vector<3x16x16xf32>
    %c0_268 = arith.constant 0 : index
    %c0_269 = arith.constant 0 : index
    %c1_270 = arith.constant 1 : index
    %263 = vector.load %arg7[%c0_268, %c0_269, %c1_270] : memref<3x16x26xf32, #tpu.memory_space<vmem>>, vector<3x16x16xf32>
    %cst_271 = arith.constant 0.00759875821 : f32
    %264 = vector.broadcast %cst_271 : f32 to vector<3x16x16xf32>
    %265 = arith.mulf %264, %263 : vector<3x16x16xf32>
    %266 = arith.addf %246, %265 : vector<3x16x16xf32>
    %c0_272 = arith.constant 0 : index
    %c0_273 = arith.constant 0 : index
    %c1_274 = arith.constant 1 : index
    %267 = vector.load %arg8[%c0_272, %c0_273, %c1_274] : memref<3x16x26xf32, #tpu.memory_space<vmem>>, vector<3x16x16xf32>
    %cst_275 = arith.constant 0.00759875821 : f32
    %268 = vector.broadcast %cst_275 : f32 to vector<3x16x16xf32>
    %269 = arith.mulf %268, %267 : vector<3x16x16xf32>
    %270 = arith.addf %250, %269 : vector<3x16x16xf32>
    %c0_276 = arith.constant 0 : index
    %c0_277 = arith.constant 0 : index
    %c1_278 = arith.constant 1 : index
    %271 = vector.load %arg9[%c0_276, %c0_277, %c1_278] : memref<3x16x26xf32, #tpu.memory_space<vmem>>, vector<3x16x16xf32>
    %cst_279 = arith.constant 0.00759875821 : f32
    %272 = vector.broadcast %cst_279 : f32 to vector<3x16x16xf32>
    %273 = arith.mulf %272, %271 : vector<3x16x16xf32>
    %274 = arith.addf %254, %273 : vector<3x16x16xf32>
    %c0_280 = arith.constant 0 : index
    %c0_281 = arith.constant 0 : index
    %c1_282 = arith.constant 1 : index
    %275 = vector.load %arg10[%c0_280, %c0_281, %c1_282] : memref<3x16x26xf32, #tpu.memory_space<vmem>>, vector<3x16x16xf32>
    %cst_283 = arith.constant 0.00759875821 : f32
    %276 = vector.broadcast %cst_283 : f32 to vector<3x16x16xf32>
    %277 = arith.mulf %276, %275 : vector<3x16x16xf32>
    %278 = arith.addf %258, %277 : vector<3x16x16xf32>
    %c0_284 = arith.constant 0 : index
    %c0_285 = arith.constant 0 : index
    %c1_286 = arith.constant 1 : index
    %279 = vector.load %arg11[%c0_284, %c0_285, %c1_286] : memref<3x16x26xf32, #tpu.memory_space<vmem>>, vector<3x16x16xf32>
    %cst_287 = arith.constant 0.00759875821 : f32
    %280 = vector.broadcast %cst_287 : f32 to vector<3x16x16xf32>
    %281 = arith.mulf %280, %279 : vector<3x16x16xf32>
    %282 = arith.addf %262, %281 : vector<3x16x16xf32>
    %c0_288 = arith.constant 0 : index
    %c0_289 = arith.constant 0 : index
    %c2_290 = arith.constant 2 : index
    %283 = vector.load %arg7[%c0_288, %c0_289, %c2_290] : memref<3x16x26xf32, #tpu.memory_space<vmem>>, vector<3x16x16xf32>
    %cst_291 = arith.constant 0.0360007733 : f32
    %284 = vector.broadcast %cst_291 : f32 to vector<3x16x16xf32>
    %285 = arith.mulf %284, %283 : vector<3x16x16xf32>
    %286 = arith.addf %266, %285 : vector<3x16x16xf32>
    %c0_292 = arith.constant 0 : index
    %c0_293 = arith.constant 0 : index
    %c2_294 = arith.constant 2 : index
    %287 = vector.load %arg8[%c0_292, %c0_293, %c2_294] : memref<3x16x26xf32, #tpu.memory_space<vmem>>, vector<3x16x16xf32>
    %cst_295 = arith.constant 0.0360007733 : f32
    %288 = vector.broadcast %cst_295 : f32 to vector<3x16x16xf32>
    %289 = arith.mulf %288, %287 : vector<3x16x16xf32>
    %290 = arith.addf %270, %289 : vector<3x16x16xf32>
    %c0_296 = arith.constant 0 : index
    %c0_297 = arith.constant 0 : index
    %c2_298 = arith.constant 2 : index
    %291 = vector.load %arg9[%c0_296, %c0_297, %c2_298] : memref<3x16x26xf32, #tpu.memory_space<vmem>>, vector<3x16x16xf32>
    %cst_299 = arith.constant 0.0360007733 : f32
    %292 = vector.broadcast %cst_299 : f32 to vector<3x16x16xf32>
    %293 = arith.mulf %292, %291 : vector<3x16x16xf32>
    %294 = arith.addf %274, %293 : vector<3x16x16xf32>
    %c0_300 = arith.constant 0 : index
    %c0_301 = arith.constant 0 : index
    %c2_302 = arith.constant 2 : index
    %295 = vector.load %arg10[%c0_300, %c0_301, %c2_302] : memref<3x16x26xf32, #tpu.memory_space<vmem>>, vector<3x16x16xf32>
    %cst_303 = arith.constant 0.0360007733 : f32
    %296 = vector.broadcast %cst_303 : f32 to vector<3x16x16xf32>
    %297 = arith.mulf %296, %295 : vector<3x16x16xf32>
    %298 = arith.addf %278, %297 : vector<3x16x16xf32>
    %c0_304 = arith.constant 0 : index
    %c0_305 = arith.constant 0 : index
    %c2_306 = arith.constant 2 : index
    %299 = vector.load %arg11[%c0_304, %c0_305, %c2_306] : memref<3x16x26xf32, #tpu.memory_space<vmem>>, vector<3x16x16xf32>
    %cst_307 = arith.constant 0.0360007733 : f32
    %300 = vector.broadcast %cst_307 : f32 to vector<3x16x16xf32>
    %301 = arith.mulf %300, %299 : vector<3x16x16xf32>
    %302 = arith.addf %282, %301 : vector<3x16x16xf32>
    %c0_308 = arith.constant 0 : index
    %c0_309 = arith.constant 0 : index
    %c3_310 = arith.constant 3 : index
    %303 = vector.load %arg7[%c0_308, %c0_309, %c3_310] : memref<3x16x26xf32, #tpu.memory_space<vmem>>, vector<3x16x16xf32>
    %cst_311 = arith.constant 0.109360687 : f32
    %304 = vector.broadcast %cst_311 : f32 to vector<3x16x16xf32>
    %305 = arith.mulf %304, %303 : vector<3x16x16xf32>
    %306 = arith.addf %286, %305 : vector<3x16x16xf32>
    %c0_312 = arith.constant 0 : index
    %c0_313 = arith.constant 0 : index
    %c3_314 = arith.constant 3 : index
    %307 = vector.load %arg8[%c0_312, %c0_313, %c3_314] : memref<3x16x26xf32, #tpu.memory_space<vmem>>, vector<3x16x16xf32>
    %cst_315 = arith.constant 0.109360687 : f32
    %308 = vector.broadcast %cst_315 : f32 to vector<3x16x16xf32>
    %309 = arith.mulf %308, %307 : vector<3x16x16xf32>
    %310 = arith.addf %290, %309 : vector<3x16x16xf32>
    %c0_316 = arith.constant 0 : index
    %c0_317 = arith.constant 0 : index
    %c3_318 = arith.constant 3 : index
    %311 = vector.load %arg9[%c0_316, %c0_317, %c3_318] : memref<3x16x26xf32, #tpu.memory_space<vmem>>, vector<3x16x16xf32>
    %cst_319 = arith.constant 0.109360687 : f32
    %312 = vector.broadcast %cst_319 : f32 to vector<3x16x16xf32>
    %313 = arith.mulf %312, %311 : vector<3x16x16xf32>
    %314 = arith.addf %294, %313 : vector<3x16x16xf32>
    %c0_320 = arith.constant 0 : index
    %c0_321 = arith.constant 0 : index
    %c3_322 = arith.constant 3 : index
    %315 = vector.load %arg10[%c0_320, %c0_321, %c3_322] : memref<3x16x26xf32, #tpu.memory_space<vmem>>, vector<3x16x16xf32>
    %cst_323 = arith.constant 0.109360687 : f32
    %316 = vector.broadcast %cst_323 : f32 to vector<3x16x16xf32>
    %317 = arith.mulf %316, %315 : vector<3x16x16xf32>
    %318 = arith.addf %298, %317 : vector<3x16x16xf32>
    %c0_324 = arith.constant 0 : index
    %c0_325 = arith.constant 0 : index
    %c3_326 = arith.constant 3 : index
    %319 = vector.load %arg11[%c0_324, %c0_325, %c3_326] : memref<3x16x26xf32, #tpu.memory_space<vmem>>, vector<3x16x16xf32>
    %cst_327 = arith.constant 0.109360687 : f32
    %320 = vector.broadcast %cst_327 : f32 to vector<3x16x16xf32>
    %321 = arith.mulf %320, %319 : vector<3x16x16xf32>
    %322 = arith.addf %302, %321 : vector<3x16x16xf32>
    %c0_328 = arith.constant 0 : index
    %c0_329 = arith.constant 0 : index
    %c4_330 = arith.constant 4 : index
    %323 = vector.load %arg7[%c0_328, %c0_329, %c4_330] : memref<3x16x26xf32, #tpu.memory_space<vmem>>, vector<3x16x16xf32>
    %cst_331 = arith.constant 0.213005543 : f32
    %324 = vector.broadcast %cst_331 : f32 to vector<3x16x16xf32>
    %325 = arith.mulf %324, %323 : vector<3x16x16xf32>
    %326 = arith.addf %306, %325 : vector<3x16x16xf32>
    %c0_332 = arith.constant 0 : index
    %c0_333 = arith.constant 0 : index
    %c4_334 = arith.constant 4 : index
    %327 = vector.load %arg8[%c0_332, %c0_333, %c4_334] : memref<3x16x26xf32, #tpu.memory_space<vmem>>, vector<3x16x16xf32>
    %cst_335 = arith.constant 0.213005543 : f32
    %328 = vector.broadcast %cst_335 : f32 to vector<3x16x16xf32>
    %329 = arith.mulf %328, %327 : vector<3x16x16xf32>
    %330 = arith.addf %310, %329 : vector<3x16x16xf32>
    %c0_336 = arith.constant 0 : index
    %c0_337 = arith.constant 0 : index
    %c4_338 = arith.constant 4 : index
    %331 = vector.load %arg9[%c0_336, %c0_337, %c4_338] : memref<3x16x26xf32, #tpu.memory_space<vmem>>, vector<3x16x16xf32>
    %cst_339 = arith.constant 0.213005543 : f32
    %332 = vector.broadcast %cst_339 : f32 to vector<3x16x16xf32>
    %333 = arith.mulf %332, %331 : vector<3x16x16xf32>
    %334 = arith.addf %314, %333 : vector<3x16x16xf32>
    %c0_340 = arith.constant 0 : index
    %c0_341 = arith.constant 0 : index
    %c4_342 = arith.constant 4 : index
    %335 = vector.load %arg10[%c0_340, %c0_341, %c4_342] : memref<3x16x26xf32, #tpu.memory_space<vmem>>, vector<3x16x16xf32>
    %cst_343 = arith.constant 0.213005543 : f32
    %336 = vector.broadcast %cst_343 : f32 to vector<3x16x16xf32>
    %337 = arith.mulf %336, %335 : vector<3x16x16xf32>
    %338 = arith.addf %318, %337 : vector<3x16x16xf32>
    %c0_344 = arith.constant 0 : index
    %c0_345 = arith.constant 0 : index
    %c4_346 = arith.constant 4 : index
    %339 = vector.load %arg11[%c0_344, %c0_345, %c4_346] : memref<3x16x26xf32, #tpu.memory_space<vmem>>, vector<3x16x16xf32>
    %cst_347 = arith.constant 0.213005543 : f32
    %340 = vector.broadcast %cst_347 : f32 to vector<3x16x16xf32>
    %341 = arith.mulf %340, %339 : vector<3x16x16xf32>
    %342 = arith.addf %322, %341 : vector<3x16x16xf32>
    %c0_348 = arith.constant 0 : index
    %c0_349 = arith.constant 0 : index
    %c5_350 = arith.constant 5 : index
    %343 = vector.load %arg7[%c0_348, %c0_349, %c5_350] : memref<3x16x26xf32, #tpu.memory_space<vmem>>, vector<3x16x16xf32>
    %cst_351 = arith.constant 0.266011715 : f32
    %344 = vector.broadcast %cst_351 : f32 to vector<3x16x16xf32>
    %345 = arith.mulf %344, %343 : vector<3x16x16xf32>
    %346 = arith.addf %326, %345 : vector<3x16x16xf32>
    %c0_352 = arith.constant 0 : index
    %c0_353 = arith.constant 0 : index
    %c5_354 = arith.constant 5 : index
    %347 = vector.load %arg8[%c0_352, %c0_353, %c5_354] : memref<3x16x26xf32, #tpu.memory_space<vmem>>, vector<3x16x16xf32>
    %cst_355 = arith.constant 0.266011715 : f32
    %348 = vector.broadcast %cst_355 : f32 to vector<3x16x16xf32>
    %349 = arith.mulf %348, %347 : vector<3x16x16xf32>
    %350 = arith.addf %330, %349 : vector<3x16x16xf32>
    %c0_356 = arith.constant 0 : index
    %c0_357 = arith.constant 0 : index
    %c5_358 = arith.constant 5 : index
    %351 = vector.load %arg9[%c0_356, %c0_357, %c5_358] : memref<3x16x26xf32, #tpu.memory_space<vmem>>, vector<3x16x16xf32>
    %cst_359 = arith.constant 0.266011715 : f32
    %352 = vector.broadcast %cst_359 : f32 to vector<3x16x16xf32>
    %353 = arith.mulf %352, %351 : vector<3x16x16xf32>
    %354 = arith.addf %334, %353 : vector<3x16x16xf32>
    %c0_360 = arith.constant 0 : index
    %c0_361 = arith.constant 0 : index
    %c5_362 = arith.constant 5 : index
    %355 = vector.load %arg10[%c0_360, %c0_361, %c5_362] : memref<3x16x26xf32, #tpu.memory_space<vmem>>, vector<3x16x16xf32>
    %cst_363 = arith.constant 0.266011715 : f32
    %356 = vector.broadcast %cst_363 : f32 to vector<3x16x16xf32>
    %357 = arith.mulf %356, %355 : vector<3x16x16xf32>
    %358 = arith.addf %338, %357 : vector<3x16x16xf32>
    %c0_364 = arith.constant 0 : index
    %c0_365 = arith.constant 0 : index
    %c5_366 = arith.constant 5 : index
    %359 = vector.load %arg11[%c0_364, %c0_365, %c5_366] : memref<3x16x26xf32, #tpu.memory_space<vmem>>, vector<3x16x16xf32>
    %cst_367 = arith.constant 0.266011715 : f32
    %360 = vector.broadcast %cst_367 : f32 to vector<3x16x16xf32>
    %361 = arith.mulf %360, %359 : vector<3x16x16xf32>
    %362 = arith.addf %342, %361 : vector<3x16x16xf32>
    %c0_368 = arith.constant 0 : index
    %c0_369 = arith.constant 0 : index
    %c6_370 = arith.constant 6 : index
    %363 = vector.load %arg7[%c0_368, %c0_369, %c6_370] : memref<3x16x26xf32, #tpu.memory_space<vmem>>, vector<3x16x16xf32>
    %cst_371 = arith.constant 0.213005543 : f32
    %364 = vector.broadcast %cst_371 : f32 to vector<3x16x16xf32>
    %365 = arith.mulf %364, %363 : vector<3x16x16xf32>
    %366 = arith.addf %346, %365 : vector<3x16x16xf32>
    %c0_372 = arith.constant 0 : index
    %c0_373 = arith.constant 0 : index
    %c6_374 = arith.constant 6 : index
    %367 = vector.load %arg8[%c0_372, %c0_373, %c6_374] : memref<3x16x26xf32, #tpu.memory_space<vmem>>, vector<3x16x16xf32>
    %cst_375 = arith.constant 0.213005543 : f32
    %368 = vector.broadcast %cst_375 : f32 to vector<3x16x16xf32>
    %369 = arith.mulf %368, %367 : vector<3x16x16xf32>
    %370 = arith.addf %350, %369 : vector<3x16x16xf32>
    %c0_376 = arith.constant 0 : index
    %c0_377 = arith.constant 0 : index
    %c6_378 = arith.constant 6 : index
    %371 = vector.load %arg9[%c0_376, %c0_377, %c6_378] : memref<3x16x26xf32, #tpu.memory_space<vmem>>, vector<3x16x16xf32>
    %cst_379 = arith.constant 0.213005543 : f32
    %372 = vector.broadcast %cst_379 : f32 to vector<3x16x16xf32>
    %373 = arith.mulf %372, %371 : vector<3x16x16xf32>
    %374 = arith.addf %354, %373 : vector<3x16x16xf32>
    %c0_380 = arith.constant 0 : index
    %c0_381 = arith.constant 0 : index
    %c6_382 = arith.constant 6 : index
    %375 = vector.load %arg10[%c0_380, %c0_381, %c6_382] : memref<3x16x26xf32, #tpu.memory_space<vmem>>, vector<3x16x16xf32>
    %cst_383 = arith.constant 0.213005543 : f32
    %376 = vector.broadcast %cst_383 : f32 to vector<3x16x16xf32>
    %377 = arith.mulf %376, %375 : vector<3x16x16xf32>
    %378 = arith.addf %358, %377 : vector<3x16x16xf32>
    %c0_384 = arith.constant 0 : index
    %c0_385 = arith.constant 0 : index
    %c6_386 = arith.constant 6 : index
    %379 = vector.load %arg11[%c0_384, %c0_385, %c6_386] : memref<3x16x26xf32, #tpu.memory_space<vmem>>, vector<3x16x16xf32>
    %cst_387 = arith.constant 0.213005543 : f32
    %380 = vector.broadcast %cst_387 : f32 to vector<3x16x16xf32>
    %381 = arith.mulf %380, %379 : vector<3x16x16xf32>
    %382 = arith.addf %362, %381 : vector<3x16x16xf32>
    %c0_388 = arith.constant 0 : index
    %c0_389 = arith.constant 0 : index
    %c7_390 = arith.constant 7 : index
    %383 = vector.load %arg7[%c0_388, %c0_389, %c7_390] : memref<3x16x26xf32, #tpu.memory_space<vmem>>, vector<3x16x16xf32>
    %cst_391 = arith.constant 0.109360687 : f32
    %384 = vector.broadcast %cst_391 : f32 to vector<3x16x16xf32>
    %385 = arith.mulf %384, %383 : vector<3x16x16xf32>
    %386 = arith.addf %366, %385 : vector<3x16x16xf32>
    %c0_392 = arith.constant 0 : index
    %c0_393 = arith.constant 0 : index
    %c7_394 = arith.constant 7 : index
    %387 = vector.load %arg8[%c0_392, %c0_393, %c7_394] : memref<3x16x26xf32, #tpu.memory_space<vmem>>, vector<3x16x16xf32>
    %cst_395 = arith.constant 0.109360687 : f32
    %388 = vector.broadcast %cst_395 : f32 to vector<3x16x16xf32>
    %389 = arith.mulf %388, %387 : vector<3x16x16xf32>
    %390 = arith.addf %370, %389 : vector<3x16x16xf32>
    %c0_396 = arith.constant 0 : index
    %c0_397 = arith.constant 0 : index
    %c7_398 = arith.constant 7 : index
    %391 = vector.load %arg9[%c0_396, %c0_397, %c7_398] : memref<3x16x26xf32, #tpu.memory_space<vmem>>, vector<3x16x16xf32>
    %cst_399 = arith.constant 0.109360687 : f32
    %392 = vector.broadcast %cst_399 : f32 to vector<3x16x16xf32>
    %393 = arith.mulf %392, %391 : vector<3x16x16xf32>
    %394 = arith.addf %374, %393 : vector<3x16x16xf32>
    %c0_400 = arith.constant 0 : index
    %c0_401 = arith.constant 0 : index
    %c7_402 = arith.constant 7 : index
    %395 = vector.load %arg10[%c0_400, %c0_401, %c7_402] : memref<3x16x26xf32, #tpu.memory_space<vmem>>, vector<3x16x16xf32>
    %cst_403 = arith.constant 0.109360687 : f32
    %396 = vector.broadcast %cst_403 : f32 to vector<3x16x16xf32>
    %397 = arith.mulf %396, %395 : vector<3x16x16xf32>
    %398 = arith.addf %378, %397 : vector<3x16x16xf32>
    %c0_404 = arith.constant 0 : index
    %c0_405 = arith.constant 0 : index
    %c7_406 = arith.constant 7 : index
    %399 = vector.load %arg11[%c0_404, %c0_405, %c7_406] : memref<3x16x26xf32, #tpu.memory_space<vmem>>, vector<3x16x16xf32>
    %cst_407 = arith.constant 0.109360687 : f32
    %400 = vector.broadcast %cst_407 : f32 to vector<3x16x16xf32>
    %401 = arith.mulf %400, %399 : vector<3x16x16xf32>
    %402 = arith.addf %382, %401 : vector<3x16x16xf32>
    %c0_408 = arith.constant 0 : index
    %c0_409 = arith.constant 0 : index
    %c8_410 = arith.constant 8 : index
    %403 = vector.load %arg7[%c0_408, %c0_409, %c8_410] : memref<3x16x26xf32, #tpu.memory_space<vmem>>, vector<3x16x16xf32>
    %cst_411 = arith.constant 0.0360007733 : f32
    %404 = vector.broadcast %cst_411 : f32 to vector<3x16x16xf32>
    %405 = arith.mulf %404, %403 : vector<3x16x16xf32>
    %406 = arith.addf %386, %405 : vector<3x16x16xf32>
    %c0_412 = arith.constant 0 : index
    %c0_413 = arith.constant 0 : index
    %c8_414 = arith.constant 8 : index
    %407 = vector.load %arg8[%c0_412, %c0_413, %c8_414] : memref<3x16x26xf32, #tpu.memory_space<vmem>>, vector<3x16x16xf32>
    %cst_415 = arith.constant 0.0360007733 : f32
    %408 = vector.broadcast %cst_415 : f32 to vector<3x16x16xf32>
    %409 = arith.mulf %408, %407 : vector<3x16x16xf32>
    %410 = arith.addf %390, %409 : vector<3x16x16xf32>
    %c0_416 = arith.constant 0 : index
    %c0_417 = arith.constant 0 : index
    %c8_418 = arith.constant 8 : index
    %411 = vector.load %arg9[%c0_416, %c0_417, %c8_418] : memref<3x16x26xf32, #tpu.memory_space<vmem>>, vector<3x16x16xf32>
    %cst_419 = arith.constant 0.0360007733 : f32
    %412 = vector.broadcast %cst_419 : f32 to vector<3x16x16xf32>
    %413 = arith.mulf %412, %411 : vector<3x16x16xf32>
    %414 = arith.addf %394, %413 : vector<3x16x16xf32>
    %c0_420 = arith.constant 0 : index
    %c0_421 = arith.constant 0 : index
    %c8_422 = arith.constant 8 : index
    %415 = vector.load %arg10[%c0_420, %c0_421, %c8_422] : memref<3x16x26xf32, #tpu.memory_space<vmem>>, vector<3x16x16xf32>
    %cst_423 = arith.constant 0.0360007733 : f32
    %416 = vector.broadcast %cst_423 : f32 to vector<3x16x16xf32>
    %417 = arith.mulf %416, %415 : vector<3x16x16xf32>
    %418 = arith.addf %398, %417 : vector<3x16x16xf32>
    %c0_424 = arith.constant 0 : index
    %c0_425 = arith.constant 0 : index
    %c8_426 = arith.constant 8 : index
    %419 = vector.load %arg11[%c0_424, %c0_425, %c8_426] : memref<3x16x26xf32, #tpu.memory_space<vmem>>, vector<3x16x16xf32>
    %cst_427 = arith.constant 0.0360007733 : f32
    %420 = vector.broadcast %cst_427 : f32 to vector<3x16x16xf32>
    %421 = arith.mulf %420, %419 : vector<3x16x16xf32>
    %422 = arith.addf %402, %421 : vector<3x16x16xf32>
    %c0_428 = arith.constant 0 : index
    %c0_429 = arith.constant 0 : index
    %c9_430 = arith.constant 9 : index
    %423 = vector.load %arg7[%c0_428, %c0_429, %c9_430] : memref<3x16x26xf32, #tpu.memory_space<vmem>>, vector<3x16x16xf32>
    %cst_431 = arith.constant 0.00759875821 : f32
    %424 = vector.broadcast %cst_431 : f32 to vector<3x16x16xf32>
    %425 = arith.mulf %424, %423 : vector<3x16x16xf32>
    %426 = arith.addf %406, %425 : vector<3x16x16xf32>
    %c0_432 = arith.constant 0 : index
    %c0_433 = arith.constant 0 : index
    %c9_434 = arith.constant 9 : index
    %427 = vector.load %arg8[%c0_432, %c0_433, %c9_434] : memref<3x16x26xf32, #tpu.memory_space<vmem>>, vector<3x16x16xf32>
    %cst_435 = arith.constant 0.00759875821 : f32
    %428 = vector.broadcast %cst_435 : f32 to vector<3x16x16xf32>
    %429 = arith.mulf %428, %427 : vector<3x16x16xf32>
    %430 = arith.addf %410, %429 : vector<3x16x16xf32>
    %c0_436 = arith.constant 0 : index
    %c0_437 = arith.constant 0 : index
    %c9_438 = arith.constant 9 : index
    %431 = vector.load %arg9[%c0_436, %c0_437, %c9_438] : memref<3x16x26xf32, #tpu.memory_space<vmem>>, vector<3x16x16xf32>
    %cst_439 = arith.constant 0.00759875821 : f32
    %432 = vector.broadcast %cst_439 : f32 to vector<3x16x16xf32>
    %433 = arith.mulf %432, %431 : vector<3x16x16xf32>
    %434 = arith.addf %414, %433 : vector<3x16x16xf32>
    %c0_440 = arith.constant 0 : index
    %c0_441 = arith.constant 0 : index
    %c9_442 = arith.constant 9 : index
    %435 = vector.load %arg10[%c0_440, %c0_441, %c9_442] : memref<3x16x26xf32, #tpu.memory_space<vmem>>, vector<3x16x16xf32>
    %cst_443 = arith.constant 0.00759875821 : f32
    %436 = vector.broadcast %cst_443 : f32 to vector<3x16x16xf32>
    %437 = arith.mulf %436, %435 : vector<3x16x16xf32>
    %438 = arith.addf %418, %437 : vector<3x16x16xf32>
    %c0_444 = arith.constant 0 : index
    %c0_445 = arith.constant 0 : index
    %c9_446 = arith.constant 9 : index
    %439 = vector.load %arg11[%c0_444, %c0_445, %c9_446] : memref<3x16x26xf32, #tpu.memory_space<vmem>>, vector<3x16x16xf32>
    %cst_447 = arith.constant 0.00759875821 : f32
    %440 = vector.broadcast %cst_447 : f32 to vector<3x16x16xf32>
    %441 = arith.mulf %440, %439 : vector<3x16x16xf32>
    %442 = arith.addf %422, %441 : vector<3x16x16xf32>
    %c0_448 = arith.constant 0 : index
    %c0_449 = arith.constant 0 : index
    %c10_450 = arith.constant 10 : index
    %443 = vector.load %arg7[%c0_448, %c0_449, %c10_450] : memref<3x16x26xf32, #tpu.memory_space<vmem>>, vector<3x16x16xf32>
    %cst_451 = arith.constant 0.00102838012 : f32
    %444 = vector.broadcast %cst_451 : f32 to vector<3x16x16xf32>
    %445 = arith.mulf %444, %443 : vector<3x16x16xf32>
    %446 = arith.addf %426, %445 : vector<3x16x16xf32>
    %c0_452 = arith.constant 0 : index
    %c0_453 = arith.constant 0 : index
    %c10_454 = arith.constant 10 : index
    %447 = vector.load %arg8[%c0_452, %c0_453, %c10_454] : memref<3x16x26xf32, #tpu.memory_space<vmem>>, vector<3x16x16xf32>
    %cst_455 = arith.constant 0.00102838012 : f32
    %448 = vector.broadcast %cst_455 : f32 to vector<3x16x16xf32>
    %449 = arith.mulf %448, %447 : vector<3x16x16xf32>
    %450 = arith.addf %430, %449 : vector<3x16x16xf32>
    %c0_456 = arith.constant 0 : index
    %c0_457 = arith.constant 0 : index
    %c10_458 = arith.constant 10 : index
    %451 = vector.load %arg9[%c0_456, %c0_457, %c10_458] : memref<3x16x26xf32, #tpu.memory_space<vmem>>, vector<3x16x16xf32>
    %cst_459 = arith.constant 0.00102838012 : f32
    %452 = vector.broadcast %cst_459 : f32 to vector<3x16x16xf32>
    %453 = arith.mulf %452, %451 : vector<3x16x16xf32>
    %454 = arith.addf %434, %453 : vector<3x16x16xf32>
    %c0_460 = arith.constant 0 : index
    %c0_461 = arith.constant 0 : index
    %c10_462 = arith.constant 10 : index
    %455 = vector.load %arg10[%c0_460, %c0_461, %c10_462] : memref<3x16x26xf32, #tpu.memory_space<vmem>>, vector<3x16x16xf32>
    %cst_463 = arith.constant 0.00102838012 : f32
    %456 = vector.broadcast %cst_463 : f32 to vector<3x16x16xf32>
    %457 = arith.mulf %456, %455 : vector<3x16x16xf32>
    %458 = arith.addf %438, %457 : vector<3x16x16xf32>
    %c0_464 = arith.constant 0 : index
    %c0_465 = arith.constant 0 : index
    %c10_466 = arith.constant 10 : index
    %459 = vector.load %arg11[%c0_464, %c0_465, %c10_466] : memref<3x16x26xf32, #tpu.memory_space<vmem>>, vector<3x16x16xf32>
    %cst_467 = arith.constant 0.00102838012 : f32
    %460 = vector.broadcast %cst_467 : f32 to vector<3x16x16xf32>
    %461 = arith.mulf %460, %459 : vector<3x16x16xf32>
    %462 = arith.addf %442, %461 : vector<3x16x16xf32>
    %463 = arith.mulf %446, %446 : vector<3x16x16xf32>
    %464 = arith.mulf %450, %450 : vector<3x16x16xf32>
    %465 = arith.mulf %446, %450 : vector<3x16x16xf32>
    %466 = arith.subf %454, %463 : vector<3x16x16xf32>
    %467 = arith.subf %458, %464 : vector<3x16x16xf32>
    %468 = arith.subf %462, %465 : vector<3x16x16xf32>
    %cst_468 = arith.constant 2.000000e+00 : f32
    %469 = vector.broadcast %cst_468 : f32 to vector<3x16x16xf32>
    %470 = arith.mulf %469, %465 : vector<3x16x16xf32>
    %cst_469 = arith.constant 9.99999974E-5 : f32
    %471 = vector.broadcast %cst_469 : f32 to vector<3x16x16xf32>
    %472 = arith.addf %470, %471 : vector<3x16x16xf32>
    %cst_470 = arith.constant 2.000000e+00 : f32
    %473 = vector.broadcast %cst_470 : f32 to vector<3x16x16xf32>
    %474 = arith.mulf %473, %468 : vector<3x16x16xf32>
    %cst_471 = arith.constant 8.99999984E-4 : f32
    %475 = vector.broadcast %cst_471 : f32 to vector<3x16x16xf32>
    %476 = arith.addf %474, %475 : vector<3x16x16xf32>
    %477 = arith.mulf %472, %476 : vector<3x16x16xf32>
    %478 = arith.addf %463, %464 : vector<3x16x16xf32>
    %cst_472 = arith.constant 9.99999974E-5 : f32
    %479 = vector.broadcast %cst_472 : f32 to vector<3x16x16xf32>
    %480 = arith.addf %478, %479 : vector<3x16x16xf32>
    %481 = arith.addf %466, %467 : vector<3x16x16xf32>
    %cst_473 = arith.constant 8.99999984E-4 : f32
    %482 = vector.broadcast %cst_473 : f32 to vector<3x16x16xf32>
    %483 = arith.addf %481, %482 : vector<3x16x16xf32>
    %484 = arith.mulf %480, %483 : vector<3x16x16xf32>
    %485 = arith.divf %477, %484 : vector<3x16x16xf32>
    %486 = vector.shape_cast %485 : vector<3x16x16xf32> to vector<1x3x16x16xf32>
    %cst_474 = arith.constant dense<0.000000e+00> : vector<1xf32>
    %487 = vector.multi_reduction <add>, %486, %cst_474 [1, 2, 3] : vector<1x3x16x16xf32> to vector<1xf32>
    %488 = vector.shape_cast %487 : vector<1xf32> to vector<1x1x1x1xf32>
    %489 = vector.extract %488[0, 0, 0, 0] : f32 from vector<1x1x1x1xf32>
    %490 = vector.broadcast %489 : f32 to vector<1x8x128xf32>
    %c0_475 = arith.constant 0 : index
    %c0_476 = arith.constant 0 : index
    %c0_477 = arith.constant 0 : index
    %491 = vector.load %arg3[%c0_475, %c0_476, %c0_477] : memref<1x8x128xf32, #tpu.memory_space<vmem>>, vector<1x8x128xf32>
    tpu.vector_store %arg3[%c0_475, %c0_476, %c0_477], %490 {strides = array<i32>} : memref<1x8x128xf32, #tpu.memory_space<vmem>>, vector<1x8x128xf32>,
    return
  }
  func.func @transform_0(%arg0: i32) -> (i32, i32, i32) {
    %c0_i32 = arith.constant 0 : i32
    %c0_i32_0 = arith.constant 0 : i32
    %c0_i32_1 = arith.constant 0 : i32
    return %arg0, %c0_i32, %c0_i32_0 : i32, i32, i32
  }
  func.func @transform_1(%arg0: i32) -> (i32, i32, i32) {
    %c0_i32 = arith.constant 0 : i32
    %c0_i32_0 = arith.constant 0 : i32
    %c0_i32_1 = arith.constant 0 : i32
    return %arg0, %c0_i32, %c0_i32_0 : i32, i32, i32
  }
  func.func @transform_2(%arg0: i32) -> (i32, i32, i32) {
    %c0_i32 = arith.constant 0 : i32
    %c0_i32_0 = arith.constant 0 : i32
    %c0_i32_1 = arith.constant 0 : i32
    return %arg0, %c0_i32, %c0_i32_0 : i32, i32, i32
  }
}

</mosaic_0001>

<bundles_post_ra>
// kernel: tpu_custom_call.1
= control target key start
LH: loop header
LB: loop body
LE: loop exit
PB: predicated region body
PF: predicated region fallthrough
CT: control target
= control target key end

     0   :  { %7 = vsyncpa [#allocation11], 0  ;;  %s6233_s0 = inlined_call_operand.hbm [shape: f32[6,26,26], index: 0, kind: input, shape index: {}]   ;;  %s6234_s1 = inlined_call_operand.hbm [shape: f32[6,26,26], index: 1, kind: input, shape index: {}]   ;;  %s6235_s2 = inlined_call_operand.hbm [shape: f32[2,8,128], index: 2, kind: output, shape index: {}]  }
   0x1   :  { %9 = vsyncpa [#allocation11 + $0x1], 0 }
   0x2   :  { %10 = vsyncpa [#allocation14], 0 }
   0x3   :  { %12 = vsyncpa [#allocation14 + $0x1], 0 }
   0x4   :  { %13 = vsyncpa [#allocation12], 0 }
   0x5   :  { %15 = vsyncpa [#allocation12 + $0x1], 0  ;;  %s3519_s9 = smov 0   ;;  %s3521_s10 = smov 0  }
   0x6   :  { %s3523_s11 = smov 0   ;;  %s3525_s12 = smov 0  }
   0x7 LB: > { %s3540_s13 = sadd.s32 4294967295, %s3490_s12   ;;  %s3206_s14 = sadd.s32 4294967294, %s3490_s12   ;;  %s3490_s12 = sphi %s3525_s12, %s6840_s12   ;;  %s3486_s11 = sphi %s3523_s11, %s6839_s11   ;;  %s3482_s10 = sphi %s3521_s10, %s6838_s10   ;;  %s3478_s9 = sphi %s3519_s9, %s6837_s9  }
   0x8   : > { %s3544_s15 = sadd.s32 1, %s3490_s12   ;;  %s28_s16 = sadd.s32 1, %s3486_s11 }
   0x9   : > { %s25_s17 = ssub.s32 %s3490_s12, %s3544_s15  ;;  %p35_p0 = scmp.ne.s32.totalorder %s3486_s11, %s3482_s10 }
   0xa   : > { %p26_p1 = scmp.eq.s32.totalorder %s25_s17, 0  ;;  %p36_p2 = scmp.eq.s32.totalorder %s3490_s12, 0 }
   0xb   : > { %p41_p3 = scmp.ne.s32.totalorder %s3482_s10, %s3478_s9  ;;  %p42_p4 = scmp.eq.s32.totalorder %s3540_s13, 0 }
   0xc   : > { %s3556_s18 = scalar_select %p26_p1, %s3486_s11, %s28_s16  }
   0xd   : > { %p37_p5 = por %p36_p2, %p35_p0  ;;  %p3558_p6 = por %p42_p4, %p41_p3 }
   0xe   : > { %p91_p7 = scmp.eq.s32.totalorder %s3540_s13, 1  ;;  %p97_p8 = scmp.eq.s32.totalorder %s3206_s14, 1 }
   0xf   : > { %p3208_p9 = scmp.ge.s32.totalorder %s3490_s12, 2  ;;  %p3247_p10 = scmp.lt.s32.totalorder %s3490_s12, 2 }
  0x10   : > { %p3565_p11 = por %p91_p7, %p35_p0  ;;  %p3569_p12 = por %p97_p8, %p41_p3 }
  0x11   : > { %s3574_s22 = sand.u32 1, %s3486_s11   ;;  %s3223_s23 = smul.u32 96, %s3490_s12 }
  0x12   : > { %s3225_s24 = smul.u32 96, %s3574_s22  ;;  %p3583_p13 = pnand %p3247_p10, %p37_p5 }
  0x13   : > { %s127_s27 = scalar_lea.hbm %s6233_s0, %s3223_s23  ;;  %s118_s4 = scalar_lea.sflag [#allocation11], %s3574_s22 }
  0x14   : > { %s128_s29 = sshll.u32 %s127_s27, 4  ;;  %s121_s30 = scalar_lea.vmem [#allocation10], %s3225_s24  ;;  %s129_s29 = int_to_ptr.hbm [resolvable:$true] %s128_s29 }
  0x15   : > { %s130_s3 = sshll.u32 %s121_s30, 4  ;;  %s3360_s5 = sshra.s32 %s129_s29, 4  ;;  %s131_s3 = int_to_ptr.vmem [resolvable:$true] %s130_s3  ;;  %s3361_s5 = int_to_ptr.hbm [resolvable:$true] %s3360_s5 }
  0x16   : > { %s3362_s6 = scalar_lea.hbm %s3361_s5, 96  ;;  %p3364_p1 = pneg %p3583_p13 }
  0x17   : > { %p3363_p0 = scmp.ne.s32.totalorder %s3361_s5, %s3362_s6  ;;  %s3367_s14 = scalar_lea.hbm %s6233_s0, 192 }
  0x18   : > { %p3368_p4 = scmp.lt.s32.totalorder %s3361_s5, %s6233_s0  ;;  %p3369_p5 = scmp.lt.s32.totalorder %s3367_s14, %s3362_s6 }
  0x19   : > { %p3365_p2 = pnand %p3364_p1, %p3363_p0 }
  0x1a   : > { %p3370_p7 = por %p3369_p5, %p3368_p4 }
  0x1b   : > { %p3366_p3 = pneg %p3365_p2 }
  0x1d   : > { %p3371_p8 = pnand %p3370_p7, %p3366_p3 }
  0x1f   : > { %3374 = shalt.err (!%p3371_p8)
}
  0x20   : > { %s3492_s25 = smov 128   ;;  %s3493_s26 = smov 8  }
  0x21   : > { %3239 = dma.hbm_to_vmem [thread:$0]  (!%p3583_p13), %s129_s29, 1536, %s131_s3, %s118_s4, %s3492_s25, %s3492_s25, %s3493_s26  }
  0x22   : > { %p3213_p10 = scmp.ge.s32.totalorder %s3490_s12, 1  ;;  %p161_p0 = scmp.lt.s32.totalorder %s3490_s12, 3 }
  0x23   : > { %s150_s6 = scalar_lea.hbm %s6234_s1, %s3223_s23  ;;  %s144_s8 = scalar_lea.vmem [#allocation13], %s3225_s24 }
  0x24   : > { %p3605_p2 = pnand %p3213_p10, %p161_p0  ;;  %s151_s7 = sshll.u32 %s150_s6, 4  ;;  %s152_s7 = int_to_ptr.hbm [resolvable:$true] %s151_s7 }
  0x25   : > { %s153_s14 = sshll.u32 %s144_s8, 4  ;;  %s141_s16 = scalar_lea.sflag [#allocation14], %s3574_s22  ;;  %s154_s14 = int_to_ptr.vmem [resolvable:$true] %s153_s14 }
  0x26   : > { %s3390_s17 = sshra.s32 %s152_s7, 4  ;;  %s3397_s30 = scalar_lea.hbm %s6234_s1, 192  ;;  %s3391_s17 = int_to_ptr.hbm [resolvable:$true] %s3390_s17 }
  0x27   : > { %s3392_s29 = scalar_lea.hbm %s3391_s17, 96  ;;  %p3398_p7 = scmp.lt.s32.totalorder %s3391_s17, %s6234_s1 }
  0x28   : > { %p3393_p3 = scmp.ne.s32.totalorder %s3391_s17, %s3392_s29  ;;  %p3399_p8 = scmp.lt.s32.totalorder %s3397_s30, %s3392_s29 }
  0x2a   : > { %p3395_p4 = pnand %p3393_p3, %p3364_p1  ;;  %p3400_p10 = por %p3399_p8, %p3398_p7 }
  0x2c   : > { %p3396_p5 = pneg %p3395_p4 }
  0x2e   : > { %p3401_p0 = pnand %p3400_p10, %p3396_p5 }
  0x30   : > { %3404 = shalt.err (!%p3401_p0)
}
  0x31   : > { %3242 = dma.hbm_to_vmem [thread:$0]  (!%p3583_p13), %s152_s7, 1536, %s154_s14, %s141_s16, %s3492_s25, %s3492_s25, %s3493_s26  }
  0x32   : > { %165 = sbr.rel (%p3605_p2) target bundleno = 1317 (0x525), region = 28 }
  0x37   : > { %s3631_s22 = sand.u32 1, %s3482_s10  }
  0x38   : > { %s3227_s24 = smul.u32 96, %s3631_s22  ;;  %s168_s6 = scalar_lea.sflag [#allocation11], %s3631_s22 }
  0x3a   : > { %s3635_s8 = scalar_lea.vmem [#allocation10], %s3227_s24 }
  0x3b   : > { %3465 = dma.done.wait (%p3558_p6), %s168_s6, 1536  }
  0x3c   : > { %3467 = vsyncadd (%p3558_p6), %s168_s6, 4294965760  ;;  %s178_s28 = scalar_lea.sflag [#allocation14], %s3631_s22  ;;  %s3642_s25 = scalar_lea.vmem [#allocation13], %s3227_s24 }
  0x3d   : > { %3469 = dma.done.wait (%p3558_p6), %s178_s28, 1536  }
  0x3e   : > { %3471 = vsyncadd (%p3558_p6), %s178_s28, 4294965760  ;;  %v312_v0 = vld [vmem:[%s3635_s8 + $0x40] sm:$0xff]  ;;  %v313_v1 = vld [vmem:[%s3635_s8 + $0x48] sm:$0xff]  ;;  %vm246_vm0 = vcmask 211968   ;;  %s3494_s19 = smov 127   ;;  %vm250_vm1 = vcmask 205824  }
  0x3f   : > { %v402_v2 = vld [vmem:[%s3635_s8 + $0x41] sm:$0xff]  ;;  %v318_v3 = vmul.f32 0.0010283801, %v312_v0  ;;  %v319_v4 = vmul.f32 0.0010283801, %v313_v1  ;;  %v403_v5 = vld [vmem:[%s3635_s8 + $0x49] sm:$0xff] }
  0x40   : > { %v492_v6 = vld [vmem:[%s3635_s8 + $0x42] sm:$0xff]  ;;  %v408_v7 = vmul.f32 0.007598758, %v402_v2  ;;  %v3653_v8 = vmul.f32 0.007598758, %v403_v5  ;;  %v493_v9 = vld [vmem:[%s3635_s8 + $0x4a] sm:$0xff] }
  0x41   : > { %v582_v10 = vld [vmem:[%s3635_s8 + $0x43] sm:$0xff]  ;;  %v498_v11 = vmul.f32 0.036000773, %v492_v6  ;;  %v499_v12 = vmul.f32 0.036000773, %v493_v9  ;;  %v583_v13 = vld [vmem:[%s3635_s8 + $0x4b] sm:$0xff] }
  0x42   : > { %v672_v14 = vld [vmem:[%s3635_s8 + $0x44] sm:$0xff]  ;;  %v414_v15 = vadd.f32 %v408_v7, %v318_v3  ;;  %v415_v16 = vadd.f32 %v3653_v8, %v319_v4  ;;  %v588_v17 = vmul.f32 0.10936069, %v582_v10  ;;  %v673_v18 = vld [vmem:[%s3635_s8 + $0x4c] sm:$0xff]  ;;  %v589_v20 = vmul.f32 0.10936069, %v583_v13 }
  0x43   : > { %v762_v19 = vld [vmem:[%s3635_s8 + $0x45] sm:$0xff]  ;;  %v678_v21 = vmul.f32 0.21300554, %v672_v14  ;;  %v763_v22 = vld [vmem:[%s3635_s8 + $0x4d] sm:$0xff]  ;;  %v679_v26 = vmul.f32 0.21300554, %v673_v18 }
  0x44   : > { %v852_v23 = vld [vmem:[%s3635_s8 + $0x46] sm:$0xff]  ;;  %v504_v24 = vadd.f32 %v498_v11, %v414_v15  ;;  %v505_v25 = vadd.f32 %v499_v12, %v415_v16  ;;  %v768_v27 = vmul.f32 0.26601171, %v762_v19  ;;  %v769_v30 = vmul.f32 0.26601171, %v763_v22  ;;  %s3495_s26 = smov 126  }
  0x45   : > { %v942_v28 = vld [vmem:[%s3635_s8 + $0x47] sm:$0xff]  ;;  %v858_v31 = vmul.f32 0.21300554, %v852_v23  ;;  %v1035_v34 = vmul.f32 0.036000773, %v313_v1  ;;  %s3496_s27 = smov 125  }
  0x46   : > { %v3666_v29 = vld [vmem:[%s3635_s8 + $0x20] sm:$0xff]  ;;  %v948_v32 = vmul.f32 0.10936069, %v942_v28  ;;  %v594_v33 = vadd.f32 %v588_v17, %v504_v24  ;;  %v3669_v35 = vld [vmem:[%s3635_s8 + $0x28] sm:$0xff]  ;;  %v595_v38 = vadd.f32 %v589_v20, %v505_v25  ;;  %v1170_v60 = vmul.f32 0.0010283801, %v493_v9 }
  0x47   : > { %v316_v36 = vmul.f32 0.0010283801, %v3666_v29  ;;  %v400_v37 = vld [vmem:[%s3635_s8 + $0x21] sm:$0xff]  ;;  %v317_v39 = vmul.f32 0.0010283801, %v3669_v35  ;;  %v401_v40 = vld [vmem:[%s3635_s8 + $0x29] sm:$0xff] }
  0x48   : > { %v406_v41 = vmul.f32 0.007598758, %v400_v37  ;;  %v490_v42 = vld [vmem:[%s3635_s8 + $0x22] sm:$0xff]  ;;  %v684_v43 = vadd.f32 %v678_v21, %v594_v33  ;;  %v3676_v44 = vmul.f32 0.007598758, %v401_v40  ;;  %v3679_v45 = vld [vmem:[%s3635_s8 + $0x2a] sm:$0xff]  ;;  %v685_v59 = vadd.f32 %v679_v26, %v595_v38 }
  0x49   : > { %v496_v46 = vmul.f32 0.036000773, %v490_v42  ;;  %v580_v47 = vld [vmem:[%s3635_s8 + $0x23] sm:$0xff]  ;;  %v497_v49 = vmul.f32 0.036000773, %v3679_v45  ;;  %v581_v50 = vld [vmem:[%s3635_s8 + $0x2b] sm:$0xff] }
  0x4a   : > { %v412_v48 = vadd.f32 %v406_v41, %v316_v36  ;;  %v586_v51 = vmul.f32 0.10936069, %v580_v47  ;;  %v670_v52 = vld [vmem:[%s3635_s8 + $0x24] sm:$0xff]  ;;  %v774_v53 = vadd.f32 %v768_v27, %v684_v43  ;;  %v413_v54 = vadd.f32 %v3676_v44, %v317_v39  ;;  %v671_v56 = vld [vmem:[%s3635_s8 + $0x2c] sm:$0xff]  ;;  %s3497_s7 = smov 124   ;;  %s3498_s14 = smov 123  }
  0x4b   : > { %v587_v55 = vmul.f32 0.10936069, %v581_v50  ;;  %v760_v57 = vld [vmem:[%s3635_s8 + $0x25] sm:$0xff]  ;;  %v761_v58 = vld [vmem:[%s3635_s8 + $0x2d] sm:$0xff]  ;;  %v676_v62 = vmul.f32 0.21300554, %v670_v52  ;;  %v775_v26 = vadd.f32 %v769_v30, %v685_v59 }
  0x4c   : > { %v502_v61 = vadd.f32 %v496_v46, %v412_v48  ;;  %v864_v63 = vadd.f32 %v858_v31, %v774_v53  ;;  %v503_v0 = vadd.f32 %v497_v49, %v413_v54  ;;  %v677_v1 = vmul.f32 0.21300554, %v671_v56  ;;  %v850_v3 = vld [vmem:[%s3635_s8 + $0x26] sm:$0xff]  ;;  %v853_v52 = vld [vmem:[%s3635_s8 + $0x4e] sm:$0xff]  ;;  %s3499_s16 = smov 122   ;;  %s3500_s17 = smov 121  }
  0x4d   : > { %v766_v2 = vmul.f32 0.26601171, %v760_v57  ;;  %v940_v4 = vld [vmem:[%s3635_s8 + $0x27] sm:$0xff]  ;;  %v767_v6 = vmul.f32 0.26601171, %v761_v58  ;;  %s3501_s29 = smov 120  }
  0x4e   : > { %v592_v5 = vadd.f32 %v586_v51, %v502_v61  ;;  %v856_v7 = vmul.f32 0.21300554, %v850_v3  ;;  %v1033_v10 = vmul.f32 0.036000773, %v3669_v35  ;;  %v954_v9 = vadd.f32 %v948_v32, %v864_v63  ;;  %v3693_v13 = vld [vmem:[%s3635_s8] sm:$0xff]  ;;  %v3696_v14 = vld [vmem:[%s3635_s8 + $0x8] sm:$0xff] }
  0x4f   : > { %v593_v11 = vadd.f32 %v587_v55, %v503_v0  ;;  %v946_v12 = vmul.f32 0.10936069, %v940_v4  ;;  %v398_v15 = vld [vmem:[%s3635_s8 + $0x1] sm:$0xff]  ;;  %v314_v17 = vmul.f32 0.0010283801, %v3693_v13  ;;  %v399_v19 = vld [vmem:[%s3635_s8 + $0x9] sm:$0xff] }
  0x50   : > { %v682_v16 = vadd.f32 %v676_v62, %v592_v5  ;;  %v315_v18 = vmul.f32 0.0010283801, %v3696_v14  ;;  %v488_v20 = vld [vmem:[%s3635_s8 + $0x2] sm:$0xff]  ;;  %v1041_v21 = vadd.f32 %v1035_v34, %v954_v9  ;;  %v404_v22 = vmul.f32 0.007598758, %v398_v15  ;;  %v489_v24 = vld [vmem:[%s3635_s8 + $0xa] sm:$0xff] }
  0x51   : > { %v3703_v23 = vmul.f32 0.007598758, %v399_v19  ;;  %v578_v25 = vld [vmem:[%s3635_s8 + $0x3] sm:$0xff]  ;;  %v494_v28 = vmul.f32 0.036000773, %v488_v20  ;;  %v579_v32 = vld [vmem:[%s3635_s8 + $0xb] sm:$0xff]  ;;  %v683_v37 = vadd.f32 %v677_v1, %v593_v11 }
  0x52   : > { %v772_v27 = vadd.f32 %v766_v2, %v682_v16  ;;  %v495_v31 = vmul.f32 0.036000773, %v489_v24  ;;  %v668_v33 = vld [vmem:[%s3635_s8 + $0x4] sm:$0xff]  ;;  %v1113_v36 = vadd.f32 %v1041_v21, %v3653_v8  ;;  %v410_v34 = vadd.f32 %v404_v22, %v314_v17  ;;  %v669_v39 = vld [vmem:[%s3635_s8 + $0xc] sm:$0xff]  ;;  %s3502_s3 = smov 119   ;;  %s3503_s4 = smov 118  }
  0x53   : > { %v411_v38 = vadd.f32 %v3703_v23, %v315_v18  ;;  %v758_v40 = vld [vmem:[%s3635_s8 + $0x5] sm:$0xff]  ;;  %v759_v41 = vld [vmem:[%s3635_s8 + $0xd] sm:$0xff]  ;;  %v584_v43 = vmul.f32 0.10936069, %v578_v25  ;;  %v585_v30 = vmul.f32 0.10936069, %v579_v32 }
  0x54   : > { %v862_v42 = vadd.f32 %v856_v7, %v772_v27  ;;  %v674_v46 = vmul.f32 0.21300554, %v668_v33  ;;  %v1176_v47 = vadd.f32 %v1170_v60, %v1113_v36  ;;  %v500_v48 = vadd.f32 %v494_v28, %v410_v34  ;;  %v848_v51 = vld [vmem:[%s3635_s8 + $0x6] sm:$0xff]  ;;  %v943_v61 = vld [vmem:[%s3635_s8 + $0x4f] sm:$0xff]  ;;  %s3214_s30 = sshll.u32 %s3631_s22, 3  ;;  %s3216_s23 = sshll.u32 %s3540_s13, 3 }
  0x55   : > { %v501_v49 = vadd.f32 %v495_v31, %v411_v38  ;;  %v675_v50 = vmul.f32 0.21300554, %v669_v39  ;;  %v938_v8 = vld [vmem:[%s3635_s8 + $0x7] sm:$0xff]  ;;  %v1168_v54 = vmul.f32 0.0010283801, %v3679_v45  ;;  %v773_v45 = vadd.f32 %v767_v6, %v683_v37  ;;  %v3724_v5 = vld [vmem:[%s3635_s8 + $0x50] sm:$0xff]  ;;  %s3108_s6 = scalar_lea.hbm %s6235_s2, %s3216_s23 }
  0x56   : > { %v952_v53 = vadd.f32 %v946_v12, %v862_v42  ;;  %v764_v55 = vmul.f32 0.26601171, %v758_v40  ;;  %v765_v56 = vmul.f32 0.26601171, %v759_v41  ;;  %1242 = vst.msk [vmem:[#allocation5 + $0x20] sm:$0xff] %vm246_vm0, %v1176_v47  ;;  %v590_v57 = vadd.f32 %v584_v43, %v500_v48  ;;  %v1105_v7 = vld [vmem:[%s3635_s8 + $0x51] sm:$0xff] }
  0x57   : > { %v591_v58 = vadd.f32 %v585_v30, %v501_v49  ;;  %v854_v59 = vmul.f32 0.21300554, %v848_v51  ;;  %v944_v60 = vmul.f32 0.10936069, %v938_v8  ;;  %v1031_v63 = vmul.f32 0.036000773, %v3696_v14 }
  0x58   : > { %v1039_v62 = vadd.f32 %v1033_v10, %v952_v53  ;;  %v859_v0 = vmul.f32 0.21300554, %v853_v52  ;;  %v949_v1 = vmul.f32 0.10936069, %v943_v61  ;;  %v680_v2 = vadd.f32 %v674_v46, %v590_v57  ;;  %v1165_v9 = vld [vmem:[%s3635_s8 + $0x52] sm:$0xff]  ;;  %v3752_v53 = vld [vmem:[%s3642_s25 + $0x20] sm:$0xff] }
  0x59   : > { %v681_v3 = vadd.f32 %v675_v50, %v591_v58  ;;  %v3721_v4 = vmul.f32 0.0010283801, %v489_v24  ;;  %v1036_v12 = vmul.f32 0.036000773, %v3724_v5  ;;  %v1108_v15 = vmul.f32 0.007598758, %v1105_v7 }
  0x5a   : > { %v1111_v11 = vadd.f32 %v1039_v62, %v3676_v44  ;;  %v865_v10 = vadd.f32 %v859_v0, %v775_v26  ;;  %v851_v16 = vld [vmem:[%s3635_s8 + $0x2e] sm:$0xff]  ;;  %v770_v17 = vadd.f32 %v764_v55, %v680_v2  ;;  %v1171_v19 = vmul.f32 0.0010283801, %v1165_v9  ;;  %v418_v58 = vld [vmem:[%s3642_s25 + $0x21] sm:$0xff] }
  0x5b   : > { %v941_v6 = vld [vmem:[%s3635_s8 + $0x2f] sm:$0xff]  ;;  %v771_v18 = vadd.f32 %v765_v56, %v681_v3  ;;  %v857_v20 = vmul.f32 0.21300554, %v851_v16  ;;  %v238_v42 = vmul.f32 %v3666_v29, %v3666_v29  ;;  %v334_v56 = vmul.f32 0.0010283801, %v3752_v53  ;;  %v598_v9 = vld [vmem:[%s3642_s25 + $0x23] sm:$0xff] }
  0x5c   : > { %v3733_v21 = vld [vmem:[%s3635_s8 + $0x30] sm:$0xff]  ;;  %v1174_v24 = vadd.f32 %v1168_v54, %v1111_v11  ;;  %v955_v25 = vadd.f32 %v949_v1, %v865_v10  ;;  %v947_v44 = vmul.f32 0.10936069, %v941_v6  ;;  %v860_v31 = vadd.f32 %v854_v59, %v770_v17  ;;  %v3755_v54 = vld [vmem:[%s3642_s25 + $0x28] sm:$0xff] }
  0x5d   : > { %v1104_v22 = vld [vmem:[%s3635_s8 + $0x31] sm:$0xff]  ;;  %v1034_v26 = vmul.f32 0.036000773, %v3733_v21  ;;  %v863_v32 = vadd.f32 %v857_v20, %v773_v45  ;;  %v3761_v57 = vmul.f32 0.0010283801, %v3755_v54  ;;  %v419_v59 = vld [vmem:[%s3642_s25 + $0x29] sm:$0xff] }
  0x5e   : > { %v1164_v27 = vld [vmem:[%s3635_s8 + $0x32] sm:$0xff]  ;;  %v1107_v33 = vmul.f32 0.007598758, %v1104_v22  ;;  %1240 = vst.msk [vmem:[#allocation5 + $0x10] sm:$0xff] %vm246_vm0, %v1174_v24  ;;  %v1042_v39 = vadd.f32 %v1036_v12, %v955_v25  ;;  %v950_v30 = vadd.f32 %v944_v60, %v860_v31  ;;  %v424_v62 = vmul.f32 0.007598758, %v418_v58 }
  0x5f   : > { %v849_v28 = vld [vmem:[%s3635_s8 + $0xe] sm:$0xff]  ;;  %v1169_v36 = vmul.f32 0.0010283801, %v1164_v27  ;;  %v953_v46 = vadd.f32 %v947_v44, %v863_v32  ;;  %v3765_v0 = vmul.f32 0.007598758, %v419_v59  ;;  %v508_v1 = vld [vmem:[%s3642_s25 + $0x22] sm:$0xff] }
  0x60   : > { %v939_v37 = vld [vmem:[%s3635_s8 + $0xf] sm:$0xff]  ;;  %v855_v40 = vmul.f32 0.21300554, %v849_v28  ;;  %v1114_v50 = vadd.f32 %v1108_v15, %v1042_v39  ;;  %v1037_v29 = vadd.f32 %v1031_v63, %v950_v30  ;;  %v514_v3 = vmul.f32 0.036000773, %v508_v1  ;;  %v688_v16 = vld [vmem:[%s3642_s25 + $0x24] sm:$0xff] }
  0x61   : > { %v3741_v34 = vld [vmem:[%s3635_s8 + $0x10] sm:$0xff]  ;;  %v945_v41 = vmul.f32 0.10936069, %v939_v37  ;;  %v1040_v55 = vadd.f32 %v1034_v26, %v953_v46  ;;  %v430_v12 = vadd.f32 %v424_v62, %v334_v56  ;;  %v604_v15 = vmul.f32 0.10936069, %v598_v9  ;;  %v778_v17 = vld [vmem:[%s3642_s25 + $0x25] sm:$0xff] }
  0x62   : > { %v1272_v38 = vld [vmem:[#allocation5 + $0x20] sm:$0xff]  ;;  %v1032_v47 = vmul.f32 0.036000773, %v3741_v34  ;;  %v861_v51 = vadd.f32 %v855_v40, %v771_v18  ;;  %v1177_v60 = vadd.f32 %v1171_v19, %v1114_v50  ;;  %v1109_v45 = vadd.f32 %v1037_v29, %v3703_v23  ;;  %v868_v24 = vld [vmem:[%s3642_s25 + $0x26] sm:$0xff]  ;;  %252 = vst.msk [vmem:[#allocation2 + $0x20] sm:$0xff] %vm246_vm0, %v238_v42 }
  0x63   : > { %v3746_v43 = vmul.f32 0.007598758, %v1272_v38  ;;  %v1103_v48 = vld [vmem:[%s3635_s8 + $0x11] sm:$0xff]  ;;  %v1112_v2 = vadd.f32 %v1107_v33, %v1040_v55  ;;  %v694_v22 = vmul.f32 0.21300554, %v688_v16  ;;  %v520_v26 = vadd.f32 %v514_v3, %v430_v12  ;;  %v958_v27 = vld [vmem:[%s3642_s25 + $0x27] sm:$0xff] }
  0x64   : > { %v1163_v49 = vld [vmem:[%s3635_s8 + $0x12] sm:$0xff]  ;;  %v1106_v8 = vmul.f32 0.007598758, %v1103_v48  ;;  %v951_v61 = vadd.f32 %v945_v41, %v861_v51  ;;  %v509_v63 = vld [vmem:[%s3642_s25 + $0x2a] sm:$0xff]  ;;  %1243 = vst.msk [vmem:[#allocation5 + $0x28] sm:$0xff] %vm246_vm0, %v1177_v60  ;;  %v1172_v23 = vadd.f32 %v3721_v4, %v1109_v45 }
  0x65   : > { %6345 = vst [vmem:[#allocation19_spill] sm:$0xff] %v3746_v43  ;;  %v1167_v52 = vmul.f32 0.0010283801, %v1163_v49  ;;  %1378 = vrot.lane.b32.xlu2 %v3746_v43, %s3494_s19  ;;  %v3770_v7 = vmul.f32 0.036000773, %v509_v63  ;;  %v599_v11 = vld [vmem:[%s3642_s25 + $0x2b] sm:$0xff]  ;;  %v1175_v19 = vadd.f32 %v1169_v36, %v1112_v2  ;;  %v610_v37 = vadd.f32 %v604_v15, %v520_v26 }
  0x66   : > { %v1038_v10 = vadd.f32 %v1032_v47, %v951_v61  ;;  %v689_v6 = vld [vmem:[%s3642_s25 + $0x2c] sm:$0xff]  ;;  %v1270_v18 = vld [vmem:[#allocation5 + $0x10] sm:$0xff]  ;;  %v3779_v20 = vmul.f32 0.10936069, %v599_v11  ;;  %1238 = vst.msk [vmem:[#allocation5] sm:$0xff] %vm246_vm0, %v1172_v23  ;;  %v431_v15 = vadd.f32 %v3765_v0, %v3761_v57 }
  0x67   : > { %v3782_v25 = vmul.f32 0.007598758, %v1270_v18  ;;  %v3786_v28 = vld [vmem:[%s3642_s25 + $0x8] sm:$0xff]  ;;  %v3791_v4 = vmul.f32 0.21300554, %v689_v6  ;;  %1241 = vst.msk [vmem:[#allocation5 + $0x18] sm:$0xff] %vm246_vm0, %v1175_v19  ;;  %v700_v47 = vadd.f32 %v694_v22, %v610_v37 }
  0x68   : > { %v1110_v44 = vadd.f32 %v1106_v8, %v1038_v10  ;;  %v417_v31 = vld [vmem:[%s3642_s25 + $0x9] sm:$0xff]  ;;  %v784_v32 = vmul.f32 0.26601171, %v778_v17  ;;  %v874_v38 = vmul.f32 0.21300554, %v868_v24  ;;  %v1115_v61 = vld [vmem:[%s3642_s25 + $0x11] sm:$0xff] }
  0x69   : > { %6346 = vst [vmem:[#allocation20_spill] sm:$0xff] %v3782_v25  ;;  %v3794_v33 = vld [vmem:[%s3642_s25 + $0xa] sm:$0xff]  ;;  %1374 = vrot.lane.b32.xlu1 %v3782_v25, %s3494_s19  ;;  %v964_v42 = vmul.f32 0.10936069, %v958_v27  ;;  %v1048_v30 = vmul.f32 0.036000773, %v3755_v54 }
  0x6a   : > { %v1173_v36 = vadd.f32 %v1167_v52, %v1110_v44  ;;  %v597_v39 = vld [vmem:[%s3642_s25 + $0xb] sm:$0xff]  ;;  %v3803_v46 = vmul.f32 0.0010283801, %v509_v63  ;;  %v333_v48 = vmul.f32 0.0010283801, %v3786_v28  ;;  %v790_v56 = vadd.f32 %v784_v32, %v700_v47  ;;  %v3832_v6 = vld [vmem:[%s3642_s25] sm:$0xff] }
  0x6b   : > { %v687_v40 = vld [vmem:[%s3642_s25 + $0xc] sm:$0xff]  ;;  %v3807_v49 = vmul.f32 0.007598758, %v417_v31  ;;  %v1273_v51 = vld [vmem:[#allocation5 + $0x28] sm:$0xff]  ;;  %v513_v8 = vmul.f32 0.036000773, %v3794_v33  ;;  %v239_v31 = vmul.f32 %v3669_v35, %v3669_v35 }
  0x6c   : > { %v777_v41 = vld [vmem:[%s3642_s25 + $0xd] sm:$0xff]  ;;  %1239 = vst.msk [vmem:[#allocation5 + $0x8] sm:$0xff] %vm246_vm0, %v1173_v36  ;;  %v603_v52 = vmul.f32 0.10936069, %v597_v39  ;;  %v3812_v55 = vmul.f32 0.007598758, %v1273_v51  ;;  %v880_v2 = vadd.f32 %v874_v38, %v790_v56 }
  0x6d   : > { %v867_v50 = vld [vmem:[%s3642_s25 + $0xe] sm:$0xff]  ;;  %v429_v58 = vadd.f32 %v3807_v49, %v333_v48  ;;  %v693_v59 = vmul.f32 0.21300554, %v687_v40  ;;  %v783_v62 = vmul.f32 0.26601171, %v777_v41  ;;  %v416_v22 = vld [vmem:[%s3642_s25 + $0x1] sm:$0xff]  ;;  %v521_v41 = vadd.f32 %v3770_v7, %v431_v15 }
  0x6e   : > { %v957_v29 = vld [vmem:[%s3642_s25 + $0xf] sm:$0xff]  ;;  %6347 = vst [vmem:[#allocation21_spill] sm:$0xff] %v3812_v55  ;;  %v873_v1 = vmul.f32 0.21300554, %v867_v50  ;;  %1380 = vrot.lane.b32.xlu2 %v3812_v55, %s3494_s19  ;;  %v3824_v11 = vmul.f32 0.007598758, %v1115_v61  ;;  %v970_v18 = vadd.f32 %v964_v42, %v880_v2  ;;  %v240_v15 = vmul.f32 %v3733_v21, %v3733_v21 }
  0x6f   : > { %v3816_v60 = vld [vmem:[%s3642_s25 + $0x10] sm:$0xff]  ;;  %v963_v63 = vmul.f32 0.10936069, %v957_v29  ;;  %v519_v3 = vadd.f32 %v513_v8, %v429_v58  ;;  %v1271_v12 = vld [vmem:[#allocation5 + $0x18] sm:$0xff]  ;;  %v332_v19 = vmul.f32 0.0010283801, %v3832_v6  ;;  %v235_v21 = vmul.f32 %v3696_v14, %v3696_v14 }
  0x70   : > { %v1268_v45 = vld [vmem:[#allocation5] sm:$0xff]  ;;  %v3822_v9 = vmul.f32 0.036000773, %v3816_v60  ;;  %v3834_v17 = vmul.f32 0.007598758, %v1271_v12  ;;  %v506_v24 = vld [vmem:[%s3642_s25 + $0x2] sm:$0xff]  ;;  %v1054_v36 = vadd.f32 %v1048_v30, %v970_v18  ;;  %v236_v14 = vmul.f32 %v3741_v34, %v3741_v34 }
  0x71   : > { %v3826_v10 = vmul.f32 0.007598758, %v1268_v45  ;;  %v1178_v16 = vld [vmem:[%s3642_s25 + $0x12] sm:$0xff]  ;;  %v609_v23 = vadd.f32 %v603_v52, %v519_v3  ;;  %v422_v26 = vmul.f32 0.007598758, %v416_v22  ;;  %v596_v27 = vld [vmem:[%s3642_s25 + $0x3] sm:$0xff] }
  0x72   : > { %6349 = vst [vmem:[#allocation23_spill] sm:$0xff] %v3834_v17  ;;  %v512_v57 = vmul.f32 0.036000773, %v506_v24  ;;  %1376 = vrot.lane.b32.xlu1 %v3834_v17, %s3494_s19  ;;  %v3848_v38 = vmul.f32 0.0010283801, %v1178_v16  ;;  %v686_v39 = vld [vmem:[%s3642_s25 + $0x4] sm:$0xff]  ;;  %v1123_v51 = vadd.f32 %v1054_v36, %v3765_v0 }
  0x73   : > { %6348 = vst [vmem:[#allocation22_spill] sm:$0xff] %v3826_v10  ;;  %1370 = vrot.lane.b32.xlu0 %v3826_v10, %s3494_s19  ;;  %v1269_v44 = vld [vmem:[#allocation5 + $0x8] sm:$0xff]  ;;  %v699_v37 = vadd.f32 %v693_v59, %v609_v23  ;;  %v776_v40 = vld [vmem:[%s3642_s25 + $0x5] sm:$0xff]  ;;  %v428_v42 = vadd.f32 %v422_v26, %v332_v19  ;;  %v602_v47 = vmul.f32 0.10936069, %v596_v27  ;;  %v781_v24 = vld [vmem:[%s3642_s25 + $0x4d] sm:$0xff] }
  0x74   : > { %v3846_v32 = vmul.f32 0.007598758, %v1269_v44  ;;  %v692_v48 = vmul.f32 0.21300554, %v686_v39  ;;  %v866_v35 = vld [vmem:[%s3642_s25 + $0x6] sm:$0xff]  ;;  %v1189_v45 = vadd.f32 %v3803_v46, %v1123_v51  ;;  %253 = vst.msk [vmem:[#allocation2 + $0x28] sm:$0xff] %vm246_vm0, %v239_v31 }
  0x75   : > { %v956_v50 = vld [vmem:[%s3642_s25 + $0x7] sm:$0xff]  ;;  %v789_v8 = vadd.f32 %v783_v62, %v699_v37  ;;  %v782_v30 = vmul.f32 0.26601171, %v776_v40  ;;  %v872_v52 = vmul.f32 0.21300554, %v866_v35  ;;  %v518_v58 = vadd.f32 %v512_v57, %v428_v42  ;;  %v961_v26 = vld [vmem:[%s3642_s25 + $0x4f] sm:$0xff] }
  0x76   : > { %6350 = vst [vmem:[#allocation24_spill] sm:$0xff] %v3846_v32  ;;  %v3857_v29 = vld [vmem:[%s3642_s25 + $0x48] sm:$0xff]  ;;  %v962_v59 = vmul.f32 0.10936069, %v956_v50  ;;  %v3861_v7 = vmul.f32 0.036000773, %v3786_v28 }
  0x77   : > { %v421_v56 = vld [vmem:[%s3642_s25 + $0x49] sm:$0xff]  ;;  %v337_v61 = vmul.f32 0.0010283801, %v3857_v29  ;;  %v879_v2 = vadd.f32 %v873_v1, %v789_v8  ;;  %v608_v16 = vadd.f32 %v602_v47, %v518_v58  ;;  %v3874_v18 = vmul.f32 0.0010283801, %v3794_v33  ;;  %1246 = vst.msk [vmem:[#allocation6 + $0x10] sm:$0xff] %vm246_vm0, %v1189_v45 }
  0x78   : > { %v3865_v3 = vmul.f32 0.007598758, %v421_v56  ;;  %v511_v0 = vld [vmem:[%s3642_s25 + $0x4a] sm:$0xff]  ;;  %v787_v57 = vmul.f32 0.26601171, %v781_v24  ;;  %254 = vst.msk [vmem:[#allocation2 + $0x30] sm:$0xff] %vm246_vm0, %v240_v15 }
  0x79   : > { %v601_v62 = vld [vmem:[%s3642_s25 + $0x4b] sm:$0xff]  ;;  %v517_v23 = vmul.f32 0.036000773, %v511_v0  ;;  %v969_v1 = vadd.f32 %v963_v63, %v879_v2  ;;  %v698_v33 = vadd.f32 %v692_v48, %v608_v16  ;;  %v3886_v31 = vmul.f32 0.036000773, %v3857_v29  ;;  %v3907_v56 = vld [vmem:[%s3642_s25 + $0x40] sm:$0xff] }
  0x7a   : > { %v691_v12 = vld [vmem:[%s3642_s25 + $0x4c] sm:$0xff]  ;;  %v607_v46 = vmul.f32 0.10936069, %v601_v62  ;;  %v433_v19 = vadd.f32 %v3865_v3, %v337_v61  ;;  %v967_v37 = vmul.f32 0.10936069, %v961_v26  ;;  %v420_v34 = vld [vmem:[%s3642_s25 + $0x41] sm:$0xff] }
  0x7b   : > { %v697_v22 = vmul.f32 0.21300554, %v691_v12  ;;  %v871_v44 = vld [vmem:[%s3642_s25 + $0x4e] sm:$0xff]  ;;  %1372 = vrot.lane.b32.xlu0 %v3846_v32, %s3494_s19  ;;  %v1053_v63 = vadd.f32 %v3822_v9, %v969_v1  ;;  %v788_v42 = vadd.f32 %v782_v30, %v698_v33  ;;  %v3900_v35 = vmul.f32 0.0010283801, %v511_v0  ;;  %v510_v30 = vld [vmem:[%s3642_s25 + $0x42] sm:$0xff] }
  0x7c   : > { %v877_v27 = vmul.f32 0.21300554, %v871_v44  ;;  %v523_v36 = vadd.f32 %v517_v23, %v433_v19  ;;  %v3890_v39 = vld [vmem:[%s3642_s25 + $0x50] sm:$0xff]  ;;  %v611_v9 = vadd.f32 %v3779_v20, %v521_v41  ;;  %248 = vst.msk [vmem:[#allocation2 + $0x8] sm:$0xff] %vm246_vm0, %v235_v21  ;;  %v336_v61 = vmul.f32 0.0010283801, %v3907_v56 }
  0x7d   : > { %v1117_v40 = vld [vmem:[%s3642_s25 + $0x51] sm:$0xff]  ;;  %v3897_v47 = vmul.f32 0.036000773, %v3890_v39  ;;  %v1122_v50 = vadd.f32 %v3824_v11, %v1053_v63  ;;  %v878_v58 = vadd.f32 %v872_v52, %v788_v42  ;;  %v426_v45 = vmul.f32 0.007598758, %v420_v34  ;;  %v600_v0 = vld [vmem:[%s3642_s25 + $0x43] sm:$0xff] }
  0x7e   : > { %v1180_v48 = vld [vmem:[%s3642_s25 + $0x52] sm:$0xff]  ;;  %v613_v51 = vadd.f32 %v607_v46, %v523_v36  ;;  %v3904_v8 = vmul.f32 0.007598758, %v1117_v40  ;;  %v516_v2 = vmul.f32 0.036000773, %v510_v30  ;;  %v690_v62 = vld [vmem:[%s3642_s25 + $0x44] sm:$0xff]  ;;  %v701_v19 = vadd.f32 %v3791_v4, %v611_v9 }
  0x7f   : > { %v1188_v20 = vadd.f32 %v3848_v38, %v1122_v50  ;;  %v3914_v11 = vmul.f32 0.0010283801, %v1180_v48  ;;  %v780_v12 = vld [vmem:[%s3642_s25 + $0x45] sm:$0xff]  ;;  %249 = vst.msk [vmem:[#allocation2 + $0x10] sm:$0xff] %vm246_vm0, %v236_v14  ;;  %v1288_v15 = vld [vmem:[#allocation6 + $0x10] sm:$0xff]  ;;  %v968_v16 = vadd.f32 %v962_v59, %v878_v58  ;;  %v432_v52 = vadd.f32 %v426_v45, %v336_v61 }
  0x80   : > { %v703_v41 = vadd.f32 %v697_v22, %v613_v51  ;;  %v606_v23 = vmul.f32 0.10936069, %v600_v0  ;;  %v696_v46 = vmul.f32 0.21300554, %v690_v62  ;;  %v870_v1 = vld [vmem:[%s3642_s25 + $0x46] sm:$0xff]  ;;  %v869_v36 = vld [vmem:[%s3642_s25 + $0x2e] sm:$0xff] }
  0x81   : > { %v3922_v38 = vmul.f32 0.007598758, %v1288_v15  ;;  %1245 = vst.msk [vmem:[#allocation6 + $0x8] sm:$0xff] %vm246_vm0, %v1188_v20  ;;  %v786_v24 = vmul.f32 0.26601171, %v780_v12  ;;  %v960_v44 = vld [vmem:[%s3642_s25 + $0x47] sm:$0xff]  ;;  %v1052_v26 = vadd.f32 %v3861_v7, %v968_v16  ;;  %v522_v21 = vadd.f32 %v516_v2, %v432_v52 }
  0x82   : > { %v793_v22 = vadd.f32 %v787_v57, %v703_v41  ;;  %v876_v59 = vmul.f32 0.21300554, %v870_v1  ;;  %v966_v33 = vmul.f32 0.10936069, %v960_v44  ;;  %v779_v63 = vld [vmem:[%s3642_s25 + $0x2d] sm:$0xff]  ;;  %v234_v57 = vmul.f32 %v3693_v13, %v3693_v13  ;;  %v347_v20 = vld [vmem:[#allocation2 + $0x28] sm:$0xff] }
  0x83   : > { %6351 = vst [vmem:[#allocation25_spill] sm:$0xff] %v3922_v38  ;;  %1410 = vrot.lane.b32.xlu2 %v3922_v38, %s3494_s19  ;;  %v785_v40 = vmul.f32 0.26601171, %v779_v63  ;;  %v875_v14 = vmul.f32 0.21300554, %v869_v36  ;;  %v959_v42 = vld [vmem:[%s3642_s25 + $0x2f] sm:$0xff]  ;;  %v1121_v7 = vadd.f32 %v1052_v26, %v3807_v49  ;;  %v612_v9 = vadd.f32 %v606_v23, %v522_v21 }
  0x84   : > { %v883_v4 = vadd.f32 %v877_v27, %v793_v22  ;;  %v3933_v48 = vld [vmem:[%s3642_s25 + $0x30] sm:$0xff]  ;;  %v965_v50 = vmul.f32 0.10936069, %v959_v42  ;;  %v353_v12 = vmul.f32 0.0010283801, %v347_v20  ;;  %v437_v15 = vld [vmem:[#allocation2 + $0x29] sm:$0xff] }
  0x85   : > { %v1049_v51 = vmul.f32 0.036000773, %v3933_v48  ;;  %v1116_v34 = vld [vmem:[%s3642_s25 + $0x31] sm:$0xff]  ;;  %v791_v61 = vadd.f32 %v785_v40, %v701_v19  ;;  %v1187_v41 = vadd.f32 %v3874_v18, %v1121_v7  ;;  %v702_v0 = vadd.f32 %v696_v46, %v612_v9  ;;  %v617_v36 = vld [vmem:[#allocation2 + $0x2b] sm:$0xff]  ;;  %247 = vst.msk [vmem:[#allocation2] sm:$0xff] %vm246_vm0, %v234_v57 }
  0x86   : > { %v1179_v30 = vld [vmem:[%s3642_s25 + $0x32] sm:$0xff]  ;;  %v973_v58 = vadd.f32 %v967_v37, %v883_v4  ;;  %v1119_v45 = vmul.f32 0.007598758, %v1116_v34  ;;  %v3943_v23 = vmul.f32 0.007598758, %v437_v15  ;;  %v527_v37 = vld [vmem:[#allocation2 + $0x2a] sm:$0xff]  ;;  %v244_v9 = vmul.f32 %v3724_v5, %v3724_v5 }
  0x87   : > { %v1184_v27 = vmul.f32 0.0010283801, %v1179_v30  ;;  %v346_v2 = vld [vmem:[#allocation2 + $0x20] sm:$0xff]  ;;  %v881_v16 = vadd.f32 %v875_v14, %v791_v61  ;;  %1244 = vst.msk [vmem:[#allocation6] sm:$0xff] %vm246_vm0, %v1187_v41  ;;  %v792_v22 = vadd.f32 %v786_v24, %v702_v0  ;;  %v3946_v26 = vmul.f32 0.036000773, %v527_v37 }
  0x88   : > { %v352_v62 = vmul.f32 0.0010283801, %v346_v2  ;;  %v436_v13 = vld [vmem:[#allocation2 + $0x21] sm:$0xff]  ;;  %v1057_v49 = vadd.f32 %v3897_v47, %v973_v58  ;;  %v1287_v19 = vld [vmem:[#allocation6 + $0x8] sm:$0xff]  ;;  %v3952_v42 = vmul.f32 0.10936069, %v617_v36 }
  0x89   : > { %v442_v52 = vmul.f32 0.007598758, %v436_v13  ;;  %v526_v1 = vld [vmem:[#allocation2 + $0x22] sm:$0xff]  ;;  %v3948_v18 = vmul.f32 0.007598758, %v1287_v19  ;;  %v971_v21 = vadd.f32 %v965_v50, %v881_v16  ;;  %v882_v40 = vadd.f32 %v876_v59, %v792_v22  ;;  %v707_v24 = vld [vmem:[#allocation2 + $0x2c] sm:$0xff] }
  0x8a   : > { %v532_v44 = vmul.f32 0.036000773, %v526_v1  ;;  %v1126_v46 = vadd.f32 %v3904_v8, %v1057_v49  ;;  %v616_v47 = vld [vmem:[#allocation2 + $0x23] sm:$0xff]  ;;  %v3962_v2 = vmul.f32 0.21300554, %v707_v24  ;;  %258 = vst.msk [vmem:[#allocation2 + $0x50] sm:$0xff] %vm246_vm0, %v244_v9  ;;  %v264_v9 = vmul.f32 %v3752_v53, %v3752_v53 }
  0x8b   : > { %6352 = vst [vmem:[#allocation26_spill] sm:$0xff] %v3948_v18  ;;  %v448_v63 = vadd.f32 %v442_v52, %v352_v62  ;;  %v706_v4 = vld [vmem:[#allocation2 + $0x24] sm:$0xff]  ;;  %v622_v14 = vmul.f32 0.10936069, %v616_v47  ;;  %1408 = vrot.lane.b32.xlu1 %v3948_v18, %s3494_s19  ;;  %v1055_v50 = vadd.f32 %v1049_v51, %v971_v21  ;;  %v972_v59 = vadd.f32 %v966_v33, %v882_v40  ;;  %v795_v21 = vld [vmem:[#allocation2 + $0xd] sm:$0xff] }
  0x8c   : > { %v796_v7 = vld [vmem:[#allocation2 + $0x25] sm:$0xff]  ;;  %v1192_v8 = vadd.f32 %v3914_v11, %v1126_v46  ;;  %v712_v30 = vmul.f32 0.21300554, %v706_v4  ;;  %v1063_v49 = vmul.f32 0.036000773, %v347_v20  ;;  %v449_v20 = vadd.f32 %v3943_v23, %v353_v12  ;;  %v885_v47 = vld [vmem:[#allocation2 + $0xe] sm:$0xff] }
  0x8d   : > { %v538_v34 = vadd.f32 %v532_v44, %v448_v63  ;;  %v886_v58 = vld [vmem:[#allocation2 + $0x26] sm:$0xff]  ;;  %v802_v41 = vmul.f32 0.26601171, %v796_v7  ;;  %v1124_v5 = vadd.f32 %v1119_v45, %v1055_v50  ;;  %v1056_v15 = vadd.f32 %v3886_v31, %v972_v59  ;;  %v1058_v7 = vld [vmem:[#allocation2 + $0x10] sm:$0xff]  ;;  %276 = vst.msk [vmem:[#allocation3 + $0x20] sm:$0xff] %vm246_vm0, %v264_v9 }
  0x8e   : > { %v976_v61 = vld [vmem:[#allocation2 + $0x27] sm:$0xff]  ;;  %1249 = vst.msk [vmem:[#allocation6 + $0x28] sm:$0xff] %vm246_vm0, %v1192_v8  ;;  %v892_v13 = vmul.f32 0.21300554, %v886_v58  ;;  %v3968_v16 = vmul.f32 0.0010283801, %v527_v37 }
  0x8f   : > { %v3960_v57 = vld [vmem:[%s3635_s8 + $0x18] sm:$0x3]  ;;  %v628_v62 = vadd.f32 %v622_v14, %v538_v34  ;;  %v982_v11 = vmul.f32 0.10936069, %v976_v61  ;;  %v3970_v52 = vld [vmem:[#allocation2 + $0xa] sm:$0xff]  ;;  %v1190_v19 = vadd.f32 %v1184_v27, %v1124_v5  ;;  %v1125_v31 = vadd.f32 %v1056_v15, %v3865_v3  ;;  %v344_v14 = vld [vmem:[#allocation2] sm:$0xff] }
  0x90   : > { %v3964_v0 = vld [vmem:[#allocation2 + $0x8] sm:$0xff]  ;;  %v1286_v1 = vld [vmem:[#allocation6] sm:$0xff]  ;;  %v237_v44 = vmul.f32 %v3960_v57, %v3960_v57  ;;  %v531_v4 = vmul.f32 0.036000773, %v3970_v52  ;;  %v801_v50 = vmul.f32 0.26601171, %v795_v21  ;;  %v539_v61 = vadd.f32 %v3946_v26, %v449_v20 }
  0x91   : > { %v435_v51 = vld [vmem:[#allocation2 + $0x9] sm:$0xff]  ;;  %v718_v22 = vadd.f32 %v712_v30, %v628_v62  ;;  %v351_v45 = vmul.f32 0.0010283801, %v3964_v0  ;;  %v3976_v63 = vmul.f32 0.007598758, %v1286_v1  ;;  %1247 = vst.msk [vmem:[#allocation6 + $0x18] sm:$0xff] %vm246_vm0, %v1190_v19  ;;  %v1191_v24 = vadd.f32 %v3900_v35, %v1125_v31 }
  0x92   : > { %v615_v33 = vld [vmem:[#allocation2 + $0xb] sm:$0xff]  ;;  %v3980_v37 = vmul.f32 0.007598758, %v435_v51  ;;  %251 = vst.msk [vmem:[#allocation2 + $0x18] sm:$0x3] %vm250_vm1, %v237_v44  ;;  %v524_v5 = vld [vmem:[#allocation2 + $0x2] sm:$0xff]  ;;  %v629_v20 = vadd.f32 %v3952_v42, %v539_v61 }
  0x93   : > { %v705_v46 = vld [vmem:[#allocation2 + $0xc] sm:$0xff]  ;;  %6353 = vst [vmem:[#allocation27_spill] sm:$0xff] %v3976_v63  ;;  %v808_v36 = vadd.f32 %v802_v41, %v718_v22  ;;  %v621_v40 = vmul.f32 0.10936069, %v615_v33  ;;  %1406 = vrot.lane.b32.xlu0 %v3976_v63, %s3494_s19  ;;  %v891_v34 = vmul.f32 0.21300554, %v885_v47 }
  0x94   : > { %v975_v27 = vld [vmem:[#allocation2 + $0xf] sm:$0xff]  ;;  %v447_v3 = vadd.f32 %v3980_v37, %v351_v45  ;;  %v711_v12 = vmul.f32 0.21300554, %v705_v46  ;;  %1248 = vst.msk [vmem:[#allocation6 + $0x20] sm:$0xff] %vm246_vm0, %v1191_v24  ;;  %v350_v35 = vmul.f32 0.0010283801, %v344_v14 }
  0x95   : > { %v898_v8 = vadd.f32 %v892_v13, %v808_v36  ;;  %v981_v30 = vmul.f32 0.10936069, %v975_v27  ;;  %v1291_v58 = vld [vmem:[#allocation6 + $0x28] sm:$0xff]  ;;  %v434_v41 = vld [vmem:[#allocation2 + $0x1] sm:$0xff]  ;;  %v530_v33 = vmul.f32 0.036000773, %v524_v5 }
  0x96   : > { %v537_v59 = vadd.f32 %v531_v4, %v447_v3  ;;  %v3993_v62 = vmul.f32 0.007598758, %v1291_v58  ;;  %v440_v15 = vmul.f32 0.007598758, %v434_v41  ;;  %v1062_v53 = vmul.f32 0.036000773, %v1058_v7 }
  0x97   : > { %v988_v51 = vadd.f32 %v982_v11, %v898_v8  ;;  %v614_v13 = vld [vmem:[#allocation2 + $0x3] sm:$0xff]  ;;  %v265_v11 = vmul.f32 %v3755_v54, %v3755_v54  ;;  %v4002_v36 = vmul.f32 0.036000773, %v3964_v0  ;;  %v4005_v4 = vld [vmem:[%s3635_s8 + $0x48] sm:$0xff]  ;;  %v1060_v5 = vld [vmem:[#allocation2 + $0x50] sm:$0xff] }
  0x98   : > { %6354 = vst [vmem:[#allocation28_spill] sm:$0xff] %v3993_v62  ;;  %v627_v1 = vadd.f32 %v621_v40, %v537_v59  ;;  %v704_v19 = vld [vmem:[#allocation2 + $0x4] sm:$0xff]  ;;  %1416 = vrot.lane.b32.xlu2 %v3993_v62, %s3494_s19  ;;  %v446_v44 = vadd.f32 %v440_v15, %v350_v35  ;;  %v620_v45 = vmul.f32 0.10936069, %v614_v13  ;;  %v719_v59 = vadd.f32 %v3962_v2, %v629_v20 }
  0x99   : > { %v794_v22 = vld [vmem:[#allocation2 + $0x5] sm:$0xff]  ;;  %v1069_v26 = vadd.f32 %v1063_v49, %v988_v51  ;;  %v710_v27 = vmul.f32 0.21300554, %v704_v19  ;;  %v1127_v14 = vld [vmem:[#allocation2 + $0x11] sm:$0xff]  ;;  %277 = vst.msk [vmem:[#allocation3 + $0x28] sm:$0xff] %vm246_vm0, %v265_v11 }
  0x9a   : > { %v884_v46 = vld [vmem:[#allocation2 + $0x6] sm:$0xff]  ;;  %v717_v47 = vadd.f32 %v711_v12, %v627_v1  ;;  %v536_v24 = vadd.f32 %v530_v33, %v446_v44  ;;  %v800_v3 = vmul.f32 0.26601171, %v794_v22  ;;  %v1193_v54 = vld [vmem:[#allocation2 + $0x12] sm:$0xff]  ;;  %v1130_v8 = vmul.f32 0.007598758, %v1127_v14 }
  0x9b   : > { %v974_v21 = vld [vmem:[#allocation2 + $0x7] sm:$0xff]  ;;  %v1135_v49 = vadd.f32 %v1069_v26, %v3943_v23  ;;  %v890_v9 = vmul.f32 0.21300554, %v884_v46  ;;  %v1290_v12 = vld [vmem:[#allocation6 + $0x20] sm:$0xff]  ;;  %v243_v23 = vmul.f32 %v4005_v4, %v4005_v4  ;;  %v4042_v20 = vmul.f32 0.036000773, %v1060_v5 }
  0x9c   : > { %v1289_v31 = vld [vmem:[#allocation6 + $0x18] sm:$0xff]  ;;  %v807_v7 = vadd.f32 %v801_v50, %v717_v47  ;;  %v980_v42 = vmul.f32 0.10936069, %v974_v21  ;;  %v626_v58 = vadd.f32 %v620_v45, %v536_v24  ;;  %v4019_v50 = vmul.f32 0.007598758, %v1290_v12  ;;  %v1059_v44 = vld [vmem:[#allocation2 + $0x30] sm:$0xff] }
  0x9d   : > { %v4007_v40 = vmul.f32 0.007598758, %v1289_v31  ;;  %v1204_v0 = vadd.f32 %v3968_v16, %v1135_v49  ;;  %v4014_v61 = vld [vmem:[%s3635_s8 + $0x58] sm:$0x3]  ;;  %v4025_v16 = vld [vmem:[%s3635_s8 + $0x40] sm:$0xff]  ;;  %257 = vst.msk [vmem:[#allocation2 + $0x48] sm:$0xff] %vm246_vm0, %v243_v23  ;;  %v266_v45 = vmul.f32 %v3933_v48, %v3933_v48  ;;  %v261_v24 = vmul.f32 %v3786_v28, %v3786_v28 }
  0x9e   : > { %6356 = vst [vmem:[#allocation30_spill] sm:$0xff] %v4019_v50  ;;  %v897_v35 = vadd.f32 %v891_v34, %v807_v7  ;;  %v245_v41 = vmul.f32 %v4014_v61, %v4014_v61  ;;  %v797_v51 = vld [vmem:[#allocation2 + $0x2d] sm:$0xff]  ;;  %v716_v15 = vadd.f32 %v710_v27, %v626_v58  ;;  %v242_v33 = vmul.f32 %v4025_v16, %v4025_v16  ;;  %v4031_v1 = vld [vmem:[%s3635_s8 + $0x38] sm:$0x3]  ;;  %v364_v11 = vld [vmem:[#allocation3 + $0x20] sm:$0xff] }
  0x9f   : > { %6355 = vst [vmem:[#allocation29_spill] sm:$0xff] %v4007_v40  ;;  %1412 = vrot.lane.b32.xlu0 %v4007_v40, %s3494_s19  ;;  %v803_v13 = vmul.f32 0.26601171, %v797_v51  ;;  %v887_v19 = vld [vmem:[#allocation2 + $0x2e] sm:$0xff]  ;;  %1414 = vrot.lane.b32.xlu1 %v4019_v50, %s3494_s19  ;;  %v1197_v34 = vmul.f32 0.0010283801, %v1193_v54  ;;  %v241_v22 = vmul.f32 %v4031_v1, %v4031_v1 }
  0xa0   : > { %1252 = vst.msk [vmem:[#allocation7 + $0x10] sm:$0xff] %vm246_vm0, %v1204_v0  ;;  %v987_v2 = vadd.f32 %v981_v30, %v897_v35  ;;  %v977_v26 = vld [vmem:[#allocation2 + $0x2f] sm:$0xff]  ;;  %v806_v46 = vadd.f32 %v800_v3, %v716_v15  ;;  %v1196_v21 = vmul.f32 0.0010283801, %v3970_v52  ;;  %v893_v47 = vmul.f32 0.21300554, %v887_v19 }
  0xa1   : > { %259 = vst.msk [vmem:[#allocation2 + $0x58] sm:$0x3] %vm250_vm1, %v245_v41  ;;  %v809_v30 = vadd.f32 %v803_v13, %v719_v59  ;;  %v983_v49 = vmul.f32 0.10936069, %v977_v26  ;;  %v1064_v14 = vmul.f32 0.036000773, %v1059_v44  ;;  %v262_v44 = vmul.f32 %v3816_v60, %v3816_v60 }
  0xa2   : > { %v1068_v31 = vadd.f32 %v1062_v53, %v987_v2  ;;  %256 = vst.msk [vmem:[#allocation2 + $0x40] sm:$0xff] %vm246_vm0, %v242_v33  ;;  %v896_v27 = vadd.f32 %v890_v9, %v806_v46  ;;  %v4049_v52 = vld [vmem:[#allocation3 + $0x28] sm:$0xff]  ;;  %v370_v53 = vmul.f32 0.0010283801, %v364_v11 }
  0xa3   : > { %255 = vst.msk [vmem:[#allocation2 + $0x38] sm:$0x3] %vm250_vm1, %v241_v22  ;;  %v454_v7 = vld [vmem:[#allocation3 + $0x21] sm:$0xff]  ;;  %v4052_v0 = vmul.f32 0.0010283801, %v4049_v52  ;;  %v899_v35 = vadd.f32 %v893_v47, %v809_v30 }
  0xa4   : > { %v1134_v3 = vadd.f32 %v1130_v8, %v1068_v31  ;;  %278 = vst.msk [vmem:[#allocation3 + $0x30] sm:$0xff] %vm246_vm0, %v266_v45  ;;  %v544_v54 = vld [vmem:[#allocation3 + $0x22] sm:$0xff]  ;;  %v986_v12 = vadd.f32 %v980_v42, %v896_v27  ;;  %v460_v9 = vmul.f32 0.007598758, %v454_v7  ;;  %v529_v33 = vld [vmem:[#allocation2 + $0x4a] sm:$0xff] }
  0xa5   : > { %v634_v58 = vld [vmem:[#allocation3 + $0x23] sm:$0xff]  ;;  %v550_v41 = vmul.f32 0.036000773, %v544_v54  ;;  %273 = vst.msk [vmem:[#allocation3 + $0x8] sm:$0xff] %vm246_vm0, %v261_v24  ;;  %v619_v19 = vld [vmem:[#allocation2 + $0x4b] sm:$0xff]  ;;  %v989_v47 = vadd.f32 %v983_v49, %v899_v35 }
  0xa6   : > { %v1203_v59 = vadd.f32 %v1197_v34, %v1134_v3  ;;  %v4054_v5 = vmul.f32 0.10936069, %v634_v58  ;;  %v1067_v8 = vadd.f32 %v4002_v36, %v986_v12  ;;  %v349_v51 = vld [vmem:[#allocation2 + $0x48] sm:$0xff]  ;;  %v535_v34 = vmul.f32 0.036000773, %v529_v33  ;;  %274 = vst.msk [vmem:[#allocation3 + $0x10] sm:$0xff] %vm246_vm0, %v262_v44 }
  0xa7   : > { %v1306_v23 = vld [vmem:[#allocation7 + $0x10] sm:$0xff]  ;;  %v355_v42 = vmul.f32 0.0010283801, %v349_v51  ;;  %v625_v22 = vmul.f32 0.10936069, %v619_v19  ;;  %v466_v54 = vadd.f32 %v460_v9, %v370_v53  ;;  %v1070_v53 = vadd.f32 %v1064_v14, %v989_v47  ;;  %v814_v44 = vld [vmem:[#allocation3 + $0x25] sm:$0xff] }
  0xa8   : > { %v4056_v28 = vmul.f32 0.007598758, %v1306_v23  ;;  %v439_v15 = vld [vmem:[#allocation2 + $0x49] sm:$0xff]  ;;  %1251 = vst.msk [vmem:[#allocation7 + $0x8] sm:$0xff] %vm246_vm0, %v1203_v59  ;;  %v1133_v2 = vadd.f32 %v1067_v8, %v3980_v37  ;;  %v1129_v37 = vld [vmem:[#allocation2 + $0x51] sm:$0xff]  ;;  %v260_v47 = vmul.f32 %v3832_v6, %v3832_v6 }
  0xa9   : > { %v4061_v13 = vmul.f32 0.007598758, %v439_v15  ;;  %v709_v26 = vld [vmem:[#allocation2 + $0x4c] sm:$0xff]  ;;  %v4071_v58 = vmul.f32 0.007598758, %v1129_v37  ;;  %v348_v60 = vld [vmem:[#allocation2 + $0x40] sm:$0xff] }
  0xaa   : > { %6357 = vst [vmem:[#allocation31_spill] sm:$0xff] %v4056_v28  ;;  %1446 = vrot.lane.b32.xlu2 %v4056_v28, %s3494_s19  ;;  %v799_v36 = vld [vmem:[#allocation2 + $0x4d] sm:$0xff]  ;;  %v715_v46 = vmul.f32 0.21300554, %v709_v26  ;;  %v1202_v27 = vadd.f32 %v1196_v21, %v1133_v2  ;;  %v438_v59 = vld [vmem:[#allocation2 + $0x41] sm:$0xff] }
  0xab   : > { %v451_v45 = vadd.f32 %v4061_v13, %v355_v42  ;;  %v805_v11 = vmul.f32 0.26601171, %v799_v36  ;;  %v889_v31 = vld [vmem:[#allocation2 + $0x4e] sm:$0xff]  ;;  %v354_v8 = vmul.f32 0.0010283801, %v348_v60  ;;  %v528_v49 = vld [vmem:[#allocation2 + $0x42] sm:$0xff] }
  0xac   : > { %v979_v30 = vld [vmem:[#allocation2 + $0x4f] sm:$0xff]  ;;  %v895_v24 = vmul.f32 0.21300554, %v889_v31  ;;  %1250 = vst.msk [vmem:[#allocation7] sm:$0xff] %vm246_vm0, %v1202_v27  ;;  %v444_v15 = vmul.f32 0.007598758, %v438_v59 }
  0xad   : > { %v4069_v3 = vmul.f32 0.10936069, %v979_v30  ;;  %v1195_v7 = vld [vmem:[#allocation2 + $0x52] sm:$0xff]  ;;  %v541_v12 = vadd.f32 %v535_v34, %v451_v45  ;;  %v4077_v35 = vld [vmem:[%s3642_s25 + $0x18] sm:$0x3]  ;;  %v556_v30 = vadd.f32 %v550_v41, %v466_v54  ;;  %272 = vst.msk [vmem:[#allocation3] sm:$0xff] %vm246_vm0, %v260_v47 }
  0xae   : > { %v4073_v23 = vmul.f32 0.0010283801, %v1195_v7  ;;  %v534_v42 = vmul.f32 0.036000773, %v528_v49  ;;  %v618_v19 = vld [vmem:[#allocation2 + $0x43] sm:$0xff]  ;;  %v450_v34 = vadd.f32 %v444_v15, %v354_v8  ;;  %v1128_v14 = vld [vmem:[#allocation2 + $0x31] sm:$0xff] }
  0xaf   : > { %v631_v21 = vadd.f32 %v625_v22, %v541_v12  ;;  %v708_v2 = vld [vmem:[#allocation2 + $0x44] sm:$0xff]  ;;  %v624_v36 = vmul.f32 0.10936069, %v618_v19  ;;  %v4082_v49 = vmul.f32 0.036000773, %v349_v51  ;;  %v1194_v8 = vld [vmem:[#allocation2 + $0x32] sm:$0xff] }
  0xb0   : > { %v798_v26 = vld [vmem:[#allocation2 + $0x45] sm:$0xff]  ;;  %v714_v45 = vmul.f32 0.21300554, %v708_v2  ;;  %v540_v22 = vadd.f32 %v534_v42, %v450_v34  ;;  %v4084_v62 = vmul.f32 0.0010283801, %v529_v33 }
  0xb1   : > { %v1305_v9 = vld [vmem:[#allocation7 + $0x8] sm:$0xff]  ;;  %v721_v37 = vadd.f32 %v715_v46, %v631_v21  ;;  %v804_v7 = vmul.f32 0.26601171, %v798_v26  ;;  %v1131_v46 = vmul.f32 0.007598758, %v1128_v14  ;;  %v263_v21 = vmul.f32 %v4077_v35, %v4077_v35 }
  0xb2   : > { %v888_v31 = vld [vmem:[#allocation2 + $0x46] sm:$0xff]  ;;  %v4080_v27 = vmul.f32 0.007598758, %v1305_v9  ;;  %v630_v51 = vadd.f32 %v624_v36, %v540_v22  ;;  %v1199_v42 = vmul.f32 0.0010283801, %v1194_v8  ;;  %v646_v26 = vadd.f32 %v4054_v5, %v556_v30 }
  0xb3   : > { %v894_v60 = vmul.f32 0.21300554, %v888_v31  ;;  %v724_v59 = vld [vmem:[#allocation3 + $0x24] sm:$0xff]  ;;  %v811_v41 = vadd.f32 %v805_v11, %v721_v37  ;;  %v1136_v34 = vadd.f32 %v1131_v46, %v1070_v53  ;;  %v725_v37 = vld [vmem:[#allocation3 + $0x2c] sm:$0xff]  ;;  %v820_v53 = vmul.f32 0.26601171, %v814_v44 }
  0xb4   : > { %6358 = vst [vmem:[#allocation32_spill] sm:$0xff] %v4080_v27  ;;  %v978_v12 = vld [vmem:[#allocation2 + $0x47] sm:$0xff]  ;;  %1444 = vrot.lane.b32.xlu1 %v4080_v27, %s3494_s19  ;;  %v720_v36 = vadd.f32 %v714_v45, %v630_v51  ;;  %v730_v22 = vmul.f32 0.21300554, %v724_v59  ;;  %v1078_v44 = vmul.f32 0.036000773, %v4049_v52 }
  0xb5   : > { %v984_v54 = vmul.f32 0.10936069, %v978_v12  ;;  %v455_v15 = vld [vmem:[#allocation3 + $0x29] sm:$0xff]  ;;  %v4095_v6 = vld [vmem:[#allocation7] sm:$0xff]  ;;  %v901_v9 = vadd.f32 %v895_v24, %v811_v41  ;;  %v1205_v30 = vadd.f32 %v1199_v42, %v1136_v34  ;;  %v4107_v24 = vmul.f32 0.21300554, %v725_v37 }
  0xb6   : > { %v4092_v33 = vmul.f32 0.007598758, %v455_v15  ;;  %v545_v19 = vld [vmem:[#allocation3 + $0x2a] sm:$0xff]  ;;  %v4102_v12 = vmul.f32 0.007598758, %v4095_v6  ;;  %v269_v15 = vmul.f32 %v3857_v29, %v3857_v29  ;;  %v810_v41 = vadd.f32 %v804_v7, %v720_v36 }
  0xb7   : > { %v635_v2 = vld [vmem:[#allocation3 + $0x2b] sm:$0xff]  ;;  %v4097_v11 = vmul.f32 0.036000773, %v545_v19  ;;  %v991_v5 = vadd.f32 %v4069_v3, %v901_v9  ;;  %275 = vst.msk [vmem:[#allocation3 + $0x18] sm:$0x3] %vm250_vm1, %v263_v21  ;;  %v736_v46 = vadd.f32 %v730_v22, %v646_v26  ;;  %v270_v7 = vmul.f32 %v3890_v39, %v3890_v39 }
  0xb8   : > { %v4099_v31 = vmul.f32 0.10936069, %v635_v2  ;;  %6359 = vst [vmem:[#allocation33_spill] sm:$0xff] %v4102_v12  ;;  %v904_v14 = vld [vmem:[#allocation3 + $0x26] sm:$0xff]  ;;  %1442 = vrot.lane.b32.xlu0 %v4102_v12, %s3494_s19  ;;  %v900_v42 = vadd.f32 %v894_v60, %v810_v41  ;;  %v1213_v9 = vmul.f32 0.0010283801, %v545_v19 }
  0xb9   : > { %v994_v8 = vld [vmem:[#allocation3 + $0x27] sm:$0xff]  ;;  %v910_v45 = vmul.f32 0.21300554, %v904_v14  ;;  %v1072_v29 = vadd.f32 %v4042_v20, %v991_v5  ;;  %1253 = vst.msk [vmem:[#allocation7 + $0x18] sm:$0xff] %vm246_vm0, %v1205_v30  ;;  %v826_v26 = vadd.f32 %v820_v53, %v736_v46  ;;  %v993_v60 = vld [vmem:[#allocation3 + $0xf] sm:$0xff] }
  0xba   : > { %v4112_v59 = vld [vmem:[#allocation3 + $0x8] sm:$0xff]  ;;  %v1000_v3 = vmul.f32 0.10936069, %v994_v8  ;;  %281 = vst.msk [vmem:[#allocation3 + $0x48] sm:$0xff] %vm246_vm0, %v269_v15  ;;  %v990_v14 = vadd.f32 %v984_v54, %v900_v42  ;;  %v1073_v5 = vld [vmem:[#allocation3 + $0x10] sm:$0xff] }
  0xbb   : > { %v453_v51 = vld [vmem:[#allocation3 + $0x9] sm:$0xff]  ;;  %v1138_v20 = vadd.f32 %v4071_v58, %v1072_v29  ;;  %v369_v47 = vmul.f32 0.0010283801, %v4112_v59  ;;  %v916_v8 = vadd.f32 %v910_v45, %v826_v26  ;;  %282 = vst.msk [vmem:[#allocation3 + $0x50] sm:$0xff] %vm246_vm0, %v270_v7  ;;  %v4135_v29 = vmul.f32 0.10936069, %v993_v60 }
  0xbc   : > { %v4114_v2 = vld [vmem:[#allocation3 + $0xa] sm:$0xff]  ;;  %v4125_v22 = vmul.f32 0.007598758, %v453_v51  ;;  %v4129_v30 = vld [vmem:[%s3642_s25 + $0x58] sm:$0x3]  ;;  %v1071_v58 = vadd.f32 %v4082_v49, %v990_v14 }
  0xbd   : > { %v633_v21 = vld [vmem:[#allocation3 + $0xb] sm:$0xff]  ;;  %v549_v52 = vmul.f32 0.036000773, %v4114_v2  ;;  %v1207_v19 = vadd.f32 %v4073_v23, %v1138_v20  ;;  %v1006_v46 = vadd.f32 %v1000_v3, %v916_v8  ;;  %v4140_v42 = vmul.f32 0.036000773, %v1073_v5  ;;  %v452_v20 = vld [vmem:[#allocation3 + $0x1] sm:$0xff] }
  0xbe   : > { %v723_v34 = vld [vmem:[#allocation3 + $0xc] sm:$0xff]  ;;  %v639_v39 = vmul.f32 0.10936069, %v633_v21  ;;  %v465_v53 = vadd.f32 %v4125_v22, %v369_v47  ;;  %v467_v21 = vadd.f32 %v4092_v33, %v4052_v0  ;;  %v1137_v7 = vadd.f32 %v1071_v58, %v4061_v13  ;;  %v632_v8 = vld [vmem:[#allocation3 + $0x3] sm:$0xff] }
  0xbf   : > { %v813_v37 = vld [vmem:[#allocation3 + $0xd] sm:$0xff]  ;;  %v729_v15 = vmul.f32 0.21300554, %v723_v34  ;;  %1255 = vst.msk [vmem:[#allocation7 + $0x28] sm:$0xff] %vm246_vm0, %v1207_v19  ;;  %v362_v34 = vld [vmem:[#allocation3] sm:$0xff]  ;;  %v1084_v3 = vadd.f32 %v1078_v44, %v1006_v46  ;;  %v271_v60 = vmul.f32 %v4129_v30, %v4129_v30 }
  0xc0   : > { %v903_v36 = vld [vmem:[#allocation3 + $0xe] sm:$0xff]  ;;  %v819_v41 = vmul.f32 0.26601171, %v813_v37  ;;  %v555_v23 = vadd.f32 %v549_v52, %v465_v53  ;;  %v4145_v49 = vld [vmem:[#allocation7 + $0x18] sm:$0xff]  ;;  %v458_v0 = vmul.f32 0.007598758, %v452_v20  ;;  %v1206_v5 = vadd.f32 %v4084_v62, %v1137_v7 }
  0xc1   : > { %v909_v51 = vmul.f32 0.21300554, %v903_v36  ;;  %v1139_v54 = vld [vmem:[#allocation3 + $0x11] sm:$0xff]  ;;  %v368_v36 = vmul.f32 0.0010283801, %v362_v34  ;;  %v542_v52 = vld [vmem:[#allocation3 + $0x2] sm:$0xff]  ;;  %v1147_v13 = vadd.f32 %v1084_v3, %v4092_v33  ;;  %v268_v3 = vmul.f32 %v3907_v56, %v3907_v56 }
  0xc2   : > { %v1208_v45 = vld [vmem:[#allocation3 + $0x12] sm:$0xff]  ;;  %v4142_v26 = vmul.f32 0.007598758, %v1139_v54  ;;  %v4150_v47 = vmul.f32 0.007598758, %v4145_v49  ;;  %v645_v14 = vadd.f32 %v639_v39, %v555_v23  ;;  %v722_v53 = vld [vmem:[#allocation3 + $0x4] sm:$0xff] }
  0xc3   : > { %v4147_v37 = vmul.f32 0.0010283801, %v1208_v45  ;;  %v548_v19 = vmul.f32 0.036000773, %v542_v52  ;;  %v638_v44 = vmul.f32 0.10936069, %v632_v8  ;;  %v464_v54 = vadd.f32 %v458_v0, %v368_v36 }
  0xc4   : > { %6360 = vst [vmem:[#allocation34_spill] sm:$0xff] %v4150_v47  ;;  %v812_v58 = vld [vmem:[#allocation3 + $0x5] sm:$0xff]  ;;  %1448 = vrot.lane.b32.xlu0 %v4150_v47, %s3494_s19  ;;  %v735_v46 = vadd.f32 %v729_v15, %v645_v14  ;;  %v728_v39 = vmul.f32 0.21300554, %v722_v53  ;;  %v1219_v20 = vadd.f32 %v1213_v9, %v1147_v13  ;;  %v4164_v15 = vmul.f32 0.036000773, %v4112_v59 }
  0xc5   : > { %v818_v45 = vmul.f32 0.26601171, %v812_v58  ;;  %v902_v23 = vld [vmem:[#allocation3 + $0x6] sm:$0xff]  ;;  %1254 = vst.msk [vmem:[#allocation7 + $0x20] sm:$0xff] %vm246_vm0, %v1206_v5  ;;  %v554_v8 = vadd.f32 %v548_v19, %v464_v54  ;;  %v4167_v36 = vmul.f32 0.0010283801, %v4114_v2  ;;  %v557_v14 = vadd.f32 %v4097_v11, %v467_v21 }
  0xc6   : > { %v992_v34 = vld [vmem:[#allocation3 + $0x7] sm:$0xff]  ;;  %v908_v62 = vmul.f32 0.21300554, %v902_v23  ;;  %v825_v52 = vadd.f32 %v819_v41, %v735_v46  ;;  %283 = vst.msk [vmem:[#allocation3 + $0x58] sm:$0x3] %vm250_vm1, %v271_v60  ;;  %v3305_v5 = vld [vmem:[%s3635_s8 + $0x20] sm:$0xff] }
  0xc7   : > { %v4159_v33 = vmul.f32 0.10936069, %v992_v34  ;;  %v367_v7 = vld [vmem:[#allocation3 + $0x48] sm:$0xff]  ;;  %1258 = vst.msk [vmem:[#allocation8 + $0x10] sm:$0xff] %vm246_vm0, %v1219_v20  ;;  %v3306_v13 = vld [vmem:[%s3642_s25 + $0x20] sm:$0xff]  ;;  %v644_v53 = vadd.f32 %v638_v44, %v554_v8  ;;  %v3307_v23 = vld [vmem:[%s3635_s8 + $0x28] sm:$0xff] }
  0xc8   : > { %v4170_v9 = vld [vmem:[#allocation7 + $0x28] sm:$0xff]  ;;  %v373_v0 = vmul.f32 0.0010283801, %v367_v7  ;;  %v288_v59 = vmul.f32 %v3306_v13, %v3305_v5  ;;  %v915_v2 = vadd.f32 %v909_v51, %v825_v52  ;;  %v3308_v34 = vld [vmem:[%s3642_s25 + $0x28] sm:$0xff]  ;;  %280 = vst.msk [vmem:[#allocation3 + $0x40] sm:$0xff] %vm246_vm0, %v268_v3  ;;  %v3315_v47 = vld [vmem:[%s3642_s25] sm:$0xff] }
  0xc9   : > { %v457_v56 = vld [vmem:[#allocation3 + $0x49] sm:$0xff]  ;;  %v4177_v19 = vmul.f32 0.007598758, %v4170_v9  ;;  %v289_v20 = vmul.f32 %v3308_v34, %v3307_v23  ;;  %v734_v13 = vadd.f32 %v728_v39, %v644_v53  ;;  %v4188_v8 = vmul.f32 0.036000773, %v367_v7 }
  0xca   : > { %v547_v41 = vld [vmem:[#allocation3 + $0x4a] sm:$0xff]  ;;  %v4179_v60 = vmul.f32 0.007598758, %v457_v56  ;;  %v1005_v5 = vadd.f32 %v4135_v29, %v915_v2  ;;  %v647_v56 = vadd.f32 %v4099_v31, %v557_v14  ;;  %v4199_v3 = vld [vmem:[%s3642_s25 + $0x38] sm:$0x3]  ;;  %300 = vst.msk [vmem:[#allocation4 + $0x20] sm:$0xff] %vm246_vm0, %v288_v59 }
  0xcb   : > { %6361 = vst [vmem:[#allocation35_spill] sm:$0xff] %v4177_v19  ;;  %v637_v58 = vld [vmem:[#allocation3 + $0x4b] sm:$0xff]  ;;  %v553_v11 = vmul.f32 0.036000773, %v547_v41  ;;  %1452 = vrot.lane.b32.xlu2 %v4177_v19, %s3494_s19  ;;  %v4196_v19 = vmul.f32 0.0010283801, %v547_v41 }
  0xcc   : > { %v727_v46 = vld [vmem:[#allocation3 + $0x4c] sm:$0xff]  ;;  %v643_v21 = vmul.f32 0.10936069, %v637_v58  ;;  %v469_v55 = vadd.f32 %v4179_v60, %v373_v0  ;;  %v4193_v29 = vld [vmem:[#allocation7 + $0x20] sm:$0xff]  ;;  %v1083_v39 = vadd.f32 %v4140_v42, %v1005_v5  ;;  %v824_v0 = vadd.f32 %v818_v45, %v734_v13  ;;  %301 = vst.msk [vmem:[#allocation4 + $0x28] sm:$0xff] %vm246_vm0, %v289_v20 }
  0xcd   : > { %v733_v54 = vmul.f32 0.21300554, %v727_v46  ;;  %v817_v51 = vld [vmem:[#allocation3 + $0x4d] sm:$0xff]  ;;  %v4202_v7 = vmul.f32 0.007598758, %v4193_v29  ;;  %v3309_v42 = vld [vmem:[%s3635_s8 + $0x30] sm:$0xff] }
  0xce   : > { %v907_v44 = vld [vmem:[#allocation3 + $0x4e] sm:$0xff]  ;;  %v823_v58 = vmul.f32 0.26601171, %v817_v51  ;;  %v559_v2 = vadd.f32 %v553_v11, %v469_v55  ;;  %v290_v55 = vmul.f32 %v3309_v42, %v3933_v48  ;;  %v4210_v45 = vld [vmem:[#allocation8 + $0x10] sm:$0xff]  ;;  %v1146_v41 = vadd.f32 %v4142_v26, %v1083_v39  ;;  %v3310_v26 = vld [vmem:[%s3635_s8 + $0x8] sm:$0xff] }
  0xcf   : > { %v997_v52 = vld [vmem:[#allocation3 + $0x4f] sm:$0xff]  ;;  %v913_v46 = vmul.f32 0.21300554, %v907_v44  ;;  %6362 = vst [vmem:[#allocation36_spill] sm:$0xff] %v4202_v7  ;;  %v267_v44 = vmul.f32 %v4199_v3, %v4199_v3  ;;  %v914_v11 = vadd.f32 %v908_v62, %v824_v0  ;;  %1450 = vrot.lane.b32.xlu1 %v4202_v7, %s3494_s19  ;;  %v4220_v50 = vmul.f32 0.007598758, %v4210_v45 }
  0xd0   : > { %v4191_v23 = vmul.f32 0.10936069, %v997_v52  ;;  %v815_v34 = vld [vmem:[#allocation3 + $0x2d] sm:$0xff]  ;;  %v649_v5 = vadd.f32 %v643_v21, %v559_v2  ;;  %v3311_v62 = vld [vmem:[%s3642_s25 + $0x8] sm:$0xff]  ;;  %v1218_v39 = vadd.f32 %v4147_v37, %v1146_v41  ;;  %302 = vst.msk [vmem:[#allocation4 + $0x30] sm:$0xff] %vm246_vm0, %v290_v55  ;;  %v3313_v7 = vld [vmem:[%s3642_s25 + $0x10] sm:$0xff] }
  0xd1   : > { %v1075_v53 = vld [vmem:[#allocation3 + $0x50] sm:$0xff]  ;;  %6363 = vst [vmem:[#allocation37_spill] sm:$0xff] %v4220_v50  ;;  %v285_v21 = vmul.f32 %v3311_v62, %v3310_v26  ;;  %v1004_v59 = vadd.f32 %v4159_v33, %v914_v11  ;;  %v821_v2 = vmul.f32 0.26601171, %v815_v34  ;;  %v636_v34 = vld [vmem:[#allocation3 + $0x43] sm:$0xff] }
  0xd2   : > { %v4204_v31 = vmul.f32 0.036000773, %v1075_v53  ;;  %v1141_v14 = vld [vmem:[#allocation3 + $0x51] sm:$0xff]  ;;  %v737_v53 = vadd.f32 %v4107_v24, %v647_v56  ;;  %279 = vst.msk [vmem:[#allocation3 + $0x38] sm:$0x3] %vm250_vm1, %v267_v44  ;;  %v739_v0 = vadd.f32 %v733_v54, %v649_v5  ;;  %v366_v24 = vld [vmem:[#allocation3 + $0x40] sm:$0xff] }
  0xd3   : > { %v1210_v51 = vld [vmem:[#allocation3 + $0x52] sm:$0xff]  ;;  %v4213_v13 = vmul.f32 0.007598758, %v1141_v14  ;;  %v456_v56 = vld [vmem:[#allocation3 + $0x41] sm:$0xff]  ;;  %1482 = vrot.lane.b32.xlu2 %v4220_v50, %s3494_s19  ;;  %1257 = vst.msk [vmem:[#allocation8 + $0x8] sm:$0xff] %vm246_vm0, %v1218_v39  ;;  %v1082_v37 = vadd.f32 %v4164_v15, %v1004_v59 }
  0xd4   : > { %v905_v52 = vld [vmem:[#allocation3 + $0x2e] sm:$0xff]  ;;  %v4222_v48 = vmul.f32 0.0010283801, %v1210_v51  ;;  %v546_v14 = vld [vmem:[#allocation3 + $0x42] sm:$0xff]  ;;  %v829_v33 = vadd.f32 %v823_v58, %v739_v0  ;;  %v372_v54 = vmul.f32 0.0010283801, %v366_v24 }
  0xd5   : > { %v911_v51 = vmul.f32 0.21300554, %v905_v52  ;;  %v995_v42 = vld [vmem:[#allocation3 + $0x2f] sm:$0xff]  ;;  %v3312_v44 = vld [vmem:[%s3635_s8 + $0x10] sm:$0xff]  ;;  %v462_v20 = vmul.f32 0.007598758, %v456_v56  ;;  %v827_v52 = vadd.f32 %v821_v2, %v737_v53 }
  0xd6   : > { %v286_v26 = vmul.f32 %v3313_v7, %v3312_v44  ;;  %v552_v41 = vmul.f32 0.036000773, %v546_v14  ;;  %v642_v11 = vmul.f32 0.10936069, %v636_v34  ;;  %v726_v5 = vld [vmem:[#allocation3 + $0x44] sm:$0xff]  ;;  %v3314_v62 = vld [vmem:[%s3635_s8] sm:$0xff]  ;;  %v1145_v7 = vadd.f32 %v1082_v37, %v4125_v22 }
  0xd7   : > { %v816_v55 = vld [vmem:[#allocation3 + $0x45] sm:$0xff]  ;;  %v284_v43 = vmul.f32 %v3315_v47, %v3314_v62  ;;  %v919_v44 = vadd.f32 %v913_v46, %v829_v33  ;;  %v468_v28 = vadd.f32 %v462_v20, %v372_v54  ;;  %v732_v50 = vmul.f32 0.21300554, %v726_v5  ;;  %v1074_v15 = vld [vmem:[#allocation3 + $0x30] sm:$0xff]  ;;  %297 = vst.msk [vmem:[#allocation4 + $0x8] sm:$0xff] %vm246_vm0, %v285_v21  ;;  %v3316_v54 = vld [vmem:[%s3642_s25 + $0x48] sm:$0xff] }
  0xd8   : > { %v906_v39 = vld [vmem:[#allocation3 + $0x46] sm:$0xff]  ;;  %v822_v58 = vmul.f32 0.26601171, %v816_v55  ;;  %v917_v24 = vadd.f32 %v911_v51, %v827_v52  ;;  %v1217_v53 = vadd.f32 %v4167_v36, %v1145_v7  ;;  %v1001_v22 = vmul.f32 0.10936069, %v995_v42  ;;  %298 = vst.msk [vmem:[#allocation4 + $0x10] sm:$0xff] %vm246_vm0, %v286_v26 }
  0xd9   : > { %v996_v40 = vld [vmem:[#allocation3 + $0x47] sm:$0xff]  ;;  %v912_v59 = vmul.f32 0.21300554, %v906_v39  ;;  %v1009_v47 = vadd.f32 %v4191_v23, %v919_v44  ;;  %v558_v2 = vadd.f32 %v552_v41, %v468_v28  ;;  %v1140_v46 = vld [vmem:[#allocation3 + $0x31] sm:$0xff]  ;;  %v1079_v37 = vmul.f32 0.036000773, %v1074_v15 }
  0xda   : > { %v4241_v0 = vmul.f32 0.10936069, %v996_v40  ;;  %v1209_v56 = vld [vmem:[#allocation3 + $0x32] sm:$0xff]  ;;  %v382_v14 = vld [vmem:[#allocation4 + $0x20] sm:$0xff]  ;;  %v1143_v33 = vmul.f32 0.007598758, %v1140_v46  ;;  %v293_v20 = vmul.f32 %v3316_v54, %v4005_v4  ;;  %v1007_v51 = vadd.f32 %v1001_v22, %v917_v24 }
  0xdb   : > { %v1214_v21 = vmul.f32 0.0010283801, %v1209_v56  ;;  %1256 = vst.msk [vmem:[#allocation8] sm:$0xff] %vm246_vm0, %v1217_v53  ;;  %v1087_v40 = vadd.f32 %v4204_v31, %v1009_v47  ;;  %v648_v36 = vadd.f32 %v642_v11, %v558_v2  ;;  %v383_v23 = vld [vmem:[#allocation4 + $0x28] sm:$0xff]  ;;  %v388_v28 = vmul.f32 0.0010283801, %v382_v14 }
  0xdc   : > { %v472_v42 = vld [vmem:[#allocation4 + $0x21] sm:$0xff]  ;;  %v473_v34 = vld [vmem:[#allocation4 + $0x29] sm:$0xff]  ;;  %v4250_v41 = vld [vmem:[#allocation8 + $0x8] sm:$0xff]  ;;  %v389_v5 = vmul.f32 0.0010283801, %v383_v23  ;;  %v1085_v7 = vadd.f32 %v1079_v37, %v1007_v51  ;;  %296 = vst.msk [vmem:[#allocation4] sm:$0xff] %vm246_vm0, %v284_v43  ;;  %v287_v37 = vmul.f32 %v4077_v35, %v3960_v57 }
  0xdd   : > { %v478_v26 = vmul.f32 0.007598758, %v472_v42  ;;  %v562_v55 = vld [vmem:[#allocation4 + $0x22] sm:$0xff]  ;;  %v4253_v52 = vmul.f32 0.007598758, %v4250_v41  ;;  %v1150_v4 = vadd.f32 %v4213_v13, %v1087_v40  ;;  %v738_v62 = vadd.f32 %v732_v50, %v648_v36  ;;  %v4256_v44 = vld [vmem:[#allocation4 + $0x2a] sm:$0xff] }
  0xde   : > { %v652_v31 = vld [vmem:[#allocation4 + $0x23] sm:$0xff]  ;;  %v4259_v11 = vmul.f32 0.007598758, %v473_v34  ;;  %v568_v15 = vmul.f32 0.036000773, %v562_v55  ;;  %v653_v24 = vld [vmem:[#allocation4 + $0x2b] sm:$0xff]  ;;  %v1148_v2 = vadd.f32 %v1143_v33, %v1085_v7 }
  0xdf   : > { %6364 = vst [vmem:[#allocation38_spill] sm:$0xff] %v4253_v52  ;;  %v484_v39 = vadd.f32 %v478_v26, %v388_v28  ;;  %1480 = vrot.lane.b32.xlu1 %v4253_v52, %s3494_s19  ;;  %v1222_v53 = vadd.f32 %v4222_v48, %v1150_v4  ;;  %v828_v47 = vadd.f32 %v822_v58, %v738_v62  ;;  %v658_v13 = vmul.f32 0.10936069, %v652_v31  ;;  %v742_v50 = vld [vmem:[#allocation4 + $0x24] sm:$0xff]  ;;  %v743_v56 = vld [vmem:[#allocation4 + $0x2c] sm:$0xff] }
  0xe0   : > { %v832_v22 = vld [vmem:[#allocation4 + $0x25] sm:$0xff]  ;;  %305 = vst.msk [vmem:[#allocation4 + $0x48] sm:$0xff] %vm246_vm0, %v293_v20  ;;  %v569_v46 = vmul.f32 0.036000773, %v4256_v44  ;;  %v748_v14 = vmul.f32 0.21300554, %v742_v50  ;;  %v1220_v40 = vadd.f32 %v1214_v21, %v1148_v2  ;;  %v485_v20 = vadd.f32 %v4259_v11, %v389_v5 }
  0xe1   : > { %v574_v43 = vadd.f32 %v568_v15, %v484_v39  ;;  %1261 = vst.msk [vmem:[#allocation8 + $0x28] sm:$0xff] %vm246_vm0, %v1222_v53  ;;  %v918_v54 = vadd.f32 %v912_v59, %v828_v47  ;;  %v659_v48 = vmul.f32 0.10936069, %v653_v24  ;;  %v922_v58 = vld [vmem:[#allocation4 + $0x26] sm:$0xff]  ;;  %v838_v28 = vmul.f32 0.26601171, %v832_v22 }
  0xe2   : > { %v4269_v33 = vld [vmem:[#allocation4 + $0x8] sm:$0xff]  ;;  %v4271_v36 = vld [vmem:[#allocation8] sm:$0xff]  ;;  %1259 = vst.msk [vmem:[#allocation8 + $0x18] sm:$0xff] %vm246_vm0, %v1220_v40  ;;  %v4279_v35 = vmul.f32 0.21300554, %v743_v56  ;;  %v575_v39 = vadd.f32 %v569_v46, %v485_v20  ;;  %v3317_v46 = vld [vmem:[%s3635_s8 + $0x50] sm:$0xff] }
  0xe3   : > { %v664_v51 = vadd.f32 %v658_v13, %v574_v43  ;;  %v1012_v42 = vld [vmem:[#allocation4 + $0x27] sm:$0xff]  ;;  %v4275_v26 = vmul.f32 0.007598758, %v4271_v36  ;;  %v1008_v57 = vadd.f32 %v4241_v0, %v918_v54  ;;  %v928_v55 = vmul.f32 0.21300554, %v922_v58  ;;  %s207_s8 = scalar_lea.vmem [#allocation15], %s3214_s30 }
  0xe4   : > { %v471_v34 = vld [vmem:[#allocation4 + $0x9] sm:$0xff]  ;;  %299 = vst.msk [vmem:[#allocation4 + $0x18] sm:$0x3] %vm250_vm1, %v287_v37  ;;  %v387_v5 = vmul.f32 0.0010283801, %v4269_v33  ;;  %v380_v54 = vld [vmem:[#allocation4] sm:$0xff] }
  0xe5   : > { %6365 = vst [vmem:[#allocation39_spill] sm:$0xff] %v4275_v26  ;;  %v4281_v59 = vld [vmem:[#allocation4 + $0xa] sm:$0xff]  ;;  %v754_v21 = vadd.f32 %v748_v14, %v664_v51  ;;  %1478 = vrot.lane.b32.xlu0 %v4275_v26, %s3494_s19  ;;  %v1086_v4 = vadd.f32 %v4188_v8, %v1008_v57  ;;  %v4288_v62 = vmul.f32 0.007598758, %v471_v34  ;;  %v1018_v24 = vmul.f32 0.10936069, %v1012_v42 }
  0xe6   : > { %v567_v0 = vmul.f32 0.036000773, %v4281_v59  ;;  %v651_v7 = vld [vmem:[#allocation4 + $0xb] sm:$0xff]  ;;  %v1093_v53 = vmul.f32 0.036000773, %v383_v23  ;;  %v3318_v40 = vld [vmem:[%s3642_s25 + $0x50] sm:$0xff] }
  0xe7   : > { %v741_v31 = vld [vmem:[#allocation4 + $0xc] sm:$0xff]  ;;  %v844_v15 = vadd.f32 %v838_v28, %v754_v21  ;;  %v1149_v2 = vadd.f32 %v1086_v4, %v4179_v60  ;;  %v483_v13 = vadd.f32 %v4288_v62, %v387_v5  ;;  %v657_v50 = vmul.f32 0.10936069, %v651_v7  ;;  %v470_v28 = vld [vmem:[#allocation4 + $0x1] sm:$0xff]  ;;  %s3110_s28 = sshll.u32 %s207_s8, 4  ;;  %s3111_s28 = int_to_ptr.vmem [resolvable:$true] %s3110_s28 }
  0xe8   : > { %v831_v47 = vld [vmem:[#allocation4 + $0xd] sm:$0xff]  ;;  %v747_v22 = vmul.f32 0.21300554, %v741_v31  ;;  %v4293_v43 = vld [vmem:[#allocation8 + $0x28] sm:$0xff]  ;;  %v294_v58 = vmul.f32 %v3318_v40, %v3317_v46  ;;  %v386_v51 = vmul.f32 0.0010283801, %v380_v54 }
  0xe9   : > { %v921_v8 = vld [vmem:[#allocation4 + $0xe] sm:$0xff]  ;;  %v934_v56 = vadd.f32 %v928_v55, %v844_v15  ;;  %v837_v14 = vmul.f32 0.26601171, %v831_v47  ;;  %v4298_v23 = vmul.f32 0.007598758, %v4293_v43  ;;  %v1221_v60 = vadd.f32 %v4196_v19, %v1149_v2  ;;  %v560_v42 = vld [vmem:[#allocation4 + $0x2] sm:$0xff] }
  0xea   : > { %v1011_v37 = vld [vmem:[#allocation4 + $0xf] sm:$0xff]  ;;  %v573_v20 = vadd.f32 %v567_v0, %v483_v13  ;;  %v476_v21 = vmul.f32 0.007598758, %v470_v28  ;;  %v566_v55 = vmul.f32 0.036000773, %v560_v42  ;;  %v650_v5 = vld [vmem:[#allocation4 + $0x3] sm:$0xff]  ;;  %v665_v0 = vadd.f32 %v659_v48, %v575_v39 }
  0xeb   : > { %6366 = vst [vmem:[#allocation40_spill] sm:$0xff] %v4298_v23  ;;  %v4301_v34 = vld [vmem:[#allocation8 + $0x18] sm:$0xff]  ;;  %v1024_v57 = vadd.f32 %v1018_v24, %v934_v56  ;;  %v3319_v4 = vld [vmem:[%s3642_s25 + $0x40] sm:$0xff]  ;;  %1488 = vrot.lane.b32.xlu2 %v4298_v23, %s3494_s19  ;;  %v295_v24 = vmul.f32 %v4129_v30, %v4014_v61  ;;  %v1228_v13 = vmul.f32 0.0010283801, %v4256_v44  ;;  %v291_v39 = vmul.f32 %v4199_v3, %v4031_v1  ;;  %s3112_s25 = sshll.u32 %s3108_s6, 4  ;;  %s3113_s25 = int_to_ptr.hbm [resolvable:$true] %s3112_s25 }
  0xec   : > { %v292_v7 = vmul.f32 %v3319_v4, %v4025_v16  ;;  %1260 = vst.msk [vmem:[#allocation8 + $0x20] sm:$0xff] %vm246_vm0, %v1221_v60  ;;  %v4309_v19 = vmul.f32 0.007598758, %v4301_v34  ;;  %v663_v31 = vadd.f32 %v657_v50, %v573_v20  ;;  %v1088_v15 = vld [vmem:[#allocation4 + $0x10] sm:$0xff]  ;;  %v740_v47 = vld [vmem:[#allocation4 + $0x4] sm:$0xff]  ;;  %v482_v46 = vadd.f32 %v476_v21, %v386_v51 }
  0xed   : > { %v1099_v2 = vadd.f32 %v1093_v53, %v1024_v57  ;;  %v927_v56 = vmul.f32 0.21300554, %v921_v8  ;;  %v1151_v16 = vld [vmem:[#allocation4 + $0x11] sm:$0xff]  ;;  %v1017_v60 = vmul.f32 0.10936069, %v1011_v37  ;;  %v830_v48 = vld [vmem:[#allocation4 + $0x5] sm:$0xff] }
  0xee   : > { %6367 = vst [vmem:[#allocation41_spill] sm:$0xff] %v4309_v19  ;;  %v1223_v54 = vld [vmem:[#allocation4 + $0x12] sm:$0xff]  ;;  %1484 = vrot.lane.b32.xlu0 %v4309_v19, %s3494_s19  ;;  %v753_v40 = vadd.f32 %v747_v22, %v663_v31  ;;  %v656_v28 = vmul.f32 0.10936069, %v650_v5  ;;  %v1092_v61 = vmul.f32 0.036000773, %v1088_v15  ;;  %v572_v30 = vadd.f32 %v566_v55, %v482_v46 }
  0xef   : > { %v1159_v50 = vadd.f32 %v1099_v2, %v4259_v11  ;;  %v746_v53 = vmul.f32 0.21300554, %v740_v47  ;;  %v920_v44 = vld [vmem:[#allocation4 + $0x6] sm:$0xff]  ;;  %306 = vst.msk [vmem:[#allocation4 + $0x50] sm:$0xff] %vm246_vm0, %v294_v58  ;;  %v1154_v20 = vmul.f32 0.007598758, %v1151_v16  ;;  %v755_v22 = vadd.f32 %v4279_v35, %v665_v0 }
  0xf0   : > { %v843_v8 = vadd.f32 %v837_v14, %v753_v40  ;;  %v1227_v51 = vmul.f32 0.0010283801, %v1223_v54  ;;  %307 = vst.msk [vmem:[#allocation4 + $0x58] sm:$0x3] %vm250_vm1, %v295_v24  ;;  %v662_v42 = vadd.f32 %v656_v28, %v572_v30  ;;  %v836_v57 = vmul.f32 0.26601171, %v830_v48 }
  0xf1   : > { %v1234_v37 = vadd.f32 %v1228_v13, %v1159_v50  ;;  %304 = vst.msk [vmem:[#allocation4 + $0x40] sm:$0xff] %vm246_vm0, %v292_v7  ;;  %v833_v1 = vld [vmem:[#allocation4 + $0x2d] sm:$0xff]  ;;  %v926_v21 = vmul.f32 0.21300554, %v920_v44  ;;  %v1091_v35 = vmul.f32 0.036000773, %v4269_v33 }
  0xf2   : > { %v923_v3 = vld [vmem:[#allocation4 + $0x2e] sm:$0xff]  ;;  %v933_v11 = vadd.f32 %v927_v56, %v843_v8  ;;  %303 = vst.msk [vmem:[#allocation4 + $0x38] sm:$0x3] %vm250_vm1, %v291_v39  ;;  %v752_v58 = vadd.f32 %v746_v53, %v662_v42  ;;  %v839_v4 = vmul.f32 0.26601171, %v833_v1 }
  0xf3   : > { %v1010_v55 = vld [vmem:[#allocation4 + $0x7] sm:$0xff]  ;;  %v4326_v14 = vld [vmem:[#allocation8 + $0x20] sm:$0xff]  ;;  %1264 = vst.msk [vmem:[#allocation9 + $0x10] sm:$0xff] %vm246_vm0, %v1234_v37  ;;  %v929_v31 = vmul.f32 0.21300554, %v923_v3 }
  0xf4   : > { %v4323_v5 = vld [vmem:[#allocation4 + $0x48] sm:$0xff]  ;;  %v4331_v0 = vmul.f32 0.007598758, %v4326_v14  ;;  %v1023_v7 = vadd.f32 %v1017_v60, %v933_v11  ;;  %v842_v47 = vadd.f32 %v836_v57, %v752_v58  ;;  %v1016_v24 = vmul.f32 0.10936069, %v1010_v55  ;;  %v1089_v48 = vld [vmem:[#allocation4 + $0x30] sm:$0xff] }
  0xf5   : > { %v1013_v15 = vld [vmem:[#allocation4 + $0x2f] sm:$0xff]  ;;  %v391_v2 = vmul.f32 0.0010283801, %v4323_v5  ;;  %v845_v13 = vadd.f32 %v839_v4, %v755_v22  ;;  %v1226_v42 = vmul.f32 0.0010283801, %v4281_v59 }
  0xf6   : > { %6368 = vst [vmem:[#allocation42_spill] sm:$0xff] %v4331_v0  ;;  %1486 = vrot.lane.b32.xlu1 %v4331_v0, %s3494_s19  ;;  %v1098_v56 = vadd.f32 %v1092_v61, %v1023_v7  ;;  %v475_v16 = vld [vmem:[#allocation4 + $0x49] sm:$0xff]  ;;  %v1019_v46 = vmul.f32 0.10936069, %v1013_v15  ;;  %v932_v40 = vadd.f32 %v926_v21, %v842_v47  ;;  %v1094_v1 = vmul.f32 0.036000773, %v1089_v48 }
  0xf7   : > { %v4336_v54 = vld [vmem:[#allocation4 + $0x4a] sm:$0xff]  ;;  %v4338_v28 = vmul.f32 0.007598758, %v475_v16  ;;  %v935_v30 = vadd.f32 %v929_v31, %v845_v13  ;;  %v4519_v27 = vmul.f32 0.036000773, %v4170_v9 }
  0xf8   : > { %v655_v33 = vld [vmem:[#allocation4 + $0x4b] sm:$0xff]  ;;  %v571_v60 = vmul.f32 0.036000773, %v4336_v54  ;;  %v1158_v39 = vadd.f32 %v1154_v20, %v1098_v56  ;;  %v1022_v53 = vadd.f32 %v1016_v24, %v932_v40  ;;  %v384_v58 = vld [vmem:[#allocation4 + $0x40] sm:$0xff]  ;;  %v4549_v12 = vmul.f32 0.036000773, %v4301_v34 }
  0xf9   : > { %v745_v50 = vld [vmem:[#allocation4 + $0x4c] sm:$0xff]  ;;  %v487_v44 = vadd.f32 %v4338_v28, %v391_v2  ;;  %v661_v8 = vmul.f32 0.10936069, %v655_v33  ;;  %v1025_v57 = vadd.f32 %v1019_v46, %v935_v30  ;;  %v474_v31 = vld [vmem:[#allocation4 + $0x41] sm:$0xff]  ;;  %v390_v15 = vmul.f32 0.0010283801, %v384_v58 }
  0xfa   : > { %v835_v22 = vld [vmem:[#allocation4 + $0x4d] sm:$0xff]  ;;  %v1233_v37 = vadd.f32 %v1227_v51, %v1158_v39  ;;  %v1097_v11 = vadd.f32 %v1091_v35, %v1022_v53  ;;  %v751_v20 = vmul.f32 0.21300554, %v745_v50  ;;  %v480_v47 = vmul.f32 0.007598758, %v474_v31  ;;  %v564_v24 = vld [vmem:[#allocation4 + $0x42] sm:$0xff] }
  0xfb   : > { %v4342_v61 = vld [vmem:[#allocation9 + $0x10] sm:$0xff]  ;;  %v577_v21 = vadd.f32 %v571_v60, %v487_v44  ;;  %v841_v4 = vmul.f32 0.26601171, %v835_v22  ;;  %v654_v2 = vld [vmem:[#allocation4 + $0x43] sm:$0xff]  ;;  %v570_v13 = vmul.f32 0.036000773, %v564_v24  ;;  %v1100_v16 = vadd.f32 %v1094_v1, %v1025_v57 }
  0xfc   : > { %v4346_v3 = vmul.f32 0.007598758, %v4342_v61  ;;  %v925_v55 = vld [vmem:[#allocation4 + $0x4e] sm:$0xff]  ;;  %1263 = vst.msk [vmem:[#allocation9 + $0x8] sm:$0xff] %vm246_vm0, %v1233_v37  ;;  %v1157_v59 = vadd.f32 %v1097_v11, %v4288_v62  ;;  %v744_v56 = vld [vmem:[#allocation4 + $0x44] sm:$0xff]  ;;  %v486_v60 = vadd.f32 %v480_v47, %v390_v15 }
  0xfd   : > { %v1015_v7 = vld [vmem:[#allocation4 + $0x4f] sm:$0xff]  ;;  %v667_v51 = vadd.f32 %v661_v8, %v577_v21  ;;  %v931_v35 = vmul.f32 0.21300554, %v925_v55  ;;  %v660_v48 = vmul.f32 0.10936069, %v654_v2  ;;  %v834_v53 = vld [vmem:[#allocation4 + $0x45] sm:$0xff] }
  0xfe   : > { %6369 = vst [vmem:[#allocation43_spill] sm:$0xff] %v4346_v3  ;;  %1518 = vrot.lane.b32.xlu2 %v4346_v3, %s3494_s19  ;;  %v1232_v33 = vadd.f32 %v1226_v42, %v1157_v59  ;;  %v1090_v40 = vld [vmem:[#allocation4 + $0x50] sm:$0xff]  ;;  %v1021_v50 = vmul.f32 0.10936069, %v1015_v7  ;;  %v576_v44 = vadd.f32 %v570_v13, %v486_v60  ;;  %v750_v8 = vmul.f32 0.21300554, %v744_v56 }
  0xff   : > { %v757_v46 = vadd.f32 %v751_v20, %v667_v51  ;;  %v1152_v39 = vld [vmem:[#allocation4 + $0x31] sm:$0xff]  ;;  %v1096_v11 = vmul.f32 0.036000773, %v1090_v40  ;;  %v924_v21 = vld [vmem:[#allocation4 + $0x46] sm:$0xff]  ;;  %v840_v20 = vmul.f32 0.26601171, %v834_v53 }
 0x100   : > { %v1153_v30 = vld [vmem:[#allocation4 + $0x51] sm:$0xff]  ;;  %1262 = vst.msk [vmem:[#allocation9] sm:$0xff] %vm246_vm0, %v1232_v33  ;;  %v1155_v22 = vmul.f32 0.007598758, %v1152_v39  ;;  %v666_v1 = vadd.f32 %v660_v48, %v576_v44  ;;  %v1014_v51 = vld [vmem:[#allocation4 + $0x47] sm:$0xff] }
 0x101   : > { %v847_v62 = vadd.f32 %v841_v4, %v757_v46  ;;  %v1224_v37 = vld [vmem:[#allocation4 + $0x32] sm:$0xff]  ;;  %v1156_v31 = vmul.f32 0.007598758, %v1153_v30  ;;  %v930_v47 = vmul.f32 0.21300554, %v924_v21  ;;  %v4511_v19 = vld [vmem:[#allocation7 + $0x8] sm:$0xff] }
 0x102   : > { %v1229_v55 = vmul.f32 0.0010283801, %v1224_v37  ;;  %v1160_v58 = vadd.f32 %v1155_v22, %v1100_v16  ;;  %v1225_v59 = vld [vmem:[#allocation4 + $0x52] sm:$0xff]  ;;  %v756_v15 = vadd.f32 %v750_v8, %v666_v1  ;;  %v1095_v60 = vmul.f32 0.036000773, %v4323_v5  ;;  %v4392_v37 = vpop.permute.xlu2 %1378  ;;  %6401 = vst [vmem:[#allocation75_spill] sm:$0xff] %v4519_v27 }
 0x103   : > { %v4353_v57 = vld [vmem:[#allocation9 + $0x8] sm:$0xff]  ;;  %v937_v42 = vadd.f32 %v931_v35, %v847_v62  ;;  %v1231_v13 = vmul.f32 0.0010283801, %v1225_v59  ;;  %v1020_v35 = vmul.f32 0.10936069, %v1014_v51  ;;  %6375 = vst [vmem:[#allocation49_spill] sm:$0xff] %v4392_v37 }
 0x104   : > { %v4356_v7 = vmul.f32 0.007598758, %v4353_v57  ;;  %v1235_v24 = vadd.f32 %v1229_v55, %v1160_v58  ;;  %v846_v56 = vadd.f32 %v840_v20, %v756_v15  ;;  %v1230_v30 = vmul.f32 0.0010283801, %v4336_v54  ;;  %v4387_v54 = vld [vmem:[#allocation5] sm:$0xff]  ;;  %v4399_v55 = vld [vmem:[#allocation5 + $0x10] sm:$0xff] }
 0x105   : > { %v1027_v4 = vadd.f32 %v1021_v50, %v937_v42  ;;  %v4402_v42 = vmul.f32 0.036000773, %v4399_v55  ;;  %v4410_v1 = vld [vmem:[#allocation5 + $0x18] sm:$0xff]  ;;  %v4415_v58 = vld [vmem:[#allocation5 + $0x8] sm:$0xff]  ;;  %v4433_v15 = vld [vmem:[#allocation6] sm:$0xff]  ;;  %6408 = vst [vmem:[#allocation82_spill] sm:$0xff] %v4549_v12 }
 0x106   : > { %6370 = vst [vmem:[#allocation44_spill] sm:$0xff] %v4356_v7  ;;  %1516 = vrot.lane.b32.xlu1 %v4356_v7, %s3494_s19  ;;  %v936_v40 = vadd.f32 %v930_v47, %v846_v56  ;;  %v4413_v20 = vmul.f32 0.036000773, %v4410_v1  ;;  %v4422_v51 = vld [vmem:[#allocation5 + $0x28] sm:$0xff]  ;;  %v4436_v47 = vmul.f32 0.036000773, %v4433_v15 }
 0x107   : > { %v1102_v2 = vadd.f32 %v1096_v11, %v1027_v4  ;;  %1265 = vst.msk [vmem:[#allocation9 + $0x18] sm:$0xff] %vm246_vm0, %v1235_v24  ;;  %v4361_v16 = vld [vmem:[#allocation9] sm:$0xff]  ;;  %v4425_v4 = vmul.f32 0.036000773, %v4422_v51  ;;  %v4493_v3 = vld [vmem:[#allocation7 + $0x10] sm:$0xff] }
 0x108   : > { %v4364_v33 = vmul.f32 0.007598758, %v4361_v16  ;;  %v1026_v39 = vadd.f32 %v1020_v35, %v936_v40  ;;  %6377 = vst [vmem:[#allocation51_spill] sm:$0xff] %v4402_v42  ;;  %v4438_v24 = vld [vmem:[#allocation5 + $0x20] sm:$0xff]  ;;  %v4458_v40 = vld [vmem:[#allocation6 + $0x18] sm:$0xff] }
 0x109   : > { %v1162_v46 = vadd.f32 %v1156_v31, %v1102_v2  ;;  %6378 = vst [vmem:[#allocation52_spill] sm:$0xff] %v4413_v20  ;;  %v4418_v31 = vmul.f32 0.036000773, %v4415_v58  ;;  %v4441_v2 = vmul.f32 0.036000773, %v4438_v24 }
 0x10a   : > { %6371 = vst [vmem:[#allocation45_spill] sm:$0xff] %v4364_v33  ;;  %1514 = vrot.lane.b32.xlu0 %v4364_v33, %s3494_s19  ;;  %v1101_v50 = vadd.f32 %v1095_v60, %v1026_v39  ;;  %v4420_v59 = vpop.permute.xlu2 %1380  ;;  %v4461_v60 = vmul.f32 0.036000773, %v4458_v40  ;;  %v4496_v33 = vmul.f32 0.036000773, %v4493_v3 }
 0x10b   : > { %v1237_v48 = vadd.f32 %v1231_v13, %v1162_v46  ;;  %6379 = vst [vmem:[#allocation53_spill] sm:$0xff] %v4418_v31  ;;  %v4443_v13 = vld [vmem:[#allocation6 + $0x10] sm:$0xff]  ;;  %v4454_v46 = vpop.permute.xlu0 %1370  ;;  %v4514_v17 = vmul.f32 0.036000773, %v4511_v19  ;;  %v4552_v38 = vmul.f32 0.036000773, %v4250_v41 }
 0x10c   : > { %v1161_v62 = vadd.f32 %v1101_v50, %v4338_v28  ;;  %v4390_v28 = vmul.f32 0.036000773, %v4387_v54  ;;  %6380 = vst [vmem:[#allocation54_spill] sm:$0xff] %v4420_v59  ;;  %v4446_v56 = vmul.f32 0.036000773, %v4443_v13  ;;  %v4468_v50 = vld [vmem:[#allocation6 + $0x28] sm:$0xff] }
 0x10d   : > { %1267 = vst.msk [vmem:[#allocation9 + $0x28] sm:$0xff] %vm246_vm0, %v1237_v48  ;;  %v4463_v48 = vld [vmem:[#allocation6 + $0x8] sm:$0xff]  ;;  %v4555_v32 = vmul.f32 0.036000773, %v4293_v43  ;;  %v4820_v59 = vmul.f32 0.21300554, %v4387_v54 }
 0x10e   : > { %v4371_v53 = vld [vmem:[#allocation9 + $0x18] sm:$0xff]  ;;  %v1236_v8 = vadd.f32 %v1230_v30, %v1161_v62  ;;  %6374 = vst [vmem:[#allocation48_spill] sm:$0xff] %v4390_v28  ;;  %v4466_v39 = vmul.f32 0.036000773, %v4463_v48  ;;  %v4471_v30 = vmul.f32 0.036000773, %v4468_v50 }
 0x10f   : > { %v4375_v44 = vmul.f32 0.007598758, %v4371_v53  ;;  %6381 = vst [vmem:[#allocation55_spill] sm:$0xff] %v4425_v4 }
 0x110   : > { %1266 = vst.msk [vmem:[#allocation9 + $0x20] sm:$0xff] %vm246_vm0, %v1236_v8  ;;  %v4479_v8 = vpop.permute.xlu1 %1374 }
 0x111   : > { %6372 = vst [vmem:[#allocation46_spill] sm:$0xff] %v4375_v44 }
 0x112   : > { %1520 = vrot.lane.b32.xlu0 %v4375_v44, %s3494_s19  ;;  %6382 = vst [vmem:[#allocation56_spill] sm:$0xff] %v4436_v47  ;;  %v4450_v35 = vpop.permute.xlu2 %1410  ;;  %v4488_v44 = vld [vmem:[#allocation6 + $0x20] sm:$0xff] }
 0x113   : > { %6383 = vst [vmem:[#allocation57_spill] sm:$0xff] %v4441_v2  ;;  %v4491_v7 = vmul.f32 0.036000773, %v4488_v44 }
 0x114   : > { %v4380_v5 = vld [vmem:[#allocation9 + $0x28] sm:$0xff]  ;;  %6384 = vst [vmem:[#allocation58_spill] sm:$0xff] %v4446_v56 }
 0x115   : > { %v4383_v22 = vmul.f32 0.007598758, %v4380_v5  ;;  %6385 = vst [vmem:[#allocation59_spill] sm:$0xff] %v4450_v35 }
 0x116   : > { %6386 = vst [vmem:[#allocation60_spill] sm:$0xff] %v4454_v46  ;;  %v4538_v46 = vmul.f32 0.036000773, %v4210_v45 }
 0x117   : > { %6373 = vst [vmem:[#allocation47_spill] sm:$0xff] %v4383_v22  ;;  %1524 = vrot.lane.b32.xlu2 %v4383_v22, %s3494_s19  ;;  %v4394_v11 = vld [vmem:[#allocation9 + $0x20] sm:$0xff]  ;;  %v4486_v22 = vpop.permute.xlu0 %1372 }
 0x118   : > { %v4397_v21 = vmul.f32 0.007598758, %v4394_v11  ;;  %6387 = vst [vmem:[#allocation61_spill] sm:$0xff] %v4461_v60  ;;  %v4507_v23 = vpop.permute.xlu1 %1376 }
 0x119   : > { %6388 = vst [vmem:[#allocation62_spill] sm:$0xff] %v4466_v39 }
 0x11a   : > { %6376 = vst [vmem:[#allocation50_spill] sm:$0xff] %v4397_v21  ;;  %1550 = vrot.lane.b32.xlu0 %v4390_v28, %s3495_s26  ;;  %1522 = vrot.lane.b32.xlu1 %v4397_v21, %s3494_s19  ;;  %v4477_v62 = vpop.permute.xlu2 %1416  ;;  %v4484_v21 = vmul.f32 0.036000773, %v4095_v6  ;;  %v4505_v6 = vmul.f32 0.036000773, %v4145_v49 }
 0x11b   : > { %6389 = vst [vmem:[#allocation63_spill] sm:$0xff] %v4471_v30  ;;  %v4528_v49 = vmul.f32 0.036000773, %v4271_v36 }
 0x11c   : > { %6390 = vst [vmem:[#allocation64_spill] sm:$0xff] %v4477_v62  ;;  %v4723_v62 = vmul.f32 0.10936069, %v4170_v9 }
 0x11d   : > { %6391 = vst [vmem:[#allocation65_spill] sm:$0xff] %v4479_v8  ;;  %v4570_v8 = vmul.f32 0.036000773, %v4361_v16 }
 0x11e   : > { %6392 = vst [vmem:[#allocation66_spill] sm:$0xff] %v4484_v21 }
 0x11f   : > { %1554 = vrot.lane.b32.xlu2 %v4402_v42, %s3495_s26  ;;  %6393 = vst [vmem:[#allocation67_spill] sm:$0xff] %v4486_v22  ;;  %v4516_v22 = vpop.permute.xlu0 %1406  ;;  %v4841_v42 = vmul.f32 0.21300554, %v4410_v1 }
 0x120   : > { %6394 = vst [vmem:[#allocation68_spill] sm:$0xff] %v4491_v7  ;;  %v4533_v52 = vpop.permute.xlu1 %1408 }
 0x121   : > { %6395 = vst [vmem:[#allocation69_spill] sm:$0xff] %v4496_v33 }
 0x122   : > { %1556 = vrot.lane.b32.xlu0 %v4413_v20, %s3495_s26  ;;  %1552 = vrot.lane.b32.xlu1 %v4418_v31, %s3495_s26  ;;  %6396 = vst [vmem:[#allocation70_spill] sm:$0xff] %v4505_v6  ;;  %v4509_v0 = vpop.permute.xlu2 %1446  ;;  %v4828_v20 = vmul.f32 0.21300554, %v4399_v55 }
 0x123   : > { %6397 = vst [vmem:[#allocation71_spill] sm:$0xff] %v4507_v23  ;;  %v4531_v23 = vmul.f32 0.036000773, %v4193_v29 }
 0x124   : > { %6398 = vst [vmem:[#allocation72_spill] sm:$0xff] %v4509_v0  ;;  %v4712_v0 = vld [vmem:[#allocation7 + $0x18] sm:$0xff] }
 0x125   : > { %6399 = vst [vmem:[#allocation73_spill] sm:$0xff] %v4514_v17 }
 0x126   : > { %6400 = vst [vmem:[#allocation74_spill] sm:$0xff] %v4516_v22 }
 0x127   : > { %1560 = vrot.lane.b32.xlu2 %v4425_v4, %s3495_s26  ;;  %6402 = vst [vmem:[#allocation76_spill] sm:$0xff] %v4528_v49  ;;  %v4542_v18 = vpop.permute.xlu0 %1412  ;;  %v4807_v4 = vmul.f32 0.10936069, %v4380_v5 }
 0x128   : > { %6403 = vst [vmem:[#allocation77_spill] sm:$0xff] %v4531_v23  ;;  %v4559_v63 = vpop.permute.xlu1 %1414 }
 0x129   : > { %6404 = vst [vmem:[#allocation78_spill] sm:$0xff] %v4533_v52  ;;  %v4658_v52 = vmul.f32 0.10936069, %v4443_v13 }
 0x12a   : > { %1586 = vrot.lane.b32.xlu0 %v4436_v47, %s3495_s26  ;;  %1558 = vrot.lane.b32.xlu1 %v4441_v2, %s3495_s26  ;;  %v4535_v26 = vpop.permute.xlu2 %1452  ;;  %6406 = vst [vmem:[#allocation80_spill] sm:$0xff] %v4538_v46  ;;  %v4786_v2 = vmul.f32 0.10936069, %v4342_v61  ;;  %v4799_v47 = vmul.f32 0.10936069, %v4371_v53 }
 0x12b   : > { %6405 = vst [vmem:[#allocation79_spill] sm:$0xff] %v4535_v26 }
 0x12c   : > { %6407 = vst [vmem:[#allocation81_spill] sm:$0xff] %v4542_v18  ;;  %v4669_v18 = vmul.f32 0.10936069, %v4458_v40 }
 0x12d   : > { %6409 = vst [vmem:[#allocation83_spill] sm:$0xff] %v4552_v38 }
 0x12e   : > { %6410 = vst [vmem:[#allocation84_spill] sm:$0xff] %v4555_v32 }
 0x12f   : > { %1590 = vrot.lane.b32.xlu2 %v4446_v56, %s3495_s26  ;;  %6411 = vst [vmem:[#allocation85_spill] sm:$0xff] %v4559_v63  ;;  %v4565_v10 = vpop.permute.xlu0 %1442  ;;  %v4778_v56 = vmul.f32 0.10936069, %v4361_v16 }
 0x130   : > { %6413 = vst [vmem:[#allocation87_spill] sm:$0xff] %v4565_v10  ;;  %v4584_v63 = vpop.permute.xlu1 %1444 }
 0x131   : > { %6414 = vst [vmem:[#allocation88_spill] sm:$0xff] %v4570_v8 }
 0x132   : > { %1592 = vrot.lane.b32.xlu0 %v4461_v60, %s3495_s26  ;;  %1588 = vrot.lane.b32.xlu1 %v4466_v39, %s3495_s26  ;;  %v4561_v25 = vpop.permute.xlu2 %1482  ;;  %6418 = vst [vmem:[#allocation92_spill] sm:$0xff] %v4584_v63  ;;  %v4610_v63 = vmul.f32 0.10936069, %v4387_v54  ;;  %v4736_v39 = vmul.f32 0.10936069, %v4271_v36 }
 0x133   : > { %6412 = vst [vmem:[#allocation86_spill] sm:$0xff] %v4561_v25  ;;  %v4648_v25 = vmul.f32 0.10936069, %v4433_v15  ;;  %v4744_v60 = vmul.f32 0.10936069, %v4210_v45 }
 0x134   : > { %6425 = vst [vmem:[#allocation99_spill] sm:$0xff] %v4610_v63 }
 0x135   : > { %6435 = vst [vmem:[#allocation109_spill] sm:$0xff] %v4648_v25 }
 0x136   : > { %6439 = vst [vmem:[#allocation113_spill] sm:$0xff] %v4658_v52 }
 0x137   : > { %1596 = vrot.lane.b32.xlu2 %v4471_v30, %s3495_s26  ;;  %v4591_v10 = vpop.permute.xlu0 %1448  ;;  %6441 = vst [vmem:[#allocation115_spill] sm:$0xff] %v4669_v18 }
 0x138   : > { %6420 = vst [vmem:[#allocation94_spill] sm:$0xff] %v4591_v10  ;;  %v4613_v10 = vmul.f32 0.036000773, %v4394_v11 }
 0x139   : > { %6456 = vst [vmem:[#allocation130_spill] sm:$0xff] %v4723_v62 }
 0x13a   : > { %1622 = vrot.lane.b32.xlu0 %v4484_v21, %s3495_s26  ;;  %1594 = vrot.lane.b32.xlu1 %v4491_v7, %s3495_s26  ;;  %6426 = vst [vmem:[#allocation100_spill] sm:$0xff] %v4613_v10  ;;  %v4715_v7 = vmul.f32 0.10936069, %v4712_v0  ;;  %v4718_v21 = vmul.f32 0.10936069, %v4511_v19 }
 0x13b   : > { %6459 = vst [vmem:[#allocation133_spill] sm:$0xff] %v4736_v39 }
 0x13c   : > { %6453 = vst [vmem:[#allocation127_spill] sm:$0xff] %v4715_v7 }
 0x13d   : > { %6454 = vst [vmem:[#allocation128_spill] sm:$0xff] %v4718_v21 }
 0x13e   : > { %6462 = vst [vmem:[#allocation136_spill] sm:$0xff] %v4744_v60 }
 0x13f   : > { %1626 = vrot.lane.b32.xlu2 %v4496_v33, %s3495_s26  ;;  %v4700_v33 = vmul.f32 0.10936069, %v4493_v3  ;;  %6471 = vst [vmem:[#allocation145_spill] sm:$0xff] %v4778_v56 }
 0x140   : > { %6474 = vst [vmem:[#allocation148_spill] sm:$0xff] %v4786_v2 }
 0x141   : > { %6450 = vst [vmem:[#allocation124_spill] sm:$0xff] %v4700_v33 }
 0x142   : > { %1628 = vrot.lane.b32.xlu0 %v4505_v6, %s3495_s26  ;;  %1624 = vrot.lane.b32.xlu1 %v4514_v17, %s3495_s26  ;;  %v4689_v17 = vld [vmem:[#allocation7] sm:$0xff]  ;;  %v4695_v6 = vmul.f32 0.10936069, %v4488_v44  ;;  %6477 = vst [vmem:[#allocation151_spill] sm:$0xff] %v4799_v47 }
 0x143   : > { %v4692_v37 = vmul.f32 0.10936069, %v4689_v17  ;;  %6480 = vst [vmem:[#allocation154_spill] sm:$0xff] %v4807_v4 }
 0x144   : > { %6448 = vst [vmem:[#allocation122_spill] sm:$0xff] %v4695_v6 }
 0x145   : > { %6447 = vst [vmem:[#allocation121_spill] sm:$0xff] %v4692_v37 }
 0x147   : > { %1632 = vrot.lane.b32.xlu2 %v4519_v27, %s3495_s26  ;;  %v4677_v27 = vmul.f32 0.10936069, %v4468_v50 }
 0x149   : > { %6444 = vst [vmem:[#allocation118_spill] sm:$0xff] %v4677_v27 }
 0x14a   : > { %1658 = vrot.lane.b32.xlu0 %v4528_v49, %s3495_s26  ;;  %1630 = vrot.lane.b32.xlu1 %v4531_v23, %s3495_s26  ;;  %v4594_v23 = vmul.f32 0.036000773, %v4353_v57 }
 0x14c   : > { %6421 = vst [vmem:[#allocation95_spill] sm:$0xff] %v4594_v23 }
 0x14f   : > { %1662 = vrot.lane.b32.xlu2 %v4538_v46, %s3495_s26  ;;  %v4573_v46 = vmul.f32 0.036000773, %v4326_v14 }
 0x151   : > { %6415 = vst [vmem:[#allocation89_spill] sm:$0xff] %v4573_v46 }
 0x152   : > { %1664 = vrot.lane.b32.xlu0 %v4549_v12, %s3495_s26  ;;  %1660 = vrot.lane.b32.xlu1 %v4552_v38, %s3495_s26  ;;  %v4576_v12 = vmul.f32 0.036000773, %v4342_v61  ;;  %v4582_v38 = vpop.permute.xlu2 %1488 }
 0x153   : > { %6417 = vst [vmem:[#allocation91_spill] sm:$0xff] %v4582_v38 }
 0x154   : > { %6416 = vst [vmem:[#allocation90_spill] sm:$0xff] %v4576_v12 }
 0x157   : > { %1668 = vrot.lane.b32.xlu2 %v4555_v32, %s3495_s26  ;;  %v4589_v32 = vmul.f32 0.036000773, %v4371_v53  ;;  %v4615_v38 = vpop.permute.xlu0 %1478 }
 0x158   : > { %6427 = vst [vmem:[#allocation101_spill] sm:$0xff] %v4615_v38 }
 0x159   : > { %6419 = vst [vmem:[#allocation93_spill] sm:$0xff] %v4589_v32 }
 0x15a   : > { %1694 = vrot.lane.b32.xlu0 %v4570_v8, %s3495_s26  ;;  %1666 = vrot.lane.b32.xlu1 %v4573_v46, %s3495_s26  ;;  %v4597_v8 = vmul.f32 0.036000773, %v4380_v5  ;;  %v4607_v46 = vpop.permute.xlu1 %1450 }
 0x15b   : > { %6424 = vst [vmem:[#allocation98_spill] sm:$0xff] %v4607_v46 }
 0x15c   : > { %6422 = vst [vmem:[#allocation96_spill] sm:$0xff] %v4597_v8 }
 0x15f   : > { %1698 = vrot.lane.b32.xlu2 %v4576_v12, %s3495_s26  ;;  %v4605_v12 = vpop.permute.xlu2 %1518 }
 0x160   : > { %6423 = vst [vmem:[#allocation97_spill] sm:$0xff] %v4605_v12  ;;  %v4637_v12 = vmul.f32 0.10936069, %v4422_v51 }
 0x162   : > { %1700 = vrot.lane.b32.xlu0 %v4589_v32, %s3495_s26  ;;  %1696 = vrot.lane.b32.xlu1 %v4594_v23, %s3495_s26  ;;  %v4618_v32 = vmul.f32 0.10936069, %v4399_v55  ;;  %v4630_v23 = vmul.f32 0.10936069, %v4415_v58  ;;  %v4634_v38 = vpop.permute.xlu1 %1480  ;;  %6433 = vst [vmem:[#allocation107_spill] sm:$0xff] %v4637_v12 }
 0x163   : > { %6432 = vst [vmem:[#allocation106_spill] sm:$0xff] %v4634_v38 }
 0x164   : > { %6428 = vst [vmem:[#allocation102_spill] sm:$0xff] %v4618_v32 }
 0x165   : > { %6430 = vst [vmem:[#allocation104_spill] sm:$0xff] %v4630_v23 }
 0x167   : > { %1704 = vrot.lane.b32.xlu2 %v4597_v8, %s3495_s26  ;;  %v4627_v8 = vmul.f32 0.10936069, %v4410_v1 }
 0x169   : > { %6429 = vst [vmem:[#allocation103_spill] sm:$0xff] %v4627_v8 }
 0x16a   : > { %1730 = vrot.lane.b32.xlu0 %v4610_v63, %s3496_s27  ;;  %1702 = vrot.lane.b32.xlu1 %v4613_v10, %s3495_s26  ;;  %v4641_v10 = vpop.permute.xlu0 %1484  ;;  %v4655_v49 = vpop.permute.xlu1 %1486  ;;  %v2079_v63 = vmul.f32 0.26601171, %v4415_v58  ;;  %s3098_s26 = scalar_lea.sflag [#allocation12], %s3631_s22 }
 0x16b   : > { %6434 = vst [vmem:[#allocation108_spill] sm:$0xff] %v4641_v10 }
 0x16c   : > { %6438 = vst [vmem:[#allocation112_spill] sm:$0xff] %v4655_v49 }
 0x16f   : > { %1734 = vrot.lane.b32.xlu2 %v4618_v32, %s3496_s27  ;;  %v2080_v32 = vmul.f32 0.26601171, %v4399_v55  ;;  %v2083_v55 = vmul.f32 0.26601171, %v4422_v51 }
 0x171   : > { %v4632_v46 = vpop.permute.xlu2 %1524 }
 0x172   : > { %6431 = vst [vmem:[#allocation105_spill] sm:$0xff] %v4632_v46  ;;  %1736 = vrot.lane.b32.xlu0 %v4627_v8, %s3496_s27  ;;  %1732 = vrot.lane.b32.xlu1 %v4630_v23, %s3496_s27  ;;  %v4651_v46 = vmul.f32 0.10936069, %v4438_v24  ;;  %v2078_v23 = vmul.f32 0.26601171, %v4387_v54 }
 0x173   : > { %v2081_v54 = vmul.f32 0.26601171, %v4410_v1  ;;  %v2082_v1 = vmul.f32 0.26601171, %v4438_v24 }
 0x174   : > { %6436 = vst [vmem:[#allocation110_spill] sm:$0xff] %v4651_v46 }
 0x177   : > { %1740 = vrot.lane.b32.xlu2 %v4637_v12, %s3496_s27  ;;  %v5023_v12 = vmul.f32 0.21300554, %v4380_v5 }
 0x179   : > { %v4653_v38 = vpop.permute.xlu2 %1554  ;;  %6512 = vst [vmem:[#allocation186_spill] sm:$0xff] %v5023_v12 }
 0x17a   : > { %6437 = vst [vmem:[#allocation111_spill] sm:$0xff] %v4653_v38  ;;  %1766 = vrot.lane.b32.xlu0 %v4648_v25, %s3496_s27  ;;  %1738 = vrot.lane.b32.xlu1 %v4651_v46, %s3496_s27  ;;  %v4672_v38 = vmul.f32 0.10936069, %v4463_v48  ;;  %v5015_v46 = vmul.f32 0.21300554, %v4371_v53 }
 0x17c   : > { %v4664_v10 = vpop.permute.xlu0 %1514  ;;  %6442 = vst [vmem:[#allocation116_spill] sm:$0xff] %v4672_v38 }
 0x17d   : > { %6440 = vst [vmem:[#allocation114_spill] sm:$0xff] %v4664_v10  ;;  %v4683_v10 = vpop.permute.xlu1 %1516 }
 0x17e   : > { %6445 = vst [vmem:[#allocation119_spill] sm:$0xff] %v4683_v10 }
 0x17f   : > { %1770 = vrot.lane.b32.xlu2 %v4658_v52, %s3496_s27  ;;  %v5002_v52 = vmul.f32 0.21300554, %v4342_v61 }
 0x181   : > { %v4674_v49 = vpop.permute.xlu2 %1560 }
 0x182   : > { %6443 = vst [vmem:[#allocation117_spill] sm:$0xff] %v4674_v49  ;;  %1772 = vrot.lane.b32.xlu0 %v4669_v18, %s3496_s27  ;;  %1768 = vrot.lane.b32.xlu1 %v4672_v38, %s3496_s27  ;;  %v4981_v38 = vmul.f32 0.21300554, %v4293_v43 }
 0x184   : > { %v4685_v26 = vpop.permute.xlu0 %1520 }
 0x185   : > { %6446 = vst [vmem:[#allocation120_spill] sm:$0xff] %v4685_v26 }
 0x187   : > { %1776 = vrot.lane.b32.xlu2 %v4677_v27, %s3496_s27 }
 0x189   : > { %v4697_v22 = vpop.permute.xlu2 %1590 }
 0x18a   : > { %6449 = vst [vmem:[#allocation123_spill] sm:$0xff] %v4697_v22  ;;  %1802 = vrot.lane.b32.xlu0 %v4692_v37, %s3496_s27  ;;  %1774 = vrot.lane.b32.xlu1 %v4695_v6, %s3496_s27  ;;  %v4765_v22 = vmul.f32 0.10936069, %v4293_v43  ;;  %v4957_v6 = vld [vmem:[#allocation8 + $0x10] sm:$0xff] }
 0x18b   : > { %v4960_v37 = vmul.f32 0.21300554, %v4957_v6 }
 0x18c   : > { %v4706_v10 = vpop.permute.xlu0 %1550  ;;  %v4708_v26 = vpop.permute.xlu1 %1522  ;;  %6468 = vst [vmem:[#allocation142_spill] sm:$0xff] %v4765_v22 }
 0x18d   : > { %6451 = vst [vmem:[#allocation125_spill] sm:$0xff] %v4706_v10 }
 0x18e   : > { %6452 = vst [vmem:[#allocation126_spill] sm:$0xff] %v4708_v26 }
 0x18f   : > { %1806 = vrot.lane.b32.xlu2 %v4700_v33, %s3496_s27 }
 0x191   : > { %v4720_v30 = vpop.permute.xlu2 %1596 }
 0x192   : > { %6455 = vst [vmem:[#allocation129_spill] sm:$0xff] %v4720_v30  ;;  %1808 = vrot.lane.b32.xlu0 %v4715_v7, %s3496_s27  ;;  %1804 = vrot.lane.b32.xlu1 %v4718_v21, %s3496_s27  ;;  %v4739_v30 = vmul.f32 0.10936069, %v4193_v29  ;;  %v4757_v29 = vmul.f32 0.10936069, %v4301_v34  ;;  %v4950_v21 = vld [vmem:[#allocation7 + $0x20] sm:$0xff] }
 0x193   : > { %v4953_v7 = vmul.f32 0.21300554, %v4950_v21 }
 0x194   : > { %v4729_v26 = vpop.permute.xlu0 %1556  ;;  %v4731_v10 = vpop.permute.xlu1 %1552  ;;  %6460 = vst [vmem:[#allocation134_spill] sm:$0xff] %v4739_v30 }
 0x195   : > { %6457 = vst [vmem:[#allocation131_spill] sm:$0xff] %v4729_v26 }
 0x196   : > { %6458 = vst [vmem:[#allocation132_spill] sm:$0xff] %v4731_v10 }
 0x197   : > { %1812 = vrot.lane.b32.xlu2 %v4723_v62, %s3496_s27  ;;  %6465 = vst [vmem:[#allocation139_spill] sm:$0xff] %v4757_v29 }
 0x199   : > { %v4741_v9 = vpop.permute.xlu2 %1626 }
 0x19a   : > { %6461 = vst [vmem:[#allocation135_spill] sm:$0xff] %v4741_v9  ;;  %1838 = vrot.lane.b32.xlu0 %v4736_v39, %s3496_s27  ;;  %1810 = vrot.lane.b32.xlu1 %v4739_v30, %s3496_s27  ;;  %v4760_v9 = vmul.f32 0.10936069, %v4250_v41  ;;  %v4932_v39 = vld [vmem:[#allocation7 + $0x28] sm:$0xff] }
 0x19b   : > { %v4935_v62 = vmul.f32 0.21300554, %v4932_v39 }
 0x19c   : > { %v4750_v10 = vpop.permute.xlu0 %1586  ;;  %v4752_v26 = vpop.permute.xlu1 %1558  ;;  %6466 = vst [vmem:[#allocation140_spill] sm:$0xff] %v4760_v9 }
 0x19d   : > { %6463 = vst [vmem:[#allocation137_spill] sm:$0xff] %v4750_v10 }
 0x19e   : > { %6464 = vst [vmem:[#allocation138_spill] sm:$0xff] %v4752_v26 }
 0x19f   : > { %1842 = vrot.lane.b32.xlu2 %v4744_v60, %s3496_s27  ;;  %v4925_v60 = vmul.f32 0.21300554, %v4712_v0 }
 0x1a1   : > { %v4762_v45 = vpop.permute.xlu2 %1632 }
 0x1a2   : > { %6467 = vst [vmem:[#allocation141_spill] sm:$0xff] %v4762_v45  ;;  %1844 = vrot.lane.b32.xlu0 %v4757_v29, %s3496_s27  ;;  %1840 = vrot.lane.b32.xlu1 %v4760_v9, %s3496_s27  ;;  %v4781_v45 = vmul.f32 0.10936069, %v4326_v14  ;;  %v4912_v29 = vmul.f32 0.21300554, %v4493_v3 }
 0x1a4   : > { %v4771_v26 = vpop.permute.xlu0 %1592  ;;  %v4773_v10 = vpop.permute.xlu1 %1588  ;;  %6472 = vst [vmem:[#allocation146_spill] sm:$0xff] %v4781_v45 }
 0x1a5   : > { %6469 = vst [vmem:[#allocation143_spill] sm:$0xff] %v4771_v26 }
 0x1a6   : > { %6470 = vst [vmem:[#allocation144_spill] sm:$0xff] %v4773_v10 }
 0x1a7   : > { %1848 = vrot.lane.b32.xlu2 %v4765_v22, %s3496_s27  ;;  %v4904_v22 = vmul.f32 0.21300554, %v4689_v17 }
 0x1a9   : > { %v4783_v35 = vpop.permute.xlu2 %1662 }
 0x1aa   : > { %6473 = vst [vmem:[#allocation147_spill] sm:$0xff] %v4783_v35  ;;  %1874 = vrot.lane.b32.xlu0 %v4778_v56, %s3496_s27  ;;  %1846 = vrot.lane.b32.xlu1 %v4781_v45, %s3496_s27  ;;  %v4802_v35 = vmul.f32 0.10936069, %v4353_v57  ;;  %v4891_v56 = vmul.f32 0.21300554, %v4468_v50 }
 0x1ac   : > { %v4792_v10 = vpop.permute.xlu0 %1622  ;;  %v4794_v26 = vpop.permute.xlu1 %1594  ;;  %6478 = vst [vmem:[#allocation152_spill] sm:$0xff] %v4802_v35 }
 0x1ad   : > { %6475 = vst [vmem:[#allocation149_spill] sm:$0xff] %v4792_v10 }
 0x1ae   : > { %6476 = vst [vmem:[#allocation150_spill] sm:$0xff] %v4794_v26 }
 0x1af   : > { %1878 = vrot.lane.b32.xlu2 %v4786_v2, %s3496_s27  ;;  %v4883_v2 = vmul.f32 0.21300554, %v4458_v40 }
 0x1b1   : > { %v4804_v49 = vpop.permute.xlu2 %1668 }
 0x1b2   : > { %6479 = vst [vmem:[#allocation153_spill] sm:$0xff] %v4804_v49  ;;  %1880 = vrot.lane.b32.xlu0 %v4799_v47, %s3496_s27  ;;  %1876 = vrot.lane.b32.xlu1 %v4802_v35, %s3496_s27  ;;  %v4823_v49 = vmul.f32 0.10936069, %v4394_v11  ;;  %v4870_v47 = vmul.f32 0.21300554, %v4443_v13 }
 0x1b4   : > { %v4813_v26 = vpop.permute.xlu0 %1628  ;;  %v4815_v10 = vpop.permute.xlu1 %1624  ;;  %6483 = vst [vmem:[#allocation157_spill] sm:$0xff] %v4823_v49 }
 0x1b5   : > { %6481 = vst [vmem:[#allocation155_spill] sm:$0xff] %v4813_v26 }
 0x1b6   : > { %6482 = vst [vmem:[#allocation156_spill] sm:$0xff] %v4815_v10 }
 0x1b7   : > { %1884 = vrot.lane.b32.xlu2 %v4807_v4, %s3496_s27  ;;  %v4849_v4 = vmul.f32 0.21300554, %v4422_v51 }
 0x1b9   : > { %v4825_v31 = vpop.permute.xlu2 %1698 }
 0x1ba   : > { %6484 = vst [vmem:[#allocation158_spill] sm:$0xff] %v4825_v31  ;;  %1910 = vrot.lane.b32.xlu0 %v4820_v59, %s3497_s7  ;;  %1882 = vrot.lane.b32.xlu1 %v4823_v49, %s3496_s27  ;;  %v4844_v31 = vmul.f32 0.21300554, %v4415_v58  ;;  %v4862_v49 = vmul.f32 0.21300554, %v4433_v15  ;;  %s3434_s27 = sshra.s32 %s3113_s25, 4  ;;  %s3435_s27 = int_to_ptr.hbm [resolvable:$true] %s3434_s27 }
 0x1bb   : > { %v2116_v58 = vmul.f32 0.26601171, %v4443_v13  ;;  %p3441_p2 = scmp.lt.s32.totalorder %s3435_s27, %s6235_s2 }
 0x1bc   : > { %v4834_v10 = vpop.permute.xlu0 %1658  ;;  %v4836_v26 = vpop.permute.xlu1 %1630 }
 0x1bd   : > { %6485 = vst [vmem:[#allocation159_spill] sm:$0xff] %v4834_v10 }
 0x1be   : > { %6486 = vst [vmem:[#allocation160_spill] sm:$0xff] %v4836_v26 }
 0x1bf   : > { %1914 = vrot.lane.b32.xlu2 %v4828_v20, %s3497_s7 }
 0x1c1   : > { %v4846_v28 = vpop.permute.xlu2 %1704 }
 0x1c2   : > { %6487 = vst [vmem:[#allocation161_spill] sm:$0xff] %v4846_v28  ;;  %1916 = vrot.lane.b32.xlu0 %v4841_v42, %s3497_s7  ;;  %1912 = vrot.lane.b32.xlu1 %v4844_v31, %s3497_s7  ;;  %v4865_v28 = vmul.f32 0.21300554, %v4438_v24  ;;  %v2119_v24 = vmul.f32 0.26601171, %v4468_v50 }
 0x1c4   : > { %v4855_v26 = vpop.permute.xlu0 %1664  ;;  %v4857_v10 = vpop.permute.xlu1 %1660 }
 0x1c5   : > { %6488 = vst [vmem:[#allocation162_spill] sm:$0xff] %v4855_v26 }
 0x1c6   : > { %6489 = vst [vmem:[#allocation163_spill] sm:$0xff] %v4857_v10 }
 0x1c7   : > { %1920 = vrot.lane.b32.xlu2 %v4849_v4, %s3497_s7 }
 0x1c9   : > { %v4867_v35 = vpop.permute.xlu2 %1734 }
 0x1ca   : > { %6490 = vst [vmem:[#allocation164_spill] sm:$0xff] %v4867_v35  ;;  %1946 = vrot.lane.b32.xlu0 %v4862_v49, %s3497_s7  ;;  %1918 = vrot.lane.b32.xlu1 %v4865_v28, %s3497_s7  ;;  %v4886_v35 = vmul.f32 0.21300554, %v4463_v48 }
 0x1cc   : > { %v4876_v10 = vpop.permute.xlu0 %1694  ;;  %v4878_v26 = vpop.permute.xlu1 %1666 }
 0x1cd   : > { %6491 = vst [vmem:[#allocation165_spill] sm:$0xff] %v4876_v10 }
 0x1ce   : > { %6492 = vst [vmem:[#allocation166_spill] sm:$0xff] %v4878_v26 }
 0x1cf   : > { %1950 = vrot.lane.b32.xlu2 %v4870_v47, %s3497_s7 }
 0x1d1   : > { %v4888_v45 = vpop.permute.xlu2 %1740 }
 0x1d2   : > { %6493 = vst [vmem:[#allocation167_spill] sm:$0xff] %v4888_v45  ;;  %1952 = vrot.lane.b32.xlu0 %v4883_v2, %s3497_s7  ;;  %1948 = vrot.lane.b32.xlu1 %v4886_v35, %s3497_s7  ;;  %v4907_v45 = vmul.f32 0.21300554, %v4488_v44 }
 0x1d4   : > { %v4897_v26 = vpop.permute.xlu0 %1700  ;;  %v4899_v10 = vpop.permute.xlu1 %1696 }
 0x1d5   : > { %6494 = vst [vmem:[#allocation168_spill] sm:$0xff] %v4897_v26 }
 0x1d6   : > { %6495 = vst [vmem:[#allocation169_spill] sm:$0xff] %v4899_v10 }
 0x1d7   : > { %1956 = vrot.lane.b32.xlu2 %v4891_v56, %s3497_s7 }
 0x1d9   : > { %v4909_v9 = vpop.permute.xlu2 %1770 }
 0x1da   : > { %6496 = vst [vmem:[#allocation170_spill] sm:$0xff] %v4909_v9  ;;  %1982 = vrot.lane.b32.xlu0 %v4904_v22, %s3497_s7  ;;  %1954 = vrot.lane.b32.xlu1 %v4907_v45, %s3497_s7  ;;  %v4928_v9 = vmul.f32 0.21300554, %v4511_v19 }
 0x1dc   : > { %v4918_v10 = vpop.permute.xlu0 %1730  ;;  %v4920_v26 = vpop.permute.xlu1 %1702 }
 0x1dd   : > { %6497 = vst [vmem:[#allocation171_spill] sm:$0xff] %v4918_v10 }
 0x1de   : > { %6498 = vst [vmem:[#allocation172_spill] sm:$0xff] %v4920_v26 }
 0x1df   : > { %1986 = vrot.lane.b32.xlu2 %v4912_v29, %s3497_s7 }
 0x1e1   : > { %v4930_v30 = vpop.permute.xlu2 %1776 }
 0x1e2   : > { %6499 = vst [vmem:[#allocation173_spill] sm:$0xff] %v4930_v30  ;;  %1988 = vrot.lane.b32.xlu0 %v4925_v60, %s3497_s7  ;;  %1984 = vrot.lane.b32.xlu1 %v4928_v9, %s3497_s7  ;;  %v4948_v30 = vmul.f32 0.21300554, %v4271_v36 }
 0x1e4   : > { %v4941_v26 = vpop.permute.xlu0 %1736  ;;  %v4943_v10 = vpop.permute.xlu1 %1732 }
 0x1e5   : > { %6500 = vst [vmem:[#allocation174_spill] sm:$0xff] %v4941_v26  ;;  %v4973_v26 = vmul.f32 0.21300554, %v4301_v34 }
 0x1e6   : > { %6501 = vst [vmem:[#allocation175_spill] sm:$0xff] %v4943_v10 }
 0x1e7   : > { %1992 = vrot.lane.b32.xlu2 %v4935_v62, %s3497_s7 }
 0x1e9   : > { %v4955_v33 = vpop.permute.xlu2 %1806 }
 0x1ea   : > { %6502 = vst [vmem:[#allocation176_spill] sm:$0xff] %v4955_v33  ;;  %2018 = vrot.lane.b32.xlu0 %v4948_v30, %s3497_s7  ;;  %1990 = vrot.lane.b32.xlu1 %v4953_v7, %s3497_s7  ;;  %v4976_v33 = vmul.f32 0.21300554, %v4250_v41  ;;  %v4994_v41 = vmul.f32 0.21300554, %v4361_v16 }
 0x1ec   : > { %v4966_v36 = vpop.permute.xlu0 %1766  ;;  %v4968_v10 = vpop.permute.xlu1 %1738 }
 0x1ed   : > { %6503 = vst [vmem:[#allocation177_spill] sm:$0xff] %v4966_v36 }
 0x1ee   : > { %6504 = vst [vmem:[#allocation178_spill] sm:$0xff] %v4968_v10 }
 0x1ef   : > { %2022 = vrot.lane.b32.xlu2 %v4960_v37, %s3497_s7 }
 0x1f1   : > { %v4978_v27 = vpop.permute.xlu2 %1812 }
 0x1f2   : > { %6505 = vst [vmem:[#allocation179_spill] sm:$0xff] %v4978_v27  ;;  %2024 = vrot.lane.b32.xlu0 %v4973_v26, %s3497_s7  ;;  %2020 = vrot.lane.b32.xlu1 %v4976_v33, %s3497_s7  ;;  %v4997_v27 = vmul.f32 0.21300554, %v4326_v14 }
 0x1f4   : > { %v4987_v10 = vpop.permute.xlu0 %1772  ;;  %v4989_v36 = vpop.permute.xlu1 %1768 }
 0x1f5   : > { %6506 = vst [vmem:[#allocation180_spill] sm:$0xff] %v4987_v10 }
 0x1f6   : > { %6507 = vst [vmem:[#allocation181_spill] sm:$0xff] %v4989_v36 }
 0x1f7   : > { %2028 = vrot.lane.b32.xlu2 %v4981_v38, %s3497_s7 }
 0x1f9   : > { %v4999_v18 = vpop.permute.xlu2 %1842 }
 0x1fa   : > { %6508 = vst [vmem:[#allocation182_spill] sm:$0xff] %v4999_v18  ;;  %2054 = vrot.lane.b32.xlu0 %v4994_v41, %s3497_s7  ;;  %2026 = vrot.lane.b32.xlu1 %v4997_v27, %s3497_s7  ;;  %v5018_v18 = vmul.f32 0.21300554, %v4353_v57 }
 0x1fc   : > { %v5008_v36 = vpop.permute.xlu0 %1802  ;;  %v5010_v10 = vpop.permute.xlu1 %1774 }
 0x1fd   : > { %6509 = vst [vmem:[#allocation183_spill] sm:$0xff] %v5008_v36 }
 0x1fe   : > { %6510 = vst [vmem:[#allocation184_spill] sm:$0xff] %v5010_v10 }
 0x1ff   : > { %2058 = vrot.lane.b32.xlu2 %v5002_v52, %s3497_s7 }
 0x201   : > { %v5020_v25 = vpop.permute.xlu2 %1848 }
 0x202   : > { %6511 = vst [vmem:[#allocation185_spill] sm:$0xff] %v5020_v25  ;;  %2060 = vrot.lane.b32.xlu0 %v5015_v46, %s3497_s7  ;;  %2056 = vrot.lane.b32.xlu1 %v5018_v18, %s3497_s7  ;;  %v5037_v25 = vmul.f32 0.21300554, %v4394_v11 }
 0x204   : > { %v5029_v10 = vpop.permute.xlu0 %1808  ;;  %v5031_v36 = vpop.permute.xlu1 %1804 }
 0x205   : > { %6513 = vst [vmem:[#allocation187_spill] sm:$0xff] %v5029_v10 }
 0x206   : > { %6514 = vst [vmem:[#allocation188_spill] sm:$0xff] %v5031_v36 }
 0x207   : > { %2064 = vrot.lane.b32.xlu2 %v5023_v12, %s3497_s7 }
 0x209   : > { %v5039_v8 = vpop.permute.xlu2 %1878 }
 0x20a   : > { %6515 = vst [vmem:[#allocation189_spill] sm:$0xff] %v5039_v8  ;;  %2090 = vrot.lane.b32.xlu0 %v2078_v23, %s3498_s14  ;;  %2062 = vrot.lane.b32.xlu1 %v5037_v25, %s3497_s7  ;;  %s3436_s7 = scalar_lea.hbm %s3435_s27, 8 }
 0x20b   : > { %p3437_p6 = scmp.ne.s32.totalorder %s3435_s27, %s3436_s7 }
 0x20c   : > { %v5045_v10 = vpop.permute.xlu0 %1838  ;;  %v5047_v36 = vpop.permute.xlu1 %1810 }
 0x20d   : > { %6516 = vst [vmem:[#allocation190_spill] sm:$0xff] %v5045_v10  ;;  %p3438_p13 = pnand %p3437_p6, %p3565_p11 }
 0x20e   : > { %6517 = vst [vmem:[#allocation191_spill] sm:$0xff] %v5047_v36 }
 0x20f   : > { %2094 = vrot.lane.b32.xlu2 %v2080_v32, %s3498_s14  ;;  %v2114_v32 = vmul.f32 0.26601171, %v4433_v15  ;;  %v2115_v15 = vmul.f32 0.26601171, %v4463_v48  ;;  %v2152_v48 = vmul.f32 0.26601171, %v4493_v3  ;;  %p3439_p1 = pneg %p3438_p13 }
 0x211   : > { %v5052_v12 = vpop.permute.xlu2 %1884 }
 0x212   : > { %6518 = vst [vmem:[#allocation192_spill] sm:$0xff] %v5052_v12  ;;  %2096 = vrot.lane.b32.xlu0 %v2081_v54, %s3498_s14  ;;  %2092 = vrot.lane.b32.xlu1 %v2079_v63, %s3498_s14 }
 0x214   : > { %v5057_v23 = vpop.permute.xlu0 %1844  ;;  %v5059_v8 = vpop.permute.xlu1 %1840 }
 0x215   : > { %6519 = vst [vmem:[#allocation193_spill] sm:$0xff] %v5057_v23  ;;  %v2191_v23 = vmul.f32 0.26601171, %v4293_v43 }
 0x216   : > { %6520 = vst [vmem:[#allocation194_spill] sm:$0xff] %v5059_v8 }
 0x217   : > { %2100 = vrot.lane.b32.xlu2 %v2083_v55, %s3498_s14  ;;  %v2117_v55 = vmul.f32 0.26601171, %v4458_v40  ;;  %v2118_v40 = vmul.f32 0.26601171, %v4488_v44  ;;  %v2155_v44 = vmul.f32 0.26601171, %v4932_v39 }
 0x219   : > { %v5064_v36 = vpop.permute.xlu2 %1914 }
 0x21a   : > { %6521 = vst [vmem:[#allocation195_spill] sm:$0xff] %v5064_v36  ;;  %2126 = vrot.lane.b32.xlu0 %v2114_v32, %s3498_s14  ;;  %2098 = vrot.lane.b32.xlu1 %v2082_v1, %s3498_s14 }
 0x21c   : > { %v5069_v54 = vpop.permute.xlu0 %1874  ;;  %v5071_v63 = vpop.permute.xlu1 %1846 }
 0x21d   : > { %6522 = vst [vmem:[#allocation196_spill] sm:$0xff] %v5069_v54  ;;  %v2188_v54 = vmul.f32 0.26601171, %v4957_v6 }
 0x21e   : > { %6523 = vst [vmem:[#allocation197_spill] sm:$0xff] %v5071_v63 }
 0x21f   : > { %2130 = vrot.lane.b32.xlu2 %v2116_v58, %s3498_s14  ;;  %v2150_v58 = vmul.f32 0.26601171, %v4689_v17 }
 0x221   : > { %v5076_v8 = vpop.permute.xlu2 %1920 }
 0x222   : > { %2132 = vrot.lane.b32.xlu0 %v2117_v55, %s3498_s14  ;;  %2128 = vrot.lane.b32.xlu1 %v2115_v15, %s3498_s14 }
 0x224   : > { %v5081_v32 = vpop.permute.xlu0 %1880  ;;  %v5083_v1 = vpop.permute.xlu1 %1876 }
 0x225   : > { %6524 = vst [vmem:[#allocation198_spill] sm:$0xff] %v5081_v32 }
 0x226   : > { %6525 = vst [vmem:[#allocation199_spill] sm:$0xff] %v5083_v1  ;;  %v2151_v1 = vmul.f32 0.26601171, %v4511_v19  ;;  %v2154_v19 = vmul.f32 0.26601171, %v4950_v21 }
 0x227   : > { %2136 = vrot.lane.b32.xlu2 %v2119_v24, %s3498_s14  ;;  %v2153_v24 = vmul.f32 0.26601171, %v4712_v0 }
 0x229   : > { %v5088_v63 = vpop.permute.xlu2 %1950 }
 0x22a   : > { %2162 = vrot.lane.b32.xlu0 %v2150_v58, %s3498_s14  ;;  %2134 = vrot.lane.b32.xlu1 %v2118_v40, %s3498_s14 }
 0x22c   : > { %v5093_v55 = vpop.permute.xlu0 %1910  ;;  %v5095_v15 = vpop.permute.xlu1 %1882 }
 0x22d   : > { %6526 = vst [vmem:[#allocation200_spill] sm:$0xff] %v5093_v55 }
 0x22e   : > { %6527 = vst [vmem:[#allocation201_spill] sm:$0xff] %v5095_v15  ;;  %v5110_v15 = vld [vmem:[#allocation8] sm:$0xff] }
 0x22f   : > { %2166 = vrot.lane.b32.xlu2 %v2152_v48, %s3498_s14  ;;  %v2186_v48 = vmul.f32 0.26601171, %v5110_v15 }
 0x231   : > { %v5100_v32 = vpop.permute.xlu2 %1956 }
 0x232   : > { %2168 = vrot.lane.b32.xlu0 %v2153_v24, %s3498_s14  ;;  %2164 = vrot.lane.b32.xlu1 %v2151_v1, %s3498_s14 }
 0x234   : > { %v5105_v58 = vpop.permute.xlu0 %1916  ;;  %v5107_v40 = vpop.permute.xlu1 %1912 }
 0x235   : > { %6528 = vst [vmem:[#allocation202_spill] sm:$0xff] %v5105_v58 }
 0x236   : > { %6529 = vst [vmem:[#allocation203_spill] sm:$0xff] %v5107_v40  ;;  %v5125_v40 = vld [vmem:[#allocation8 + $0x8] sm:$0xff] }
 0x237   : > { %2172 = vrot.lane.b32.xlu2 %v2155_v44, %s3498_s14  ;;  %v2189_v44 = vmul.f32 0.26601171, %v4301_v34  ;;  %6530 = vst [vmem:[#allocation204_spill] sm:$0xff] %v5125_v40  ;;  %v2187_v58 = vmul.f32 0.26601171, %v5125_v40 }
 0x238   : > { %v2222_v34 = vmul.f32 0.26601171, %v4361_v16  ;;  %v2224_v40 = vmul.f32 0.26601171, %v4342_v61  ;;  %v2223_v16 = vmul.f32 0.26601171, %v4353_v57 }
 0x239   : > { %v5114_v55 = vpop.permute.xlu2 %1986 }
 0x23a   : > { %2198 = vrot.lane.b32.xlu0 %v2186_v48, %s3498_s14  ;;  %2170 = vrot.lane.b32.xlu1 %v2154_v19, %s3498_s14 }
 0x23c   : > { %v5119_v1 = vpop.permute.xlu0 %1946  ;;  %v5121_v24 = vpop.permute.xlu1 %1918 }
 0x23f   : > { %2202 = vrot.lane.b32.xlu2 %v2188_v54, %s3498_s14  ;;  %v2190_v54 = vmul.f32 0.26601171, %v4326_v14  ;;  %v2227_v14 = vmul.f32 0.26601171, %v4380_v5 }
 0x241   : > { %v5128_v36 = vpop.permute.xlu2 %1992 }
 0x242   : > { %2204 = vrot.lane.b32.xlu0 %v2189_v44, %s3498_s14  ;;  %2200 = vrot.lane.b32.xlu1 %v2187_v58, %s3498_s14 }
 0x244   : > { %v5133_v48 = vpop.permute.xlu0 %1952  ;;  %v5135_v19 = vpop.permute.xlu1 %1948 }
 0x247   : > { %2208 = vrot.lane.b32.xlu2 %v2191_v23, %s3498_s14  ;;  %v2225_v23 = vmul.f32 0.26601171, %v4371_v53 }
 0x249   : > { %v5140_v12 = vpop.permute.xlu2 %2022 }
 0x24a   : > { %2234 = vrot.lane.b32.xlu0 %v2222_v34, %s3498_s14  ;;  %2206 = vrot.lane.b32.xlu1 %v2190_v54, %s3498_s14 }
 0x24c   : > { %v5145_v43 = vpop.permute.xlu0 %1982  ;;  %v5147_v58 = vpop.permute.xlu1 %1954 }
 0x24f   : > { %2238 = vrot.lane.b32.xlu2 %v2224_v40, %s3498_s14  ;;  %v2226_v40 = vmul.f32 0.26601171, %v4394_v11 }
 0x251   : > { %v5152_v44 = vpop.permute.xlu2 %2028 }
 0x252   : > { %2240 = vrot.lane.b32.xlu0 %v2225_v23, %s3498_s14  ;;  %2236 = vrot.lane.b32.xlu1 %v2223_v16, %s3498_s14 }
 0x254   : > { %v5157_v61 = vpop.permute.xlu0 %1988  ;;  %v5159_v34 = vpop.permute.xlu1 %1984 }
 0x257   : > { %2244 = vrot.lane.b32.xlu2 %v2227_v14, %s3498_s14 }
 0x259   : > { %v5163_v54 = vpop.permute.xlu2 %2058 }
 0x25a   : > { %6531 = vst [vmem:[#allocation205_spill] sm:$0xff] %v5163_v54  ;;  %2258 = vrot.lane.b32.xlu0 %v4820_v59, %s3499_s16  ;;  %2242 = vrot.lane.b32.xlu1 %v2226_v40, %s3498_s14 }
 0x25c   : > { %v5168_v57 = vpop.permute.xlu0 %2018  ;;  %v5170_v53 = vpop.permute.xlu1 %1990 }
 0x25d   : > { %6532 = vst [vmem:[#allocation206_spill] sm:$0xff] %v5168_v57  ;;  %v6596_v57 = vld [vmem:[#allocation157_spill] sm:$0xff] }
 0x25e   : > { %6533 = vst [vmem:[#allocation207_spill] sm:$0xff] %v5170_v53 }
 0x25f   : > { %2262 = vrot.lane.b32.xlu2 %v4828_v20, %s3499_s16 }
 0x261   : > { %v5174_v5 = vpop.permute.xlu2 %2064 }
 0x262   : > { %6534 = vst [vmem:[#allocation208_spill] sm:$0xff] %v5174_v5  ;;  %2264 = vrot.lane.b32.xlu0 %v4841_v42, %s3499_s16  ;;  %2260 = vrot.lane.b32.xlu1 %v4844_v31, %s3499_s16  ;;  %v6589_v5 = vld [vmem:[#allocation151_spill] sm:$0xff] }
 0x264   : > { %v5180_v11 = vpop.permute.xlu0 %2024  ;;  %v5182_v59 = vpop.permute.xlu1 %2020 }
 0x265   : > { %6535 = vst [vmem:[#allocation209_spill] sm:$0xff] %v5180_v11  ;;  %v6586_v11 = vld [vmem:[#allocation145_spill] sm:$0xff] }
 0x266   : > { %6536 = vst [vmem:[#allocation210_spill] sm:$0xff] %v5182_v59 }
 0x267   : > { %2268 = vrot.lane.b32.xlu2 %v4849_v4, %s3499_s16 }
 0x269   : > { %v5186_v23 = vpop.permute.xlu2 %2094 }
 0x26a   : > { %6537 = vst [vmem:[#allocation211_spill] sm:$0xff] %v5186_v23  ;;  %2282 = vrot.lane.b32.xlu0 %v4862_v49, %s3499_s16  ;;  %2266 = vrot.lane.b32.xlu1 %v4865_v28, %s3499_s16 }
 0x26c   : > { %v5192_v20 = vpop.permute.xlu0 %2054  ;;  %v5194_v42 = vpop.permute.xlu1 %2026 }
 0x26d   : > { %6538 = vst [vmem:[#allocation212_spill] sm:$0xff] %v5192_v20 }
 0x26e   : > { %6539 = vst [vmem:[#allocation213_spill] sm:$0xff] %v5194_v42  ;;  %v6565_v42 = vld [vmem:[#allocation115_spill] sm:$0xff] }
 0x26f   : > { %2286 = vrot.lane.b32.xlu2 %v4870_v47, %s3499_s16 }
 0x271   : > { %v5198_v31 = vpop.permute.xlu2 %2100 }
 0x272   : > { %2288 = vrot.lane.b32.xlu0 %v4883_v2, %s3499_s16  ;;  %2284 = vrot.lane.b32.xlu1 %v4886_v35, %s3499_s16 }
 0x274   : > { %v5204_v4 = vpop.permute.xlu0 %2060  ;;  %v5206_v49 = vpop.permute.xlu1 %2056 }
 0x275   : > { %6540 = vst [vmem:[#allocation214_spill] sm:$0xff] %v5204_v4 }
 0x276   : > { %6541 = vst [vmem:[#allocation215_spill] sm:$0xff] %v5206_v49 }
 0x277   : > { %2292 = vrot.lane.b32.xlu2 %v4891_v56, %s3499_s16 }
 0x279   : > { %v5210_v28 = vpop.permute.xlu2 %2130 }
 0x27a   : > { %2306 = vrot.lane.b32.xlu0 %v4904_v22, %s3499_s16  ;;  %2290 = vrot.lane.b32.xlu1 %v4907_v45, %s3499_s16 }
 0x27c   : > { %v5216_v47 = vpop.permute.xlu0 %2090  ;;  %v5218_v2 = vpop.permute.xlu1 %2062 }
 0x27d   : > { %6542 = vst [vmem:[#allocation216_spill] sm:$0xff] %v5216_v47  ;;  %v6560_v47 = vld [vmem:[#allocation109_spill] sm:$0xff] }
 0x27e   : > { %6543 = vst [vmem:[#allocation217_spill] sm:$0xff] %v5218_v2 }
 0x27f   : > { %2310 = vrot.lane.b32.xlu2 %v4912_v29, %s3499_s16 }
 0x281   : > { %v5222_v35 = vpop.permute.xlu2 %2136 }
 0x282   : > { %2312 = vrot.lane.b32.xlu0 %v4925_v60, %s3499_s16  ;;  %2308 = vrot.lane.b32.xlu1 %v4928_v9, %s3499_s16 }
 0x284   : > { %v5228_v56 = vpop.permute.xlu0 %2096  ;;  %v5230_v22 = vpop.permute.xlu1 %2092 }
 0x285   : > { %6544 = vst [vmem:[#allocation218_spill] sm:$0xff] %v5228_v56 }
 0x286   : > { %6545 = vst [vmem:[#allocation219_spill] sm:$0xff] %v5230_v22  ;;  %v6555_v22 = vld [vmem:[#allocation104_spill] sm:$0xff] }
 0x287   : > { %2316 = vrot.lane.b32.xlu2 %v4935_v62, %s3499_s16 }
 0x289   : > { %v5234_v45 = vpop.permute.xlu2 %2166 }
 0x28a   : > { %2330 = vrot.lane.b32.xlu0 %v4948_v30, %s3499_s16  ;;  %2314 = vrot.lane.b32.xlu1 %v4953_v7, %s3499_s16 }
 0x28c   : > { %v5240_v29 = vpop.permute.xlu0 %2126  ;;  %v5242_v60 = vpop.permute.xlu1 %2098 }
 0x28f   : > { %2334 = vrot.lane.b32.xlu2 %v4960_v37, %s3499_s16 }
 0x291   : > { %v5246_v9 = vpop.permute.xlu2 %2172 }
 0x292   : > { %2336 = vrot.lane.b32.xlu0 %v4973_v26, %s3499_s16  ;;  %2332 = vrot.lane.b32.xlu1 %v4976_v33, %s3499_s16 }
 0x294   : > { %v5252_v62 = vpop.permute.xlu0 %2132  ;;  %v5254_v30 = vpop.permute.xlu1 %2128 }
 0x297   : > { %2340 = vrot.lane.b32.xlu2 %v4981_v38, %s3499_s16 }
 0x299   : > { %v5258_v7 = vpop.permute.xlu2 %2202 }
 0x29a   : > { %2354 = vrot.lane.b32.xlu0 %v4994_v41, %s3499_s16  ;;  %2338 = vrot.lane.b32.xlu1 %v4997_v27, %s3499_s16  ;;  %v6547_v27 = vld [vmem:[#allocation186_spill] sm:$0xff] }
 0x29c   : > { %v5264_v37 = vpop.permute.xlu0 %2162  ;;  %v5266_v26 = vpop.permute.xlu1 %2134 }
 0x29f   : > { %2358 = vrot.lane.b32.xlu2 %v5002_v52, %s3499_s16  ;;  %v6549_v52 = vld [vmem:[#allocation99_spill] sm:$0xff] }
 0x2a1   : > { %v5270_v33 = vpop.permute.xlu2 %2208 }
 0x2a2   : > { %2360 = vrot.lane.b32.xlu0 %v5015_v46, %s3499_s16  ;;  %2356 = vrot.lane.b32.xlu1 %v5018_v18, %s3499_s16  ;;  %v6552_v18 = vld [vmem:[#allocation102_spill] sm:$0xff] }
 0x2a4   : > { %v5276_v38 = vpop.permute.xlu0 %2168  ;;  %v5278_v41 = vpop.permute.xlu1 %2164 }
 0x2a5   : > { %6546 = vst [vmem:[#allocation220_spill] sm:$0xff] %v5278_v41  ;;  %v5435_v41 = vmul.f32 0.0010283801, %v4443_v13  ;;  %v6616_v13 = vld [vmem:[#allocation58_spill] sm:$0xff] }
 0x2a7   : > { %2364 = vrot.lane.b32.xlu2 %v6547_v27, %s3499_s16  ;;  %v6554_v27 = vld [vmem:[#allocation103_spill] sm:$0xff]  ;;  %6610 = vst [vmem:[#allocation145_spill] sm:$0xff] %v5435_v41 }
 0x2a9   : > { %v5282_v16 = vpop.permute.xlu2 %2238 }
 0x2aa   : > { %6548 = vst [vmem:[#allocation186_spill] sm:$0xff] %v5282_v16  ;;  %2378 = vrot.lane.b32.xlu0 %v6549_v52, %s3500_s17  ;;  %2362 = vrot.lane.b32.xlu1 %v5037_v25, %s3499_s16  ;;  %v6558_v25 = vld [vmem:[#allocation107_spill] sm:$0xff]  ;;  %s3440_s16 = scalar_lea.hbm %s6235_s2, 16 }
 0x2ab   : > { %p3442_p3 = scmp.lt.s32.totalorder %s3440_s16, %s3436_s7 }
 0x2ac   : > { %v5288_v46 = vpop.permute.xlu0 %2198  ;;  %v5290_v14 = vpop.permute.xlu1 %2170 }
 0x2ad   : > { %6550 = vst [vmem:[#allocation99_spill] sm:$0xff] %v5288_v46  ;;  %p3443_p4 = por %p3442_p3, %p3441_p2 }
 0x2ae   : > { %6551 = vst [vmem:[#allocation221_spill] sm:$0xff] %v5290_v14 }
 0x2af   : > { %2382 = vrot.lane.b32.xlu2 %v6552_v18, %s3500_s17  ;;  %v6561_v18 = vld [vmem:[#allocation110_spill] sm:$0xff]  ;;  %p3444_p5 = pnand %p3443_p4, %p3439_p1 }
 0x2b1   : > { %v5294_v40 = vpop.permute.xlu2 %2244 }
 0x2b2   : > { %6553 = vst [vmem:[#allocation102_spill] sm:$0xff] %v5294_v40  ;;  %2384 = vrot.lane.b32.xlu0 %v6554_v27, %s3500_s17  ;;  %2380 = vrot.lane.b32.xlu1 %v6555_v22, %s3500_s17  ;;  %v6564_v22 = vld [vmem:[#allocation113_spill] sm:$0xff] }
 0x2b4   : > { %v5300_v56 = vpop.permute.xlu0 %2204  ;;  %v5302_v52 = vpop.permute.xlu1 %2200 }
 0x2b5   : > { %6556 = vst [vmem:[#allocation103_spill] sm:$0xff] %v5300_v56 }
 0x2b6   : > { %6557 = vst [vmem:[#allocation104_spill] sm:$0xff] %v5302_v52 }
 0x2b7   : > { %2388 = vrot.lane.b32.xlu2 %v6558_v25, %s3500_s17  ;;  %v6566_v25 = vld [vmem:[#allocation116_spill] sm:$0xff] }
 0x2b9   : > { %v5306_v2 = vpop.permute.xlu2 %2262 }
 0x2ba   : > { %6559 = vst [vmem:[#allocation107_spill] sm:$0xff] %v5306_v2  ;;  %2402 = vrot.lane.b32.xlu0 %v6560_v47, %s3500_s17  ;;  %2386 = vrot.lane.b32.xlu1 %v6561_v18, %s3500_s17  ;;  %v6569_v18 = vld [vmem:[#allocation118_spill] sm:$0xff] }
 0x2bc   : > { %v5312_v49 = vpop.permute.xlu0 %2234  ;;  %v5314_v27 = vpop.permute.xlu1 %2206 }
 0x2bd   : > { %6562 = vst [vmem:[#allocation109_spill] sm:$0xff] %v5312_v49 }
 0x2be   : > { %6563 = vst [vmem:[#allocation110_spill] sm:$0xff] %v5314_v27  ;;  %v6570_v27 = vld [vmem:[#allocation121_spill] sm:$0xff] }
 0x2bf   : > { %2406 = vrot.lane.b32.xlu2 %v6564_v22, %s3500_s17  ;;  %v6571_v22 = vld [vmem:[#allocation122_spill] sm:$0xff] }
 0x2c1   : > { %v5318_v4 = vpop.permute.xlu2 %2268 }
 0x2c2   : > { %2408 = vrot.lane.b32.xlu0 %v6565_v42, %s3500_s17  ;;  %2404 = vrot.lane.b32.xlu1 %v6566_v25, %s3500_s17  ;;  %v6574_v25 = vld [vmem:[#allocation124_spill] sm:$0xff] }
 0x2c4   : > { %v5324_v20 = vpop.permute.xlu0 %2240  ;;  %v5326_v47 = vpop.permute.xlu1 %2236 }
 0x2c5   : > { %6567 = vst [vmem:[#allocation113_spill] sm:$0xff] %v5324_v20 }
 0x2c6   : > { %6568 = vst [vmem:[#allocation115_spill] sm:$0xff] %v5326_v47  ;;  %v6575_v47 = vld [vmem:[#allocation127_spill] sm:$0xff] }
 0x2c7   : > { %2412 = vrot.lane.b32.xlu2 %v6569_v18, %s3500_s17  ;;  %v6576_v18 = vld [vmem:[#allocation128_spill] sm:$0xff] }
 0x2c9   : > { %v5330_v49 = vpop.permute.xlu2 %2286 }
 0x2ca   : > { %2426 = vrot.lane.b32.xlu0 %v6570_v27, %s3500_s17  ;;  %2410 = vrot.lane.b32.xlu1 %v6571_v22, %s3500_s17  ;;  %v6579_v22 = vld [vmem:[#allocation130_spill] sm:$0xff] }
 0x2cc   : > { %v5336_v2 = vpop.permute.xlu0 %2258  ;;  %v5338_v42 = vpop.permute.xlu1 %2242 }
 0x2cd   : > { %6572 = vst [vmem:[#allocation116_spill] sm:$0xff] %v5336_v2 }
 0x2ce   : > { %6573 = vst [vmem:[#allocation118_spill] sm:$0xff] %v5338_v42  ;;  %v6580_v42 = vld [vmem:[#allocation133_spill] sm:$0xff] }
 0x2cf   : > { %2430 = vrot.lane.b32.xlu2 %v6574_v25, %s3500_s17  ;;  %v6581_v25 = vld [vmem:[#allocation134_spill] sm:$0xff] }
 0x2d1   : > { %v5342_v20 = vpop.permute.xlu2 %2292 }
 0x2d2   : > { %2432 = vrot.lane.b32.xlu0 %v6575_v47, %s3500_s17  ;;  %2428 = vrot.lane.b32.xlu1 %v6576_v18, %s3500_s17  ;;  %v6582_v18 = vld [vmem:[#allocation136_spill] sm:$0xff] }
 0x2d4   : > { %v5348_v52 = vpop.permute.xlu0 %2264  ;;  %v5350_v27 = vpop.permute.xlu1 %2260 }
 0x2d5   : > { %6577 = vst [vmem:[#allocation121_spill] sm:$0xff] %v5348_v52 }
 0x2d6   : > { %6578 = vst [vmem:[#allocation122_spill] sm:$0xff] %v5350_v27  ;;  %v6583_v27 = vld [vmem:[#allocation139_spill] sm:$0xff] }
 0x2d7   : > { %2436 = vrot.lane.b32.xlu2 %v6579_v22, %s3500_s17  ;;  %v6584_v22 = vld [vmem:[#allocation140_spill] sm:$0xff] }
 0x2d9   : > { %v5354_v2 = vpop.permute.xlu2 %2310 }
 0x2da   : > { %2450 = vrot.lane.b32.xlu0 %v6580_v42, %s3500_s17  ;;  %2434 = vrot.lane.b32.xlu1 %v6581_v25, %s3500_s17  ;;  %v6585_v25 = vld [vmem:[#allocation142_spill] sm:$0xff] }
 0x2dc   : > { %v5360_v23 = vpop.permute.xlu0 %2282  ;;  %v5362_v47 = vpop.permute.xlu1 %2266 }
 0x2df   : > { %2454 = vrot.lane.b32.xlu2 %v6582_v18, %s3500_s17  ;;  %v6587_v18 = vld [vmem:[#allocation146_spill] sm:$0xff] }
 0x2e1   : > { %v5366_v52 = vpop.permute.xlu2 %2316 }
 0x2e2   : > { %2456 = vrot.lane.b32.xlu0 %v6583_v27, %s3500_s17  ;;  %2452 = vrot.lane.b32.xlu1 %v6584_v22, %s3500_s17  ;;  %v6588_v22 = vld [vmem:[#allocation148_spill] sm:$0xff] }
 0x2e4   : > { %v5372_v56 = vpop.permute.xlu0 %2288  ;;  %v5374_v42 = vpop.permute.xlu1 %2284 }
 0x2e7   : > { %2460 = vrot.lane.b32.xlu2 %v6585_v25, %s3500_s17  ;;  %v6590_v25 = vld [vmem:[#allocation152_spill] sm:$0xff] }
 0x2e9   : > { %v5378_v59 = vpop.permute.xlu2 %2334 }
 0x2ea   : > { %2474 = vrot.lane.b32.xlu0 %v6586_v11, %s3500_s17  ;;  %2458 = vrot.lane.b32.xlu1 %v6587_v18, %s3500_s17  ;;  %v6593_v18 = vld [vmem:[#allocation154_spill] sm:$0xff] }
 0x2ec   : > { %v5384_v40 = vpop.permute.xlu0 %2306  ;;  %v5386_v27 = vpop.permute.xlu1 %2290 }
 0x2ef   : > { %2478 = vrot.lane.b32.xlu2 %v6588_v22, %s3500_s17  ;;  %v6595_v22 = vld [vmem:[#allocation48_spill] sm:$0xff] }
 0x2f1   : > { %v5390_v14 = vpop.permute.xlu2 %2340 }
 0x2f2   : > { %2480 = vrot.lane.b32.xlu0 %v6589_v5, %s3500_s17  ;;  %2476 = vrot.lane.b32.xlu1 %v6590_v25, %s3500_s17  ;;  %v6599_v25 = vld [vmem:[#allocation51_spill] sm:$0xff] }
 0x2f4   : > { %v5396_v46 = vpop.permute.xlu0 %2312  ;;  %v5398_v11 = vpop.permute.xlu1 %2308 }
 0x2f5   : > { %6591 = vst [vmem:[#allocation124_spill] sm:$0xff] %v5396_v46 }
 0x2f6   : > { %6592 = vst [vmem:[#allocation127_spill] sm:$0xff] %v5398_v11 }
 0x2f7   : > { %2484 = vrot.lane.b32.xlu2 %v6593_v18, %s3500_s17  ;;  %v5417_v18 = vmul.f32 0.0010283801, %v4422_v51 }
 0x2f9   : > { %v5402_v53 = vpop.permute.xlu2 %2358  ;;  %6601 = vst [vmem:[#allocation136_spill] sm:$0xff] %v5417_v18 }
 0x2fa   : > { %6594 = vst [vmem:[#allocation128_spill] sm:$0xff] %v5402_v53  ;;  %2498 = vrot.lane.b32.xlu0 %v6595_v22, %s3501_s29  ;;  %2482 = vrot.lane.b32.xlu1 %v6596_v57, %s3500_s17  ;;  %v6602_v53 = vld [vmem:[#allocation52_spill] sm:$0xff]  ;;  %v6603_v22 = vld [vmem:[#allocation53_spill] sm:$0xff]  ;;  %v6605_v57 = vld [vmem:[#allocation54_spill] sm:$0xff] }
 0x2fc   : > { %v5408_v5 = vpop.permute.xlu0 %2330  ;;  %v5410_v16 = vpop.permute.xlu1 %2314 }
 0x2fd   : > { %6597 = vst [vmem:[#allocation130_spill] sm:$0xff] %v5408_v5  ;;  %v1393_v5 = vadd.f32 %v6605_v57, %v5417_v18  ;;  %v6613_v57 = vld [vmem:[#allocation57_spill] sm:$0xff] }
 0x2fe   : > { %6598 = vst [vmem:[#allocation133_spill] sm:$0xff] %v5410_v16 }
 0x2ff   : > { %2502 = vrot.lane.b32.xlu2 %v6599_v25, %s3501_s29  ;;  %v6607_v25 = vld [vmem:[#allocation55_spill] sm:$0xff] }
 0x301   : > { %v5414_v11 = vpop.permute.xlu2 %2364 }
 0x302   : > { %6600 = vst [vmem:[#allocation134_spill] sm:$0xff] %v5414_v11  ;;  %2504 = vrot.lane.b32.xlu0 %v6602_v53, %s3501_s29  ;;  %2500 = vrot.lane.b32.xlu1 %v6603_v22, %s3501_s29  ;;  %v6608_v11 = vld [vmem:[#allocation117_spill] sm:$0xff]  ;;  %v6611_v53 = vld [vmem:[#allocation167_spill] sm:$0xff]  ;;  %v6612_v22 = vld [vmem:[#allocation56_spill] sm:$0xff] }
 0x303   : > { %v1573_v46 = vadd.f32 %v6608_v11, %v1393_v5 }
 0x304   : > { %v5423_v10 = vpop.permute.xlu0 %2336  ;;  %v5427_v16 = vpop.permute.xlu1 %2332 }
 0x305   : > { %6604 = vst [vmem:[#allocation139_spill] sm:$0xff] %v5423_v10  ;;  %v1753_v54 = vadd.f32 %v6611_v53, %v1573_v46  ;;  %v6617_v46 = vld [vmem:[#allocation123_spill] sm:$0xff] }
 0x306   : > { %6606 = vst [vmem:[#allocation140_spill] sm:$0xff] %v5427_v16 }
 0x307   : > { %2508 = vrot.lane.b32.xlu2 %v6607_v25, %s3501_s29  ;;  %v1933_v10 = vadd.f32 %v5076_v8, %v1753_v54  ;;  %v6615_v25 = vld [vmem:[#allocation59_spill] sm:$0xff]  ;;  %v5455_v54 = vmul.f32 0.0010283801, %v4468_v50 }
 0x308   : > { %v1426_v11 = vadd.f32 %v6615_v25, %v5435_v41  ;;  %v6620_v25 = vld [vmem:[#allocation61_spill] sm:$0xff] }
 0x309   : > { %v5432_v51 = vpop.permute.xlu2 %2382  ;;  %v2113_v5 = vadd.f32 %v5198_v31, %v1933_v10  ;;  %6618 = vst [vmem:[#allocation148_spill] sm:$0xff] %v5455_v54  ;;  %v6621_v31 = vld [vmem:[#allocation62_spill] sm:$0xff] }
 0x30a   : > { %6609 = vst [vmem:[#allocation142_spill] sm:$0xff] %v5432_v51  ;;  %2522 = vrot.lane.b32.xlu0 %v6612_v22, %s3501_s29  ;;  %2506 = vrot.lane.b32.xlu1 %v6613_v57, %s3501_s29  ;;  %v1606_v53 = vadd.f32 %v6617_v46, %v1426_v11  ;;  %v6619_v57 = vld [vmem:[#allocation170_spill] sm:$0xff]  ;;  %v6623_v46 = vld [vmem:[#allocation63_spill] sm:$0xff] }
 0x30b   : > { %v2281_v22 = vadd.f32 %v5318_v4, %v2113_v5  ;;  %v6622_v4 = vld [vmem:[#allocation64_spill] sm:$0xff] }
 0x30c   : > { %v5443_v18 = vpop.permute.xlu0 %2354  ;;  %v5448_v51 = vpop.permute.xlu1 %2338  ;;  %v1429_v11 = vadd.f32 %v6622_v4, %v5455_v54  ;;  %v6627_v4 = vld [vmem:[#allocation66_spill] sm:$0xff] }
 0x30d   : > { %6614 = vst [vmem:[#allocation146_spill] sm:$0xff] %v5443_v18  ;;  %v1786_v18 = vadd.f32 %v6619_v57, %v1606_v53  ;;  %v6624_v53 = vld [vmem:[#allocation129_spill] sm:$0xff] }
 0x30e   : > { %v6626_v57 = vld [vmem:[#allocation173_spill] sm:$0xff] }
 0x30f   : > { %2526 = vrot.lane.b32.xlu2 %v6616_v13, %s3501_s29  ;;  %v1966_v10 = vadd.f32 %v5088_v63, %v1786_v18  ;;  %v5477_v18 = vmul.f32 0.0010283801, %v4493_v3 }
 0x311   : > { %v2389_v8 = vpop.permute.xlu2 %2388  ;;  %v2146_v50 = vadd.f32 %v5210_v28, %v1966_v10  ;;  %6625 = vst [vmem:[#allocation151_spill] sm:$0xff] %v5477_v18  ;;  %v6628_v10 = vld [vmem:[#allocation68_spill] sm:$0xff] }
 0x312   : > { %v5458_v16 = vadd.f32 %v2389_v8, %v2281_v22  ;;  %2528 = vrot.lane.b32.xlu0 %v6620_v25, %s3501_s29  ;;  %2524 = vrot.lane.b32.xlu1 %v6621_v31, %s3501_s29  ;;  %v1609_v22 = vadd.f32 %v6624_v53, %v1429_v11 }
 0x313   : > { %v2302_v8 = vadd.f32 %v5330_v49, %v2146_v50  ;;  %v6629_v49 = vld [vmem:[#allocation72_spill] sm:$0xff]  ;;  %v3341_v50 = vld [vmem:[#allocation6] sm:$0xff] }
 0x314   : > { %v5465_v13 = vpop.permute.xlu0 %2360  ;;  %v5470_v5 = vpop.permute.xlu1 %2356  ;;  %v1789_v25 = vadd.f32 %v6626_v57, %v1609_v22  ;;  %v1462_v11 = vadd.f32 %v6629_v49, %v5477_v18  ;;  %v5491_v3 = vmul.f32 0.0010283801, %v3341_v50  ;;  %v6633_v57 = vld [vmem:[#allocation135_spill] sm:$0xff]  ;;  %v6634_v49 = vld [vmem:[#allocation74_spill] sm:$0xff]  ;;  %v5505_v50 = vmul.f32 0.0010283801, %v4932_v39 }
 0x315   : > { %v6641_v39 = vld [vmem:[#allocation73_spill] sm:$0xff] }
 0x316   : > { %v1969_v28 = vadd.f32 %v5100_v32, %v1789_v25  ;;  %v1642_v25 = vadd.f32 %v6633_v57, %v1462_v11  ;;  %v1424_v54 = vadd.f32 %v6634_v49, %v5491_v3  ;;  %6635 = vst [vmem:[#allocation48_spill] sm:$0xff] %v5505_v50  ;;  %v6640_v11 = vld [vmem:[#allocation137_spill] sm:$0xff] }
 0x317   : > { %2532 = vrot.lane.b32.xlu2 %v6623_v46, %s3501_s29 }
 0x318   : > { %v2149_v53 = vadd.f32 %v5222_v35, %v1969_v28  ;;  %v6636_v35 = vld [vmem:[#allocation176_spill] sm:$0xff]  ;;  %v1604_v57 = vadd.f32 %v6640_v11, %v1424_v54  ;;  %v3344_v54 = vld [vmem:[#allocation6 + $0x8] sm:$0xff] }
 0x319   : > { %v2407_v63 = vpop.permute.xlu2 %2406  ;;  %v1822_v28 = vadd.f32 %v6636_v35, %v1642_v25  ;;  %v6643_v25 = vld [vmem:[#allocation79_spill] sm:$0xff]  ;;  %v5527_v11 = vmul.f32 0.0010283801, %v3344_v54 }
 0x31a   : > { %v5480_v31 = vadd.f32 %v2407_v63, %v2302_v8  ;;  %2546 = vrot.lane.b32.xlu0 %v6627_v4, %s3501_s29  ;;  %2530 = vrot.lane.b32.xlu1 %v6628_v10, %s3501_s29  ;;  %v6631_v8 = vld [vmem:[#allocation69_spill] sm:$0xff]  ;;  %v3342_v63 = vld [vmem:[#allocation5 + $0x20] sm:$0xff]  ;;  %v2305_v4 = vadd.f32 %v5342_v20, %v2149_v53  ;;  %v3343_v53 = vld [vmem:[#allocation6 + $0x18] sm:$0xff] }
 0x31b   : > { %v5498_v32 = vmul.f32 0.0010283801, %v3342_v63  ;;  %v6639_v63 = vld [vmem:[#allocation49_spill] sm:$0xff]  ;;  %v2002_v20 = vadd.f32 %v5114_v55, %v1822_v28  ;;  %v6646_v28 = vld [vmem:[#allocation75_spill] sm:$0xff] }
 0x31c   : > { %v5487_v46 = vpop.permute.xlu0 %2378  ;;  %v5494_v22 = vpop.permute.xlu1 %2362 }
 0x31d   : > { %6630 = vst [vmem:[#allocation152_spill] sm:$0xff] %v5494_v22  ;;  %v1392_v41 = vadd.f32 %v6639_v63, %v5498_v32  ;;  %v5516_v22 = vmul.f32 0.0010283801, %v3343_v53  ;;  %v2182_v63 = vadd.f32 %v5234_v45, %v2002_v20  ;;  %v6647_v53 = vld [vmem:[#allocation141_spill] sm:$0xff]  ;;  %v5540_v45 = vmul.f32 0.0010283801, %v4957_v6 }
 0x31e   : > { %6632 = vst [vmem:[#allocation154_spill] sm:$0xff] %v5498_v32  ;;  %v6648_v32 = vld [vmem:[#allocation178_spill] sm:$0xff] }
 0x31f   : > { %2550 = vrot.lane.b32.xlu2 %v6631_v8, %s3501_s29  ;;  %v6638_v8 = vld [vmem:[#allocation70_spill] sm:$0xff] }
 0x321   : > { %v2413_v10 = vpop.permute.xlu2 %2412 }
 0x322   : > { %v5508_v18 = vadd.f32 %v2413_v10, %v2305_v4  ;;  %2552 = vrot.lane.b32.xlu0 %v6638_v8, %s3501_s29  ;;  %2548 = vrot.lane.b32.xlu1 %v6641_v39, %s3501_s29  ;;  %v1465_v4 = vadd.f32 %v6643_v25, %v5505_v50  ;;  %v6644_v10 = vld [vmem:[#allocation138_spill] sm:$0xff]  ;;  %v6645_v8 = vld [vmem:[#allocation177_spill] sm:$0xff] }
 0x323   : > { %v1572_v35 = vadd.f32 %v6644_v10, %v1392_v41  ;;  %v2326_v41 = vadd.f32 %v5354_v2, %v2182_v63  ;;  %v6652_v2 = vld [vmem:[#allocation76_spill] sm:$0xff] }
 0x324   : > { %6637 = vst [vmem:[#allocation157_spill] sm:$0xff] %v5508_v18  ;;  %v5520_v49 = vpop.permute.xlu0 %2384  ;;  %v1784_v18 = vadd.f32 %v6645_v8, %v1604_v57  ;;  %v5529_v55 = vpop.permute.xlu1 %2380  ;;  %v1645_v39 = vadd.f32 %v6647_v53, %v1465_v4  ;;  %v6649_v57 = vld [vmem:[#allocation81_spill] sm:$0xff]  ;;  %v6650_v8 = vld [vmem:[#allocation179_spill] sm:$0xff] }
 0x325   : > { %6642 = vst [vmem:[#allocation51_spill] sm:$0xff] %v5520_v49  ;;  %v1752_v49 = vadd.f32 %v6648_v32, %v1572_v35  ;;  %v1427_v10 = vadd.f32 %v6649_v57, %v5516_v22  ;;  %v6651_v32 = vld [vmem:[#allocation78_spill] sm:$0xff] }
 0x326   : > { %v1964_v25 = vadd.f32 %v5119_v1, %v1784_v18  ;;  %v1825_v54 = vadd.f32 %v6650_v8, %v1645_v39  ;;  %v1425_v1 = vadd.f32 %v6651_v32, %v5527_v11  ;;  %v6653_v18 = vld [vmem:[#allocation143_spill] sm:$0xff]  ;;  %v6655_v39 = vld [vmem:[#allocation144_spill] sm:$0xff] }
 0x327   : > { %2556 = vrot.lane.b32.xlu2 %v6646_v28, %s3501_s29  ;;  %v1932_v50 = vadd.f32 %v5121_v24, %v1752_v49  ;;  %v1607_v35 = vadd.f32 %v6653_v18, %v1427_v10  ;;  %v6654_v24 = vld [vmem:[#allocation86_spill] sm:$0xff]  ;;  %v6659_v32 = vld [vmem:[#allocation80_spill] sm:$0xff] }
 0x328   : > { %v2144_v28 = vadd.f32 %v5240_v29, %v1964_v25  ;;  %v2005_v6 = vadd.f32 %v5128_v36, %v1825_v54  ;;  %v1498_v49 = vadd.f32 %v6654_v24, %v5540_v45  ;;  %v5558_v29 = vmul.f32 0.0010283801, %v4689_v17  ;;  %v6658_v54 = vld [vmem:[#allocation147_spill] sm:$0xff] }
 0x329   : > { %v2431_v20 = vpop.permute.xlu2 %2430  ;;  %v2112_v63 = vadd.f32 %v5242_v60, %v1932_v50  ;;  %v1605_v25 = vadd.f32 %v6655_v39, %v1425_v1  ;;  %v6660_v1 = vld [vmem:[#allocation181_spill] sm:$0xff] }
 0x32a   : > { %v5545_v4 = vadd.f32 %v2431_v20, %v2326_v41  ;;  %2570 = vrot.lane.b32.xlu0 %v6652_v2, %s3501_s29  ;;  %v2300_v53 = vadd.f32 %v5360_v23, %v2144_v28  ;;  %v6656_v41 = vld [vmem:[#allocation77_spill] sm:$0xff]  ;;  %v6657_v20 = vld [vmem:[#allocation180_spill] sm:$0xff]  ;;  %v2185_v36 = vadd.f32 %v5246_v9, %v2005_v6  ;;  %v1678_v17 = vadd.f32 %v6658_v54, %v1498_v49  ;;  %v6662_v49 = vld [vmem:[#allocation182_spill] sm:$0xff] }
 0x32b   : > { %2554 = vrot.lane.b32.xlu1 %v6656_v41, %s3501_s29  ;;  %v1787_v10 = vadd.f32 %v6657_v20, %v1607_v35  ;;  %v2280_v60 = vadd.f32 %v5362_v47, %v2112_v63  ;;  %v3345_v23 = vld [vmem:[#allocation6 + $0x20] sm:$0xff]  ;;  %v1785_v2 = vadd.f32 %v6660_v1, %v1605_v25  ;;  %v3346_v47 = vld [vmem:[#allocation8 + $0x28] sm:$0xff]  ;;  %v6661_v63 = vld [vmem:[#allocation87_spill] sm:$0xff] }
 0x32c   : > { %v2403_v57 = vpop.permute.xlu0 %2402  ;;  %v5568_v8 = vmul.f32 0.0010283801, %v3345_v23  ;;  %v2387_v28 = vpop.permute.xlu1 %2386  ;;  %v2329_v35 = vadd.f32 %v5366_v52, %v2185_v36  ;;  %v5578_v6 = vmul.f32 0.0010283801, %v3346_v47  ;;  %v1858_v39 = vadd.f32 %v6662_v49, %v1678_v17  ;;  %v6664_v20 = vld [vmem:[#allocation82_spill] sm:$0xff]  ;;  %v6668_v1 = vld [vmem:[#allocation83_spill] sm:$0xff] }
 0x32d   : > { %v5566_v50 = vadd.f32 %v2403_v57, %v2300_v53  ;;  %v1967_v18 = vadd.f32 %v5133_v48, %v1787_v10  ;;  %v5576_v9 = vadd.f32 %v2387_v28, %v2280_v60  ;;  %v1460_v53 = vadd.f32 %v6661_v63, %v5558_v29  ;;  %v6663_v48 = vld [vmem:[#allocation85_spill] sm:$0xff]  ;;  %v6667_v28 = vld [vmem:[#allocation150_spill] sm:$0xff]  ;;  %v6671_v49 = vld [vmem:[#allocation84_spill] sm:$0xff] }
 0x32e   : > { %v1965_v41 = vadd.f32 %v5135_v19, %v1785_v2  ;;  %v1428_v52 = vadd.f32 %v6663_v48, %v5568_v8  ;;  %v6665_v10 = vld [vmem:[#allocation149_spill] sm:$0xff]  ;;  %v2038_v60 = vadd.f32 %v5140_v12, %v1858_v39  ;;  %v6666_v19 = vld [vmem:[#allocation91_spill] sm:$0xff]  ;;  %v6672_v39 = vld [vmem:[#allocation184_spill] sm:$0xff] }
 0x32f   : > { %2574 = vrot.lane.b32.xlu2 %v6659_v32, %s3501_s29  ;;  %v2147_v57 = vadd.f32 %v5252_v62, %v1967_v18  ;;  %v1640_v36 = vadd.f32 %v6665_v10, %v1460_v53  ;;  %v1501_v17 = vadd.f32 %v6666_v19, %v5578_v6  ;;  %v5598_v62 = vmul.f32 0.0010283801, %v4712_v0  ;;  %v6669_v18 = vld [vmem:[#allocation183_spill] sm:$0xff]  ;;  %v6670_v53 = vld [vmem:[#allocation153_spill] sm:$0xff] }
 0x330   : > { %v2145_v23 = vadd.f32 %v5254_v30, %v1965_v41  ;;  %v1608_v32 = vadd.f32 %v6667_v28, %v1428_v52  ;;  %v2218_v12 = vadd.f32 %v5258_v7, %v2038_v60  ;;  %v6675_v60 = vld [vmem:[#allocation185_spill] sm:$0xff]  ;;  %v6677_v28 = vld [vmem:[#allocation88_spill] sm:$0xff] }
 0x331   : > { %v2437_v24 = vpop.permute.xlu2 %2436  ;;  %v2303_v54 = vadd.f32 %v5372_v56, %v2147_v57  ;;  %v3347_v56 = vld [vmem:[#allocation7 + $0x8] sm:$0xff]  ;;  %v1681_v0 = vadd.f32 %v6670_v53, %v1501_v17  ;;  %v6681_v53 = vld [vmem:[#allocation89_spill] sm:$0xff] }
 0x332   : > { %v5585_v25 = vadd.f32 %v2437_v24, %v2329_v35  ;;  %2576 = vrot.lane.b32.xlu0 %v6664_v20, %s3501_s29  ;;  %v1820_v35 = vadd.f32 %v6669_v18, %v1640_v36  ;;  %v2301_v30 = vadd.f32 %v5374_v42, %v2145_v23  ;;  %v5608_v63 = vmul.f32 0.0010283801, %v3347_v56  ;;  %v3348_v42 = vld [vmem:[#allocation9 + $0x10] sm:$0xff]  ;;  %v6674_v20 = vld [vmem:[#allocation94_spill] sm:$0xff] }
 0x333   : > { %2572 = vrot.lane.b32.xlu1 %v6668_v1, %s3501_s29  ;;  %v1788_v41 = vadd.f32 %v6672_v39, %v1608_v32  ;;  %v2350_v48 = vadd.f32 %v5378_v59, %v2218_v12  ;;  %v5618_v52 = vmul.f32 0.0010283801, %v3348_v42  ;;  %v1463_v10 = vadd.f32 %v6674_v20, %v5598_v62  ;;  %v6678_v32 = vld [vmem:[#allocation155_spill] sm:$0xff]  ;;  %v6685_v42 = vld [vmem:[#allocation188_spill] sm:$0xff] }
 0x334   : > { %v2409_v2 = vpop.permute.xlu0 %2408  ;;  %v2405_v24 = vpop.permute.xlu1 %2404  ;;  %v2000_v57 = vadd.f32 %v5145_v43, %v1820_v35  ;;  %v1861_v23 = vadd.f32 %v6675_v60, %v1681_v0  ;;  %v6676_v43 = vld [vmem:[#allocation92_spill] sm:$0xff] }
 0x335   : > { %v5606_v47 = vadd.f32 %v2409_v2, %v2303_v54  ;;  %v5616_v7 = vadd.f32 %v2405_v24, %v2301_v30  ;;  %6673 = vst [vmem:[#allocation52_spill] sm:$0xff] %v5618_v52  ;;  %v1968_v54 = vadd.f32 %v5147_v58, %v1788_v41  ;;  %v1461_v59 = vadd.f32 %v6676_v43, %v5608_v63  ;;  %v6679_v58 = vld [vmem:[#allocation97_spill] sm:$0xff]  ;;  %v6680_v30 = vld [vmem:[#allocation156_spill] sm:$0xff]  ;;  %v6682_v24 = vld [vmem:[#allocation187_spill] sm:$0xff] }
 0x336   : > { %v2180_v19 = vadd.f32 %v5264_v37, %v2000_v57  ;;  %v1643_v1 = vadd.f32 %v6678_v32, %v1463_v10  ;;  %v2041_v2 = vadd.f32 %v5152_v44, %v1861_v23  ;;  %v1534_v12 = vadd.f32 %v6679_v58, %v5618_v52  ;;  %v6683_v41 = vld [vmem:[#allocation158_spill] sm:$0xff]  ;;  %v3356_v52 = vld [vmem:[#allocation5] sm:$0xff] }
 0x337   : > { %2580 = vrot.lane.b32.xlu2 %v6671_v49, %s3501_s29  ;;  %v2148_v18 = vadd.f32 %v5266_v26, %v1968_v54  ;;  %v5638_v37 = vmul.f32 0.0010283801, %v5110_v15  ;;  %v1641_v56 = vadd.f32 %v6680_v30, %v1461_v59 }
 0x338   : > { %v2324_v35 = vadd.f32 %v5384_v40, %v2180_v19  ;;  %v1823_v49 = vadd.f32 %v6682_v24, %v1643_v1  ;;  %v2221_v44 = vadd.f32 %v5270_v33, %v2041_v2  ;;  %v5649_v40 = vmul.f32 0.0010283801, %v4950_v21  ;;  %v6687_v21 = vld [vmem:[#allocation101_spill] sm:$0xff]  ;;  %v6691_v2 = vld [vmem:[#allocation159_spill] sm:$0xff] }
 0x339   : > { %v2455_v36 = vpop.permute.xlu2 %2454  ;;  %v2304_v26 = vadd.f32 %v5386_v27, %v2148_v18  ;;  %v1714_v15 = vadd.f32 %v6683_v41, %v1534_v12  ;;  %v1821_v20 = vadd.f32 %v6685_v42, %v1641_v56  ;;  %v3349_v27 = vld [vmem:[#allocation9 + $0x28] sm:$0xff]  ;;  %v1496_v23 = vadd.f32 %v6687_v21, %v5638_v37  ;;  %v6688_v19 = vld [vmem:[#allocation189_spill] sm:$0xff] }
 0x33a   : > { %v5625_v17 = vadd.f32 %v2455_v36, %v2350_v48  ;;  %2594 = vrot.lane.b32.xlu0 %v6677_v28, %s3501_s29  ;;  %v6684_v48 = vld [vmem:[#allocation90_spill] sm:$0xff]  ;;  %v2003_v10 = vadd.f32 %v5157_v61, %v1823_v49  ;;  %v2353_v36 = vadd.f32 %v5390_v14, %v2221_v44  ;;  %v5659_v60 = vmul.f32 0.0010283801, %v3349_v27  ;;  %v6690_v1 = vld [vmem:[#allocation93_spill] sm:$0xff]  ;;  %v6693_v12 = vld [vmem:[#allocation220_spill] sm:$0xff] }
 0x33b   : > { %2578 = vrot.lane.b32.xlu1 %v6681_v53, %s3501_s29  ;;  %v1894_v43 = vadd.f32 %v6688_v19, %v1714_v15  ;;  %v2001_v59 = vadd.f32 %v5159_v34, %v1821_v20  ;;  %v6689_v61 = vld [vmem:[#allocation98_spill] sm:$0xff]  ;;  %v1676_v18 = vadd.f32 %v6691_v2, %v1496_v23  ;;  %v6694_v56 = vld [vmem:[#allocation124_spill] sm:$0xff]  ;;  %v6695_v34 = vld [vmem:[#allocation105_spill] sm:$0xff] }
 0x33c   : > { %v2427_v0 = vpop.permute.xlu0 %2426  ;;  %v2411_v57 = vpop.permute.xlu1 %2410  ;;  %6686 = vst [vmem:[#allocation53_spill] sm:$0xff] %v5659_v60  ;;  %v2183_v28 = vadd.f32 %v5276_v38, %v2003_v10  ;;  %v1464_v14 = vadd.f32 %v6689_v61, %v5649_v40  ;;  %v3350_v38 = vld [vmem:[#allocation8 + $0x18] sm:$0xff]  ;;  %v6698_v15 = vld [vmem:[#allocation190_spill] sm:$0xff]  ;;  %v6700_v20 = vld [vmem:[#allocation127_spill] sm:$0xff] }
 0x33d   : > { %v5646_v39 = vadd.f32 %v2427_v0, %v2324_v35  ;;  %v5657_v33 = vadd.f32 %v2411_v57, %v2304_v26  ;;  %v6692_v35 = vld [vmem:[#allocation205_spill] sm:$0xff]  ;;  %v2181_v30 = vadd.f32 %v6693_v12, %v2001_v59  ;;  %v1537_v0 = vadd.f32 %v6695_v34, %v5659_v60  ;;  %v6696_v49 = vld [vmem:[#allocation160_spill] sm:$0xff]  ;;  %v6697_v26 = vld [vmem:[#allocation95_spill] sm:$0xff] }
 0x33e   : > { %v2074_v58 = vadd.f32 %v6692_v35, %v1894_v43  ;;  %v2327_v53 = vadd.f32 %v6694_v56, %v2183_v28  ;;  %v5678_v24 = vmul.f32 0.0010283801, %v3350_v38  ;;  %v1644_v44 = vadd.f32 %v6696_v49, %v1464_v14  ;;  %v3351_v27 = vld [vmem:[#allocation5 + $0x10] sm:$0xff]  ;;  %v6701_v23 = vld [vmem:[#allocation204_spill] sm:$0xff]  ;;  %v6704_v61 = vld [vmem:[#allocation191_spill] sm:$0xff] }
 0x33f   : > { %2598 = vrot.lane.b32.xlu2 %v6684_v48, %s3501_s29  ;;  %v1856_v57 = vadd.f32 %v6698_v15, %v1676_v18  ;;  %v6699_v48 = vld [vmem:[#allocation186_spill] sm:$0xff]  ;;  %v2325_v10 = vadd.f32 %v6700_v20, %v2181_v30  ;;  %v5688_v21 = vmul.f32 0.0010283801, %v3351_v27  ;;  %v6702_v19 = vld [vmem:[#allocation161_spill] sm:$0xff]  ;;  %v6703_v28 = vld [vmem:[#allocation96_spill] sm:$0xff] }
 0x340   : > { %v2254_v42 = vadd.f32 %v6699_v48, %v2074_v58  ;;  %v1717_v43 = vadd.f32 %v6702_v19, %v1537_v0  ;;  %v1824_v14 = vadd.f32 %v6704_v61, %v1644_v44  ;;  %v6706_v18 = vld [vmem:[#allocation128_spill] sm:$0xff]  ;;  %v6709_v38 = vld [vmem:[#allocation207_spill] sm:$0xff]  ;;  %v6711_v44 = vld [vmem:[#allocation65_spill] sm:$0xff] }
 0x341   : > { %v2461_v54 = vpop.permute.xlu2 %2460  ;;  %v6707_v12 = vld [vmem:[#allocation108_spill] sm:$0xff]  ;;  %v6710_v49 = vld [vmem:[#allocation99_spill] sm:$0xff]  ;;  %v1390_v15 = vadd.f32 %v6711_v44, %v5688_v21  ;;  %v6714_v20 = vld [vmem:[#allocation162_spill] sm:$0xff] }
 0x342   : > { %v5666_v32 = vadd.f32 %v2461_v54, %v2353_v36  ;;  %2600 = vrot.lane.b32.xlu0 %v6690_v1, %s3501_s29  ;;  %v5691_v54 = vmul.f32 0.0010283801, %v6701_v23  ;;  %v6705_v1 = vld [vmem:[#allocation206_spill] sm:$0xff]  ;;  %v2374_v35 = vadd.f32 %v6706_v18, %v2254_v42  ;;  %v1499_v30 = vadd.f32 %v6707_v12, %v5678_v24  ;;  %v6715_v27 = vld [vmem:[#allocation208_spill] sm:$0xff]  ;;  %v6716_v19 = vld [vmem:[#allocation221_spill] sm:$0xff] }
 0x343   : > { %2596 = vrot.lane.b32.xlu1 %v6697_v26, %s3501_s29  ;;  %v2036_v2 = vadd.f32 %v6705_v1, %v1856_v57  ;;  %v2004_v0 = vadd.f32 %v6709_v38, %v1824_v14  ;;  %v6712_v57 = vld [vmem:[#allocation106_spill] sm:$0xff]  ;;  %v6718_v61 = vld [vmem:[#allocation111_spill] sm:$0xff]  ;;  %v6721_v12 = vld [vmem:[#allocation100_spill] sm:$0xff] }
 0x344   : > { %v2433_v41 = vpop.permute.xlu0 %2432  ;;  %v2429_v59 = vpop.permute.xlu1 %2428  ;;  %v1497_v48 = vadd.f32 %v6712_v57, %v5691_v54  ;;  %v6713_v42 = vld [vmem:[#allocation22_spill] sm:$0xff]  ;;  %v1570_v14 = vadd.f32 %v6718_v61, %v1390_v15  ;;  %v3352_v1 = vld [vmem:[#allocation9] sm:$0xff]  ;;  %v6725_v15 = vld [vmem:[#allocation164_spill] sm:$0xff] }
 0x345   : > { %v5686_v36 = vadd.f32 %v2433_v41, %v2327_v53  ;;  %v5699_v58 = vadd.f32 %v2429_v59, %v2325_v10  ;;  %v6708_v53 = vld [vmem:[#allocation192_spill] sm:$0xff]  ;;  %v2216_v26 = vadd.f32 %v6710_v49, %v2036_v2  ;;  %v1679_v10 = vadd.f32 %v6714_v20, %v1499_v30  ;;  %v6717_v59 = vld [vmem:[#allocation130_spill] sm:$0xff]  ;;  %v6720_v18 = vld [vmem:[#allocation163_spill] sm:$0xff] }
 0x346   : > { %v1897_v34 = vadd.f32 %v6708_v53, %v1717_v43  ;;  %v2184_v43 = vadd.f32 %v6716_v19, %v2004_v0  ;;  %v5719_v2 = vmul.f32 0.0010283801, %v3352_v1  ;;  %v6722_v53 = vld [vmem:[#allocation193_spill] sm:$0xff]  ;;  %v6723_v30 = vld [vmem:[#allocation102_spill] sm:$0xff] }
 0x347   : > { %2604 = vrot.lane.b32.xlu2 %v6703_v28, %s3501_s29  ;;  %v2348_v28 = vadd.f32 %v6717_v59, %v2216_v26  ;;  %v1859_v38 = vadd.f32 %v6722_v53, %v1679_v10  ;;  %v3353_v26 = vld [vmem:[#allocation8 + $0x20] sm:$0xff]  ;;  %v6729_v10 = vld [vmem:[#allocation134_spill] sm:$0xff] }
 0x348   : > { %v2077_v23 = vadd.f32 %v6715_v27, %v1897_v34  ;;  %6719 = vst [vmem:[#allocation54_spill] sm:$0xff] %v5719_v2  ;;  %v6724_v34 = vld [vmem:[#allocation133_spill] sm:$0xff]  ;;  %v5729_v57 = vmul.f32 0.0010283801, %v3353_v26  ;;  %v6727_v27 = vld [vmem:[#allocation194_spill] sm:$0xff] }
 0x349   : > { %v2479_v56 = vpop.permute.xlu2 %2478  ;;  %v2328_v44 = vadd.f32 %v6724_v34, %v2184_v43  ;;  %v6728_v59 = vld [vmem:[#allocation209_spill] sm:$0xff]  ;;  %v6730_v43 = vld [vmem:[#allocation114_spill] sm:$0xff] }
 0x34a   : > { %v5706_v41 = vadd.f32 %v2479_v56, %v2374_v35  ;;  %2618 = vrot.lane.b32.xlu0 %v6713_v42, %s3502_s3  ;;  %v1677_v35 = vadd.f32 %v6720_v18, %v1497_v48  ;;  %v2257_v49 = vadd.f32 %v6723_v30, %v2077_v23  ;;  %v1750_v42 = vadd.f32 %v6725_v15, %v1570_v14  ;;  %v6726_v48 = vld [vmem:[#allocation20_spill] sm:$0xff]  ;;  %v6732_v53 = vld [vmem:[#allocation210_spill] sm:$0xff]  ;;  %v6733_v30 = vld [vmem:[#allocation103_spill] sm:$0xff] }
 0x34b   : > { %2602 = vrot.lane.b32.xlu1 %v6721_v12, %s3501_s29  ;;  %v2039_v61 = vadd.f32 %v6728_v59, %v1859_v38  ;;  %v6731_v12 = vld [vmem:[#allocation195_spill] sm:$0xff] }
 0x34c   : > { %v2451_v56 = vpop.permute.xlu0 %2450  ;;  %v2435_v20 = vpop.permute.xlu1 %2434  ;;  %v1857_v19 = vadd.f32 %v6727_v27, %v1677_v35  ;;  %v2377_v1 = vadd.f32 %v6729_v10, %v2257_v49  ;;  %v6734_v35 = vld [vmem:[#allocation112_spill] sm:$0xff]  ;;  %v6735_v38 = vld [vmem:[#allocation27_spill] sm:$0xff]  ;;  %v6736_v49 = vld [vmem:[#allocation165_spill] sm:$0xff] }
 0x34d   : > { %v5727_v0 = vadd.f32 %v2451_v56, %v2348_v28  ;;  %v5737_v23 = vadd.f32 %v2435_v20, %v2328_v44  ;;  %v1532_v28 = vadd.f32 %v6730_v43, %v5719_v2  ;;  %v1930_v56 = vadd.f32 %v6731_v12, %v1750_v42  ;;  %v6737_v20 = vld [vmem:[#allocation211_spill] sm:$0xff]  ;;  %v6738_v27 = vld [vmem:[#allocation104_spill] sm:$0xff]  ;;  %v3354_v43 = vld [vmem:[#allocation9 + $0x18] sm:$0xff] }
 0x34e   : > { %v2037_v14 = vadd.f32 %v6732_v53, %v1857_v19  ;;  %v2219_v34 = vadd.f32 %v6733_v30, %v2039_v61  ;;  %v1500_v15 = vadd.f32 %v6734_v35, %v5729_v57  ;;  %v6739_v10 = vld [vmem:[#allocation139_spill] sm:$0xff]  ;;  %v5754_v19 = vmul.f32 0.0010283801, %v3354_v43  ;;  %v6741_v61 = vld [vmem:[#allocation166_spill] sm:$0xff]  ;;  %v6743_v53 = vld [vmem:[#allocation196_spill] sm:$0xff] }
 0x34f   : > { %2622 = vrot.lane.b32.xlu2 %v6726_v48, %s3502_s3  ;;  %v1712_v44 = vadd.f32 %v6736_v49, %v1532_v28  ;;  %v2110_v48 = vadd.f32 %v6737_v20, %v1930_v56  ;;  %v6744_v35 = vld [vmem:[#allocation107_spill] sm:$0xff]  ;;  %v6745_v28 = vld [vmem:[#allocation140_spill] sm:$0xff] }
 0x350   : > { %v2217_v59 = vadd.f32 %v6738_v27, %v2037_v14  ;;  %v2351_v42 = vadd.f32 %v6739_v10, %v2219_v34  ;;  %6740 = vst [vmem:[#allocation55_spill] sm:$0xff] %v5754_v19  ;;  %v3355_v14 = vld [vmem:[#allocation9 + $0x8] sm:$0xff]  ;;  %v6747_v27 = vld [vmem:[#allocation25_spill] sm:$0xff] }
 0x351   : > { %v2485_v18 = vpop.permute.xlu2 %2484  ;;  %v1892_v30 = vadd.f32 %v6743_v53, %v1712_v44  ;;  %v5764_v20 = vmul.f32 0.0010283801, %v3355_v14  ;;  %v6749_v43 = vld [vmem:[#allocation212_spill] sm:$0xff] }
 0x352   : > { %v5744_v26 = vadd.f32 %v2485_v18, %v2377_v1  ;;  %2642 = vrot.lane.b32.xlu0 %v6735_v38, %s3502_s3  ;;  %v1680_v1 = vadd.f32 %v6741_v61, %v1500_v15  ;;  %v6742_v18 = vld [vmem:[#allocation24_spill] sm:$0xff]  ;;  %v2278_v38 = vadd.f32 %v6744_v35, %v2110_v48  ;;  %v2349_v49 = vadd.f32 %v6745_v28, %v2217_v59  ;;  %v6748_v15 = vld [vmem:[#allocation197_spill] sm:$0xff] }
 0x353   : > { %2620 = vrot.lane.b32.xlu1 %v6742_v18, %s3502_s3  ;;  %6746 = vst [vmem:[#allocation117_spill] sm:$0xff] %v5764_v20  ;;  %v2072_v61 = vadd.f32 %v6749_v43, %v1892_v30  ;;  %v6750_v18 = vld [vmem:[#allocation142_spill] sm:$0xff]  ;;  %v6751_v59 = vld [vmem:[#allocation120_spill] sm:$0xff]  ;;  %v6753_v35 = vld [vmem:[#allocation109_spill] sm:$0xff] }
 0x354   : > { %v2457_v12 = vpop.permute.xlu0 %2456  ;;  %v2453_v34 = vpop.permute.xlu1 %2452  ;;  %v1860_v10 = vadd.f32 %v6748_v15, %v1680_v1  ;;  %v2398_v60 = vadd.f32 %v6750_v18, %v2278_v38  ;;  %v6754_v1 = vld [vmem:[#allocation33_spill] sm:$0xff]  ;;  %v6755_v30 = vld [vmem:[#allocation119_spill] sm:$0xff]  ;;  %v6757_v15 = vld [vmem:[#allocation110_spill] sm:$0xff] }
 0x355   : > { %v5762_v56 = vadd.f32 %v2457_v12, %v2351_v42  ;;  %v5771_v44 = vadd.f32 %v2453_v34, %v2349_v49  ;;  %v1535_v42 = vadd.f32 %v6751_v59, %v5754_v19  ;;  %v6752_v12 = vld [vmem:[#allocation213_spill] sm:$0xff]  ;;  %v2252_v28 = vadd.f32 %v6753_v35, %v2072_v61  ;;  %v6756_v49 = vld [vmem:[#allocation168_spill] sm:$0xff]  ;;  %v6758_v18 = vld [vmem:[#allocation146_spill] sm:$0xff] }
 0x356   : > { %v2040_v53 = vadd.f32 %v6752_v12, %v1860_v10  ;;  %v1533_v38 = vadd.f32 %v6755_v30, %v5764_v20  ;;  %v6759_v10 = vld [vmem:[#allocation26_spill] sm:$0xff]  ;;  %v6762_v19 = vld [vmem:[#allocation60_spill] sm:$0xff] }
 0x357   : > { %2646 = vrot.lane.b32.xlu2 %v6747_v27, %s3502_s3  ;;  %v1274_v27 = vmul.f32 0.0010283801, %v3356_v52  ;;  %v1715_v34 = vadd.f32 %v6756_v49, %v1535_v42  ;;  %v2372_v59 = vadd.f32 %v6758_v18, %v2252_v28  ;;  %v6761_v12 = vld [vmem:[#allocation198_spill] sm:$0xff]  ;;  %v6763_v42 = vld [vmem:[#allocation39_spill] sm:$0xff] }
 0x358   : > { %v2220_v43 = vadd.f32 %v6757_v15, %v2040_v53  ;;  %v3357_v53 = vld [vmem:[#allocation9 + $0x20] sm:$0xff]  ;;  %v6766_v18 = vld [vmem:[#allocation214_spill] sm:$0xff] }
 0x359   : > { %v2503_v48 = vpop.permute.xlu2 %2502  ;;  %v1895_v52 = vadd.f32 %v6761_v12, %v1715_v34  ;;  %v1388_v30 = vadd.f32 %v6762_v19, %v1274_v27  ;;  %v5796_v28 = vmul.f32 0.0010283801, %v3357_v53  ;;  %v6765_v49 = vld [vmem:[#allocation199_spill] sm:$0xff]  ;;  %v6771_v53 = vld [vmem:[#allocation38_spill] sm:$0xff] }
 0x35a   : > { %v5777_v14 = vadd.f32 %v2503_v48, %v2398_v60  ;;  %2666 = vrot.lane.b32.xlu0 %v6754_v1, %s3502_s3  ;;  %v6760_v60 = vld [vmem:[#allocation169_spill] sm:$0xff]  ;;  %v2352_v35 = vadd.f32 %v5448_v51, %v2220_v43  ;;  %v6768_v43 = vld [vmem:[#allocation215_spill] sm:$0xff] }
 0x35b   : > { %2644 = vrot.lane.b32.xlu1 %v6759_v10, %s3502_s3  ;;  %v1713_v48 = vadd.f32 %v6760_v60, %v1533_v38  ;;  %6764 = vst [vmem:[#allocation167_spill] sm:$0xff] %v5796_v28  ;;  %v2075_v10 = vadd.f32 %v6766_v18, %v1895_v52  ;;  %v6767_v60 = vld [vmem:[#allocation125_spill] sm:$0xff]  ;;  %v6773_v52 = vld [vmem:[#allocation171_spill] sm:$0xff]  ;;  %v3359_v18 = vld [vmem:[#allocation5 + $0x8] sm:$0xff] }
 0x35c   : > { %v2475_v61 = vpop.permute.xlu0 %2474  ;;  %v2459_v20 = vpop.permute.xlu1 %2458  ;;  %v1568_v51 = vadd.f32 %v6767_v60, %v1388_v30  ;;  %v6776_v60 = vld [vmem:[#allocation172_spill] sm:$0xff] }
 0x35d   : > { %v5791_v1 = vadd.f32 %v2475_v61, %v2372_v59  ;;  %v1893_v15 = vadd.f32 %v6765_v49, %v1713_v48  ;;  %v5800_v38 = vadd.f32 %v2459_v20, %v2352_v35  ;;  %v6769_v61 = vld [vmem:[#allocation113_spill] sm:$0xff]  ;;  %v6772_v48 = vld [vmem:[#allocation126_spill] sm:$0xff]  ;;  %v6774_v49 = vld [vmem:[#allocation115_spill] sm:$0xff] }
 0x35e   : > { %v2255_v19 = vadd.f32 %v6769_v61, %v2075_v10  ;;  %v1536_v20 = vadd.f32 %v6772_v48, %v5796_v28  ;;  %v1748_v35 = vadd.f32 %v6773_v52, %v1568_v51  ;;  %v1275_v10 = vmul.f32 0.0010283801, %v3359_v18  ;;  %v6777_v61 = vld [vmem:[#allocation200_spill] sm:$0xff] }
 0x35f   : > { %2690 = vrot.lane.b32.xlu2 %v6763_v42, %s3502_s3  ;;  %v2073_v59 = vadd.f32 %v6768_v43, %v1893_v15  ;;  %v3358_v42 = vld [vmem:[#allocation5 + $0x18] sm:$0xff]  ;;  %v6780_v52 = vld [vmem:[#allocation216_spill] sm:$0xff] }
 0x360   : > { %v5808_v2 = vmul.f32 0.0010283801, %v3358_v42  ;;  %v2375_v15 = vadd.f32 %v5465_v13, %v2255_v19  ;;  %v1716_v43 = vadd.f32 %v6776_v60, %v1536_v20  ;;  %v1928_v42 = vadd.f32 %v6777_v61, %v1748_v35  ;;  %v6778_v13 = vld [vmem:[#allocation71_spill] sm:$0xff] }
 0x361   : > { %v2509_v34 = vpop.permute.xlu2 %2508  ;;  %v2253_v30 = vadd.f32 %v6774_v49, %v2073_v59  ;;  %v6779_v59 = vld [vmem:[#allocation201_spill] sm:$0xff]  ;;  %v6781_v20 = vld [vmem:[#allocation67_spill] sm:$0xff] }
 0x362   : > { %v5806_v12 = vadd.f32 %v2509_v34, %v5458_v16  ;;  %2692 = vrot.lane.b32.xlu0 %v6771_v53, %s3502_s3  ;;  %v6775_v16 = vld [vmem:[#allocation32_spill] sm:$0xff]  ;;  %v1391_v51 = vadd.f32 %v6778_v13, %v5808_v2  ;;  %v1896_v19 = vadd.f32 %v6779_v59, %v1716_v43  ;;  %v2108_v49 = vadd.f32 %v6780_v52, %v1928_v42  ;;  %v6782_v60 = vld [vmem:[#allocation131_spill] sm:$0xff]  ;;  %v6786_v42 = vld [vmem:[#allocation174_spill] sm:$0xff] }
 0x363   : > { %2668 = vrot.lane.b32.xlu1 %v6775_v16, %s3502_s3  ;;  %v2373_v53 = vadd.f32 %v5470_v5, %v2253_v30  ;;  %v1389_v16 = vadd.f32 %v6781_v20, %v1275_v10  ;;  %v6783_v30 = vld [vmem:[#allocation217_spill] sm:$0xff]  ;;  %v6785_v43 = vld [vmem:[#allocation132_spill] sm:$0xff] }
 0x364   : > { %6770 = vst [vmem:[#allocation56_spill] sm:$0xff] %v5806_v12  ;;  %v2481_v34 = vpop.permute.xlu0 %2480  ;;  %v2477_v48 = vpop.permute.xlu1 %2476  ;;  %v1571_v5 = vadd.f32 %v6782_v60, %v1391_v51 }
 0x365   : > { %v5822_v12 = vadd.f32 %v2481_v34, %v2375_v15  ;;  %v5829_v18 = vadd.f32 %v2477_v48, %v2373_v53  ;;  %v2076_v15 = vadd.f32 %v6783_v30, %v1896_v19  ;;  %v6784_v34 = vld [vmem:[#allocation116_spill] sm:$0xff]  ;;  %v1569_v13 = vadd.f32 %v6785_v43, %v1389_v16  ;;  %v6787_v48 = vld [vmem:[#allocation118_spill] sm:$0xff]  ;;  %v6788_v19 = vld [vmem:[#allocation175_spill] sm:$0xff] }
 0x366   : > { %v2276_v61 = vadd.f32 %v6784_v34, %v2108_v49  ;;  %v1751_v53 = vadd.f32 %v6786_v42, %v1571_v5  ;;  %v6789_v49 = vld [vmem:[#allocation202_spill] sm:$0xff]  ;;  %v6791_v16 = vld [vmem:[#allocation23_spill] sm:$0xff] }
 0x367   : > { %2746 = vrot.lane.b32.xlu2 %v1275_v10, %s3503_s4  ;;  %v2256_v59 = vadd.f32 %v6787_v48, %v2076_v15  ;;  %v1749_v52 = vadd.f32 %v6788_v19, %v1569_v13  ;;  %v6792_v5 = vld [vmem:[#allocation203_spill] sm:$0xff]  ;;  %v6793_v15 = vld [vmem:[#allocation218_spill] sm:$0xff]  ;;  %v6795_v13 = vld [vmem:[#allocation121_spill] sm:$0xff] }
 0x368   : > { %v2396_v10 = vadd.f32 %v5487_v46, %v2276_v61  ;;  %v1931_v20 = vadd.f32 %v6789_v49, %v1751_v53  ;;  %v6794_v61 = vld [vmem:[#allocation219_spill] sm:$0xff]  ;;  %v6796_v53 = vld [vmem:[#allocation157_spill] sm:$0xff] }
 0x369   : > { %v2527_v35 = vpop.permute.xlu2 %2526  ;;  %v1929_v30 = vadd.f32 %v6792_v5, %v1749_v52  ;;  %v6799_v19 = vld [vmem:[#allocation51_spill] sm:$0xff] }
 0x36a   : > { %v5836_v28 = vadd.f32 %v2527_v35, %v5480_v31  ;;  %2774 = vrot.lane.b32.xlu0 %v5491_v3, %s3503_s4  ;;  %v6790_v31 = vld [vmem:[#allocation152_spill] sm:$0xff]  ;;  %v2111_v34 = vadd.f32 %v6793_v15, %v1931_v20 }
 0x36b   : > { %2744 = vrot.lane.b32.xlu1 %v1274_v27, %s3503_s4  ;;  %v2376_v35 = vadd.f32 %v6790_v31, %v2256_v59  ;;  %v2109_v43 = vadd.f32 %v6794_v61, %v1929_v30  ;;  %v6797_v59 = vld [vmem:[#allocation29_spill] sm:$0xff] }
 0x36c   : > { %v2499_v51 = vpop.permute.xlu0 %2498  ;;  %v2483_v3 = vpop.permute.xlu1 %2482  ;;  %v2279_v42 = vadd.f32 %v6795_v13, %v2111_v34 }
 0x36d   : > { %v5848_v60 = vadd.f32 %v2499_v51, %v2396_v10  ;;  %v5854_v46 = vadd.f32 %v2483_v3, %v2376_v35  ;;  %v6798_v10 = vld [vmem:[#allocation122_spill] sm:$0xff]  ;;  %v6800_v3 = vld [vmem:[#allocation37_spill] sm:$0xff] }
 0x36e   : > { %v2277_v51 = vadd.f32 %v6798_v10, %v2109_v43  ;;  %v2399_v49 = vadd.f32 %v6799_v19, %v2279_v42  ;;  %v6805_v10 = vld [vmem:[#allocation41_spill] sm:$0xff] }
 0x36f   : > { %2624 = vrot.lane.b32.xlu2 %v6791_v16, %s3502_s3 }
 0x370   : > { %v2397_v20 = vadd.f32 %v5529_v55, %v2277_v51 }
 0x371   : > { %v2533_v27 = vpop.permute.xlu2 %2532 }
 0x372   : > { %v5859_v48 = vadd.f32 %v2533_v27, %v6796_v53  ;;  %2648 = vrot.lane.b32.xlu0 %v6797_v59, %s3502_s3 }
 0x373   : > { %2776 = vrot.lane.b32.xlu1 %v5527_v11, %s3503_s4  ;;  %v6801_v11 = vld [vmem:[#allocation31_spill] sm:$0xff] }
 0x374   : > { %v2505_v52 = vpop.permute.xlu0 %2504  ;;  %v2501_v35 = vpop.permute.xlu1 %2500 }
 0x375   : > { %v5868_v31 = vadd.f32 %v2505_v52, %v2399_v49  ;;  %v5872_v16 = vadd.f32 %v2501_v35, %v2397_v20  ;;  %v6807_v52 = vld [vmem:[#allocation151_spill] sm:$0xff] }
 0x377   : > { %2694 = vrot.lane.b32.xlu2 %v6800_v3, %s3502_s3  ;;  %v6808_v3 = vld [vmem:[#allocation21_spill] sm:$0xff] }
 0x379   : > { %v2551_v5 = vpop.permute.xlu2 %2550 }
 0x37a   : > { %v5875_v30 = vadd.f32 %v2551_v5, %v5545_v4  ;;  %2748 = vrot.lane.b32.xlu0 %v5688_v21, %s3503_s4  ;;  %v6802_v21 = vld [vmem:[#allocation145_spill] sm:$0xff]  ;;  %v6809_v5 = vld [vmem:[#allocation28_spill] sm:$0xff] }
 0x37b   : > { %2670 = vrot.lane.b32.xlu1 %v6801_v11, %s3502_s3 }
 0x37c   : > { %v2523_v15 = vpop.permute.xlu0 %2522  ;;  %v2507_v34 = vpop.permute.xlu1 %2506 }
 0x37d   : > { %v5882_v55 = vadd.f32 %v2523_v15, %v5566_v50  ;;  %v5887_v27 = vadd.f32 %v2507_v34, %v5576_v9  ;;  %v6810_v15 = vld [vmem:[#allocation42_spill] sm:$0xff] }
 0x37f   : > { %2804 = vrot.lane.b32.xlu2 %v5558_v29, %s3503_s4 }
 0x381   : > { %v2557_v61 = vpop.permute.xlu2 %2556 }
 0x382   : > { %v5890_v4 = vadd.f32 %v2557_v61, %v5585_v25  ;;  %2806 = vrot.lane.b32.xlu0 %v5608_v63, %s3503_s4  ;;  %v6803_v63 = vld [vmem:[#allocation19_spill] sm:$0xff]  ;;  %v6811_v61 = vld [vmem:[#allocation154_spill] sm:$0xff] }
 0x383   : > { %2778 = vrot.lane.b32.xlu1 %v6802_v21, %s3503_s4  ;;  %v6812_v21 = vld [vmem:[#allocation36_spill] sm:$0xff] }
 0x384   : > { %v2529_v43 = vpop.permute.xlu0 %2528  ;;  %v2525_v13 = vpop.permute.xlu1 %2524 }
 0x385   : > { %v5897_v50 = vadd.f32 %v2529_v43, %v5606_v47  ;;  %v5902_v29 = vadd.f32 %v2525_v13, %v5616_v7 }
 0x387   : > { %2836 = vrot.lane.b32.xlu2 %v5691_v54, %s3503_s4  ;;  %v6804_v54 = vld [vmem:[#allocation34_spill] sm:$0xff] }
 0x389   : > { %v2575_v9 = vpop.permute.xlu2 %2574 }
 0x38a   : > { %v5905_v25 = vadd.f32 %v2575_v9, %v5625_v17  ;;  %2626 = vrot.lane.b32.xlu0 %v6803_v63, %s3502_s3 }
 0x38b   : > { %2834 = vrot.lane.b32.xlu1 %v5638_v37, %s3503_s4  ;;  %v6806_v37 = vld [vmem:[#allocation30_spill] sm:$0xff] }
 0x38c   : > { %v2547_v42 = vpop.permute.xlu0 %2546  ;;  %v2531_v53 = vpop.permute.xlu1 %2530 }
 0x38d   : > { %v5912_v47 = vadd.f32 %v2547_v42, %v5646_v39  ;;  %v5917_v7 = vadd.f32 %v2531_v53, %v5657_v33  ;;  %v6814_v53 = vld [vmem:[#allocation136_spill] sm:$0xff] }
 0x38f   : > { %2672 = vrot.lane.b32.xlu2 %v6804_v54, %s3502_s3 }
 0x391   : > { %v2581_v59 = vpop.permute.xlu2 %2580 }
 0x392   : > { %v5920_v17 = vadd.f32 %v2581_v59, %v5666_v32  ;;  %2696 = vrot.lane.b32.xlu0 %v6805_v10, %s3502_s3  ;;  %v6816_v10 = vld [vmem:[#allocation148_spill] sm:$0xff] }
 0x393   : > { %2650 = vrot.lane.b32.xlu1 %v6806_v37, %s3502_s3 }
 0x394   : > { %v2553_v51 = vpop.permute.xlu0 %2552  ;;  %v2549_v19 = vpop.permute.xlu1 %2548 }
 0x395   : > { %v5927_v39 = vadd.f32 %v2553_v51, %v5686_v36  ;;  %v5932_v33 = vadd.f32 %v2549_v19, %v5699_v58 }
 0x397   : > { %2780 = vrot.lane.b32.xlu2 %v5516_v22, %s3503_s4 }
 0x399   : > { %v2599_v49 = vpop.permute.xlu2 %2598 }
 0x39a   : > { %v5935_v32 = vadd.f32 %v2599_v49, %v5706_v41  ;;  %2808 = vrot.lane.b32.xlu0 %v6807_v52, %s3503_s4  ;;  %v6817_v52 = vld [vmem:[#allocation45_spill] sm:$0xff] }
 0x39b   : > { %2750 = vrot.lane.b32.xlu1 %v5808_v2, %s3503_s4 }
 0x39c   : > { %v2571_v20 = vpop.permute.xlu0 %2570 }
 0x39d   : > { %v2588_v36 = vadd.f32 %v2571_v20, %v5727_v0  ;;  %v2555_v35 = vpop.permute.xlu1 %2554 }
 0x39e   : > { %v5945_v22 = vadd.f32 %v2555_v35, %v5737_v23  ;;  %v6819_v35 = vld [vmem:[#allocation43_spill] sm:$0xff] }
 0x39f   : > { %2628 = vrot.lane.b32.xlu2 %v6808_v3, %s3502_s3 }
 0x3a1   : > { %v2605_v58 = vpop.permute.xlu2 %2604 }
 0x3a2   : > { %v5948_v41 = vadd.f32 %v2605_v58, %v5744_v26  ;;  %2652 = vrot.lane.b32.xlu0 %v6809_v5, %s3502_s3  ;;  %v6821_v58 = vld [vmem:[#allocation44_spill] sm:$0xff] }
 0x3a3   : > { %2838 = vrot.lane.b32.xlu1 %v5540_v45, %s3503_s4 }
 0x3a4   : > { %v2577_v2 = vpop.permute.xlu0 %2576 }
 0x3a5   : > { %v5955_v0 = vadd.f32 %v2577_v2, %v5762_v56  ;;  %v2573_v11 = vpop.permute.xlu1 %2572 }
 0x3a6   : > { %v2589_v23 = vadd.f32 %v2573_v11, %v5771_v44 }
 0x3a7   : > { %2698 = vrot.lane.b32.xlu2 %v6810_v15, %s3502_s3 }
 0x3a9   : > { %v2623_v34 = vpop.permute.xlu2 %2622 }
 0x3aa   : > { %v5961_v26 = vadd.f32 %v2623_v34, %v5777_v14  ;;  %2752 = vrot.lane.b32.xlu0 %v6811_v61, %s3503_s4  ;;  %v6823_v61 = vld [vmem:[#allocation52_spill] sm:$0xff] }
 0x3ab   : > { %2674 = vrot.lane.b32.xlu1 %v6812_v21, %s3502_s3 }
 0x3ac   : > { %v2595_v45 = vpop.permute.xlu0 %2594 }
 0x3ad   : > { %v5968_v56 = vadd.f32 %v2595_v45, %v5791_v1  ;;  %v2579_v43 = vpop.permute.xlu1 %2578 }
 0x3ae   : > { %v5973_v44 = vadd.f32 %v2579_v43, %v5800_v38 }
 0x3af   : > { %2810 = vrot.lane.b32.xlu2 %v5598_v62, %s3503_s4  ;;  %v6813_v62 = vld [vmem:[#allocation40_spill] sm:$0xff] }
 0x3b1   : > { %v2647_v13 = vpop.permute.xlu2 %2646 }
 0x3b2   : > { %v5976_v14 = vadd.f32 %v2647_v13, %v5836_v28  ;;  %2840 = vrot.lane.b32.xlu0 %v5678_v24, %s3503_s4  ;;  %v6815_v24 = vld [vmem:[#allocation35_spill] sm:$0xff] }
 0x3b3   : > { %2782 = vrot.lane.b32.xlu1 %v5568_v8, %s3503_s4  ;;  %v6825_v13 = vld [vmem:[#allocation55_spill] sm:$0xff] }
 0x3b4   : > { %v2601_v9 = vpop.permute.xlu0 %2600 }
 0x3b5   : > { %v5983_v1 = vadd.f32 %v2601_v9, %v5822_v12  ;;  %v2597_v63 = vpop.permute.xlu1 %2596 }
 0x3b6   : > { %v5988_v38 = vadd.f32 %v2597_v63, %v5829_v18 }
 0x3b7   : > { %2700 = vrot.lane.b32.xlu2 %v6813_v62, %s3502_s3 }
 0x3b9   : > { %v2691_v42 = vpop.permute.xlu2 %2690 }
 0x3ba   : > { %v5990_v28 = vadd.f32 %v2691_v42, %v2588_v36  ;;  %2754 = vrot.lane.b32.xlu0 %v6814_v53, %s3503_s4  ;;  %v6826_v53 = vld [vmem:[#allocation47_spill] sm:$0xff] }
 0x3bb   : > { %2676 = vrot.lane.b32.xlu1 %v6815_v24, %s3502_s3 }
 0x3bc   : > { %v2619_v8 = vpop.permute.xlu0 %2618 }
 0x3bd   : > { %v2636_v12 = vadd.f32 %v2619_v8, %v5848_v60  ;;  %v2603_v54 = vpop.permute.xlu1 %2602 }
 0x3be   : > { %v6000_v59 = vadd.f32 %v2603_v54, %v5854_v46  ;;  %v6827_v54 = vld [vmem:[#allocation50_spill] sm:$0xff] }
 0x3bf   : > { %2812 = vrot.lane.b32.xlu2 %v5649_v40, %s3503_s4 }
 0x3c1   : > { %v2747_v18 = vpop.permute.xlu2 %2746 }
 0x3c2   : > { %2842 = vrot.lane.b32.xlu0 %v5729_v57, %s3503_s4  ;;  %v6818_v57 = vld [vmem:[#allocation48_spill] sm:$0xff] }
 0x3c3   : > { %2784 = vrot.lane.b32.xlu1 %v6816_v10, %s3503_s4 }
 0x3c4   : > { %v2643_v37 = vpop.permute.xlu0 %2642 }
 0x3c5   : > { %v2660_v51 = vadd.f32 %v2643_v37, %v5882_v55  ;;  %v2621_v19 = vpop.permute.xlu1 %2620 }
 0x3c6   : > { %v2637_v60 = vadd.f32 %v2621_v19, %v5872_v16 }
 0x3c7   : > { %2844 = vrot.lane.b32.xlu2 %v5578_v6, %s3503_s4 }
 0x3c8   : > { %v2763_v49 = vadd.f32 %v2747_v18, %v2637_v60 }
 0x3c9   : > { %v2625_v40 = vpop.permute.xlu2 %2624 }
 0x3ca   : > { %v6011_v46 = vadd.f32 %v2625_v40, %v5868_v31  ;;  %2714 = vrot.lane.b32.xlu0 %v6817_v52, %s3502_s3  ;;  %v6820_v31 = vld [vmem:[#allocation54_spill] sm:$0xff]  ;;  %v2889_v60 = vmul.f32 %v2763_v49, %v2763_v49 }
 0x3cb   : > { %2814 = vrot.lane.b32.xlu1 %v6818_v57, %s3503_s4 }
 0x3cc   : > { %v2667_v20 = vpop.permute.xlu0 %2666 }
 0x3cd   : > { %v2684_v55 = vadd.f32 %v2667_v20, %v5912_v47  ;;  %v2645_v36 = vpop.permute.xlu1 %2644  ;;  %v6822_v47 = vld [vmem:[#allocation46_spill] sm:$0xff] }
 0x3ce   : > { %v2661_v6 = vadd.f32 %v2645_v36, %v5902_v29  ;;  %v6829_v36 = vld [vmem:[#allocation167_spill] sm:$0xff] }
 0x3cf   : > { %2718 = vrot.lane.b32.xlu2 %v6819_v35, %s3502_s3 }
 0x3d1   : > { %v2695_v16 = vpop.permute.xlu2 %2694 }
 0x3d2   : > { %v6022_v3 = vadd.f32 %v2695_v16, %v5905_v25  ;;  %2864 = vrot.lane.b32.xlu0 %v6820_v31, %s3503_s4  ;;  %v6824_v25 = vld [vmem:[#allocation117_spill] sm:$0xff] }
 0x3d3   : > { %2716 = vrot.lane.b32.xlu1 %v6821_v58, %s3502_s3 }
 0x3d4   : > { %v2693_v5 = vpop.permute.xlu0 %2692 }
 0x3d5   : > { %v2709_v2 = vadd.f32 %v2693_v5, %v2589_v23  ;;  %v2669_v11 = vpop.permute.xlu1 %2668 }
 0x3d6   : > { %v2685_v15 = vadd.f32 %v2669_v11, %v5932_v33 }
 0x3d7   : > { %2720 = vrot.lane.b32.xlu2 %v6822_v47, %s3502_s3 }
 0x3d9   : > { %v2805_v34 = vpop.permute.xlu2 %2804 }
 0x3da   : > { %v2822_v29 = vadd.f32 %v2805_v34, %v2684_v55  ;;  %2868 = vrot.lane.b32.xlu0 %v6823_v61, %s3503_s4 }
 0x3db   : > { %2866 = vrot.lane.b32.xlu1 %v6824_v25, %s3503_s4 }
 0x3dc   : > { %v2775_v21 = vpop.permute.xlu0 %2774 }
 0x3dd   : > { %v2792_v45 = vadd.f32 %v2775_v21, %v2660_v51  ;;  %v2745_v43 = vpop.permute.xlu1 %2744 }
 0x3de   : > { %v2762_v23 = vadd.f32 %v2745_v43, %v2636_v12  ;;  %v6828_v12 = vld [vmem:[#allocation53_spill] sm:$0xff] }
 0x3df   : > { %2870 = vrot.lane.b32.xlu2 %v6825_v13, %s3503_s4  ;;  %v2894_v9 = vmul.f32 %v2792_v45, %v2792_v45 }
 0x3e0   : > { %v2888_v62 = vmul.f32 %v2762_v23, %v2762_v23  ;;  %v6037_v42 = vmul.f32 %v2792_v45, %v2762_v23 }
 0x3e1   : > { %v2837_v63 = vpop.permute.xlu2 %2836 }
 0x3e2   : > { %v2853_v33 = vadd.f32 %v2837_v63, %v2709_v2  ;;  %2724 = vrot.lane.b32.xlu0 %v6826_v53, %s3502_s3  ;;  %v2906_v24 = vsub.f32 %v2822_v29, %v2888_v62  ;;  %v2954_v8 = vadd.f32 %v2894_v9, %v2888_v62 }
 0x3e3   : > { %2722 = vrot.lane.b32.xlu1 %v6827_v54, %s3502_s3 }
 0x3e4   : > { %v2649_v18 = vpop.permute.xlu0 %2648 }
 0x3e5   : > { %v2663_v10 = vadd.f32 %v2649_v18, %v5897_v50  ;;  %v2777_v37 = vpop.permute.xlu1 %2776 }
 0x3e6   : > { %v2793_v51 = vadd.f32 %v2777_v37, %v2661_v6 }
 0x3e7   : > { %2874 = vrot.lane.b32.xlu2 %v6828_v12, %s3503_s4 }
 0x3e8   : > { %v2895_v40 = vmul.f32 %v2793_v51, %v2793_v51  ;;  %v6046_v52 = vmul.f32 %v2793_v51, %v2763_v49 }
 0x3e9   : > { %v2673_v19 = vpop.permute.xlu2 %2672 }
 0x3ea   : > { %v2687_v57 = vadd.f32 %v2673_v19, %v5927_v39  ;;  %v2955_v20 = vadd.f32 %v2895_v40, %v2889_v60  ;;  %v2913_v55 = vsub.f32 %v2853_v33, %v2895_v40  ;;  %v2960_v33 = vadd.f32 0.0001, %v2954_v8 }
 0x3eb   : > { %2872 = vrot.lane.b32.xlu1 %v6829_v36, %s3503_s4 }
 0x3ec   : > { %v2749_v35 = vpop.permute.xlu0 %2748  ;;  %v2961_v25 = vadd.f32 0.0001, %v2955_v20 }
 0x3ed   : > { %v2764_v50 = vadd.f32 %v2749_v35, %v5961_v26  ;;  %v2671_v16 = vpop.permute.xlu1 %2670 }
 0x3ee   : > { %v2686_v31 = vadd.f32 %v2671_v16, %v5875_v30 }
 0x3ef   : > { %v2890_v11 = vmul.f32 %v2764_v50, %v2764_v50 }
 0x3f1   : > { %v2781_v58 = vpop.permute.xlu2 %2780 }
 0x3f2   : > { %v2795_v19 = vadd.f32 %v2781_v58, %v2663_v10 }
 0x3f4   : > { %v2807_v6 = vpop.permute.xlu0 %2806 }
 0x3f5   : > { %v2823_v5 = vadd.f32 %v2807_v6, %v2685_v15  ;;  %v2779_v2 = vpop.permute.xlu1 %2778 }
 0x3f6   : > { %v2794_v49 = vadd.f32 %v2779_v2, %v5976_v14 }
 0x3f7   : > { %v2907_v47 = vsub.f32 %v2823_v5, %v2889_v60 }
 0x3f8   : > { %v2896_v34 = vmul.f32 %v2794_v49, %v2794_v49  ;;  %v6056_v29 = vmul.f32 %v2794_v49, %v2764_v50 }
 0x3f9   : > { %v6054_v39 = vpop.permute.xlu2 %2628  ;;  %v2967_v61 = vadd.f32 %v2913_v55, %v2907_v47  ;;  %v2897_v55 = vmul.f32 %v2795_v19, %v2795_v19 }
 0x3fa   : > { %v2956_v21 = vadd.f32 %v2896_v34, %v2890_v11 }
 0x3fb   : > { %v2973_v26 = vadd.f32 0.0009, %v2967_v61 }
 0x3fc   : > { %v2627_v45 = vpop.permute.xlu0 %2626  ;;  %v2962_v58 = vadd.f32 0.0001, %v2956_v21 }
 0x3fd   : > { %v6058_v43 = vmul.f32 %v2973_v26, %v2961_v25  ;;  %v2640_v30 = vadd.f32 %v2627_v45, %v5887_v27  ;;  %v2835_v15 = vpop.permute.xlu1 %2834 }
 0x3fe   : > { %v2852_v13 = vadd.f32 %v2835_v15, %v5990_v28 }
 0x3ff   : > { %vm3004_vm13 = vweird.f32 %v6058_v43 }
 0x400   : > { %v2912_v23 = vsub.f32 %v2852_v13, %v2894_v9 }
 0x401   : > { %v2699_v14 = vpop.permute.xlu2 %2698 }
 0x402   : > { %v2966_v63 = vadd.f32 %v2912_v23, %v2906_v24 }
 0x404   : > { %v2697_v62 = vpop.permute.xlu0 %2696  ;;  %v2972_v53 = vadd.f32 0.0009, %v2966_v63 }
 0x405   : > { %v2651_v54 = vpop.permute.xlu1 %2650  ;;  %v2711_v26 = vadd.f32 %v2697_v62, %v5955_v0 }
 0x406   : > { %v6062_v18 = vmul.f32 %v2972_v53, %v2960_v33  ;;  %v2664_v37 = vadd.f32 %v2651_v54, %v5917_v7 }
 0x408   : > { %3293 = vrcp.f32 %v6062_v18  ;;  %vm2989_vm7 = vweird.f32 %v6062_v18 }
 0x409   : > { %v2811_v12 = vpop.permute.xlu2 %2810 }
 0x40a   : > { %v2825_v8 = vadd.f32 %v2811_v12, %v2687_v57 }
 0x40c   : > { %v2809_v51 = vpop.permute.xlu0 %2808 }
 0x40d   : > { %v2824_v60 = vadd.f32 %v2809_v51, %v2686_v31  ;;  %v2751_v40 = vpop.permute.xlu1 %2750 }
 0x40e   : > { %v2765_v27 = vadd.f32 %v2751_v40, %v6011_v46 }
 0x40f   : > { %v2908_v20 = vsub.f32 %v2824_v60, %v2890_v11  ;;  %v2712_v60 = vadd.f32 %v2699_v14, %v5973_v44 }
 0x410   : > { %v2891_v9 = vmul.f32 %v2765_v27, %v2765_v27  ;;  %v6066_v24 = vmul.f32 %v2795_v19, %v2765_v27  ;;  %v6830_v19 = vld [vmem:[#allocation56_spill] sm:$0xff]  ;;  %v6081_v27 = vpop.eup %3293 }
 0x411   : > { %v2701_v28 = vpop.permute.xlu2 %2700  ;;  %v2985_v44 = vmul.f32 %v6081_v27, %v6062_v18  ;;  %vm2990_vm6 = vweird.f32 %v6081_v27 }
 0x412   : > { %v2957_v36 = vadd.f32 %v2897_v55, %v2891_v9  ;;  %v2909_v35 = vsub.f32 %v2825_v8, %v2891_v9  ;;  %v2927_v14 = vmul.f32 2.0, %v6066_v24  ;;  %vm6118_vm8 = vmor %vm2989_vm7, %vm2990_vm6 }
 0x414   : > { %v2653_v50 = vpop.permute.xlu0 %2652  ;;  %v2963_v53 = vadd.f32 0.0001, %v2957_v36  ;;  %v2713_v36 = vadd.f32 %v2701_v28, %v5920_v17 }
 0x415   : > { %v2839_v16 = vpop.permute.xlu1 %2838  ;;  %v2665_v9 = vadd.f32 %v2653_v50, %v5859_v48 }
 0x416   : > { %v2854_v7 = vadd.f32 %v2839_v16, %v6022_v3 }
 0x418   : > { %v2914_v5 = vsub.f32 %v2854_v7, %v2896_v34 }
 0x419   : > { %v2813_v6 = vpop.permute.xlu2 %2812 }
 0x41a   : > { %v2968_v10 = vadd.f32 %v2914_v5, %v2908_v20 }
 0x41c   : > { %v2753_v31 = vpop.permute.xlu0 %2752  ;;  %v2974_v2 = vadd.f32 0.0009, %v2968_v10 }
 0x41d   : > { %v2766_v46 = vadd.f32 %v2753_v31, %v2640_v30  ;;  %v2675_v49 = vpop.permute.xlu1 %2674 }
 0x41e   : > { %v6069_v11 = vmul.f32 %v2974_v2, %v2962_v58  ;;  %v2688_v47 = vadd.f32 %v2675_v49, %v5945_v22 }
 0x41f   : > { %v2892_v61 = vmul.f32 %v2766_v46, %v2766_v46 }
 0x420   : > { %v2826_v25 = vadd.f32 %v2813_v6, %v2688_v47  ;;  %vm3019_vm12 = vweird.f32 %v6069_v11 }
 0x421   : > { %v2845_v57 = vpop.permute.xlu2 %2844 }
 0x422   : > { %v2910_v45 = vsub.f32 %v2826_v25, %v2892_v61  ;;  %v2857_v10 = vadd.f32 %v2845_v57, %v2713_v36 }
 0x424   : > { %v2841_v15 = vpop.permute.xlu0 %2840 }
 0x425   : > { %v2855_v3 = vadd.f32 %v2841_v15, %v2711_v26  ;;  %v2783_v13 = vpop.permute.xlu1 %2782 }
 0x426   : > { %v2796_v34 = vadd.f32 %v2783_v13, %v2664_v37  ;;  %v2641_v37 = vadd.f32 %v6054_v39, %v6830_v19 }
 0x427   : > { %v2915_v23 = vsub.f32 %v2855_v3, %v2897_v55 }
 0x428   : > { %v2898_v21 = vmul.f32 %v2796_v34, %v2796_v34  ;;  %v6075_v30 = vmul.f32 %v2796_v34, %v2766_v46 }
 0x429   : > { %v6073_v63 = vpop.permute.xlu2 %2718  ;;  %v2969_v33 = vadd.f32 %v2915_v23, %v2909_v35 }
 0x42a   : > { %v2958_v54 = vadd.f32 %v2898_v21, %v2892_v61 }
 0x42b   : > { %v2975_v22 = vadd.f32 0.0009, %v2969_v33  ;;  %v2986_v33 = vsub.f32 1.0, %v2985_v44  ;;  %v2995_v44 = vand.u32 2147483648, %v6062_v18 }
 0x42c   : > { %v2755_v12 = vpop.permute.xlu0 %2754  ;;  %v2964_v28 = vadd.f32 0.0001, %v2958_v54 }
 0x42d   : > { %v2981_v51 = vmul.f32 %v2975_v22, %v2963_v53  ;;  %v2677_v0 = vpop.permute.xlu1 %2676  ;;  %v2767_v40 = vadd.f32 %v2755_v12, %v2641_v37  ;;  %v2933_v12 = vadd.f32 0.0001, %v2927_v14  ;;  %v2987_v37 = vmul.f32 %v6081_v27, %v2986_v33 }
 0x42f   : > { %3295 = vrcp.f32 %v2981_v51  ;;  %v2893_v6 = vmul.f32 %v2767_v40, %v2767_v40  ;;  %v3040_v61 = vand.u32 2147483648, %v2981_v51  ;;  %vm3034_vm3 = vweird.f32 %v2981_v51 }
 0x430   : > { %3297 = vrcp.f32 %v6058_v43  ;;  %v3038_v57 = vand.u32 2147483647, %v2981_v51 }
 0x431   : > { %v2721_v62 = vpop.permute.xlu2 %2720  ;;  %3299 = vrcp.f32 %v6069_v11  ;;  %v3041_v54 = vor.u32 1.1754944e-38, %v3040_v61 }
 0x432   : > { %v2735_v39 = vadd.f32 %v2721_v62, %v5983_v1  ;;  %vm3039_vm5 = vcmp.eq.f32.partialorder %v3038_v57, 8.507059e+37 }
 0x434   : > { %v2843_v20 = vpop.permute.xlu0 %2842 }
 0x435   : > { %v3296_v55 = vpop.eup %3295  ;;  %v2856_v8 = vadd.f32 %v2843_v20, %v2712_v60  ;;  %v2785_v16 = vpop.permute.xlu1 %2784 }
 0x436   : > { %v3030_v35 = vmul.f32 %v3296_v55, %v2981_v51  ;;  %v2797_v7 = vadd.f32 %v2785_v16, %v2665_v9  ;;  %vm3035_vm2 = vweird.f32 %v3296_v55  ;;  %v6093_v25 = vpop.eup %3297 }
 0x437   : > { %v2916_v5 = vsub.f32 %v2856_v8, %v2898_v21  ;;  %vm3036_vm4 = vmor %vm3034_vm3, %vm3035_vm2  ;;  %v6099_v22 = vpop.eup %3299  ;;  %vm3005_vm10 = vweird.f32 %v6093_v25  ;;  %vm3074_vm2 = vcmask 130048  }
 0x438   : > { %v3031_v31 = vsub.f32 1.0, %v3030_v35  ;;  %v2899_v50 = vmul.f32 %v2797_v7, %v2797_v7  ;;  %v6090_v58 = vmul.f32 %v2797_v7, %v2767_v40  ;;  %v3000_v40 = vmul.f32 %v6093_v25, %v6058_v43  ;;  %vm6160_vm15 = vmor %vm3004_vm13, %vm3005_vm10 }
 0x439   : > { %v2871_v48 = vpop.permute.xlu2 %2870  ;;  %v2970_v2 = vadd.f32 %v2916_v5, %v2910_v45  ;;  %v2689_v45 = vadd.f32 %v2677_v0, %v5890_v4  ;;  %v3015_v4 = vmul.f32 %v6099_v22, %v6069_v11  ;;  %v2924_v35 = vmul.f32 2.0, %v6037_v42 }
 0x43a   : > { %v2885_v17 = vadd.f32 %v2871_v48, %v2735_v39  ;;  %v3032_v46 = vmul.f32 %v3296_v55, %v3031_v31  ;;  %v2917_v1 = vsub.f32 %v2857_v10, %v2899_v50  ;;  %v2959_v49 = vadd.f32 %v2899_v50, %v2893_v6 }
 0x43b   : > { %v2976_v47 = vadd.f32 0.0009, %v2970_v2  ;;  %v2988_v7 = vadd.f32 %v6081_v27, %v2987_v37  ;;  %v3016_v39 = vsub.f32 1.0, %v3015_v4  ;;  %v3001_v5 = vsub.f32 1.0, %v3000_v40 }
 0x43c   : > { %v3033_v26 = vadd.f32 %v3296_v55, %v3032_v46  ;;  %v2921_v15 = vsub.f32 %v2885_v17, %v6066_v24  ;;  %v2715_v3 = vpop.permute.xlu0 %2714  ;;  %v2965_v9 = vadd.f32 0.0001, %v2959_v49  ;;  %v2993_v31 = vand.u32 2147483647, %v6062_v18 }
 0x43d   : > { %v6097_v13 = vmul.f32 %v2976_v47, %v2964_v28  ;;  %v2815_v34 = vpop.permute.xlu1 %2814  ;;  %v2732_v60 = vadd.f32 %v2715_v3, %v5968_v56  ;;  %v2930_v48 = vadd.f32 0.0001, %v2924_v35  ;;  %v2734_v50 = vadd.f32 %v6073_v63, %v5935_v32 }
 0x43e   : > { %v3037_v23 = vsel %vm3036_vm4, %v3296_v55, %v3033_v26  ;;  %v2939_v21 = vmul.f32 2.0, %v2921_v15  ;;  %v2827_v53 = vadd.f32 %v2815_v34, %v2689_v45  ;;  %v3017_v17 = vmul.f32 %v6099_v22, %v3016_v39 }
 0x43f   : > { %v3042_v19 = vsel %vm3039_vm5, %v3041_v54, %v3037_v23  ;;  %v2925_v28 = vmul.f32 2.0, %v6046_v52  ;;  %v2926_v46 = vmul.f32 2.0, %v6056_v29  ;;  %v2996_v18 = vor.u32 1.1754944e-38, %v2995_v44 }
 0x440   : > { %v2945_v62 = vadd.f32 0.0009, %v2939_v21  ;;  %v2911_v51 = vsub.f32 %v2827_v53, %v2893_v6  ;;  %vm2994_vm9 = vcmp.eq.f32.partialorder %v2993_v31, 8.507059e+37  ;;  %v3010_v32 = vand.u32 2147483648, %v6058_v43 }
 0x441   : > { %vm3020_vm11 = vweird.f32 %v6099_v22  ;;  %v3018_v45 = vadd.f32 %v6099_v22, %v3017_v17  ;;  %v3023_v23 = vand.u32 2147483647, %v6069_v11  ;;  %v3025_v21 = vand.u32 2147483648, %v6069_v11 }
 0x442   : > { %v2951_v24 = vmul.f32 %v2945_v62, %v2933_v12  ;;  %v2971_v0 = vadd.f32 %v2917_v1, %v2911_v51  ;;  %v3002_v1 = vmul.f32 %v6093_v25, %v3001_v5  ;;  %v2931_v54 = vadd.f32 0.0001, %v2925_v28  ;;  %vm6154_vm14 = vmor %vm3019_vm12, %vm3020_vm11 }
 0x443   : > { %v2932_v51 = vadd.f32 0.0001, %v2926_v46  ;;  %v3011_v11 = vor.u32 1.1754944e-38, %v3010_v32  ;;  %v3022_v4 = vsel %vm6154_vm14, %v6099_v22, %v3018_v45  ;;  %vm3024_vm0 = vcmp.eq.f32.partialorder %v3023_v23, 8.507059e+37 }
 0x444   : > { %v6107_v20 = vmul.f32 %v3042_v19, %v2951_v24  ;;  %v2865_v55 = vpop.permute.xlu0 %2864  ;;  %v2977_v8 = vadd.f32 0.0009, %v2971_v0  ;;  %v3026_v40 = vor.u32 1.1754944e-38, %v3025_v21  ;;  %v3053_v21 = vand.u32 2147483647, %v6097_v13 }
 0x445   : > { %v2882_v36 = vadd.f32 %v2865_v55, %v2732_v60  ;;  %v2717_v16 = vpop.permute.xlu1 %2716 }
 0x446   : > { %v6112_v6 = vmul.f32 %v2977_v8, %v2965_v9  ;;  %v2733_v47 = vadd.f32 %v2717_v16, %v5988_v38  ;;  %v3003_v38 = vadd.f32 %v6093_v25, %v3002_v1  ;;  %v2875_v9 = vpop.permute.xlu2 %2874  ;;  %vm3054_vm10 = vcmp.eq.f32.partialorder %v3053_v21, 8.507059e+37 }
 0x447   : > { %v2918_v56 = vsub.f32 %v2882_v36, %v6037_v42  ;;  %v2992_v42 = vsel %vm6118_vm8, %v6081_v27, %v2988_v7  ;;  %v3027_v7 = vsel %vm3024_vm0, %v3026_v40, %v3022_v4  ;;  %vm3049_vm8 = vweird.f32 %v6097_v13 }
 0x448   : > { %3301 = vrcp.f32 %v6112_v6  ;;  %v2997_v63 = vsel %vm2994_vm9, %v2996_v18, %v2992_v42  ;;  %v3007_v60 = vsel %vm6160_vm15, %v6093_v25, %v3003_v38  ;;  %vm3064_vm4 = vweird.f32 %v6112_v6 }
 0x449   : > { %v2936_v14 = vmul.f32 2.0, %v2918_v56  ;;  %3303 = vrcp.f32 %v6097_v13  ;;  %v3070_v42 = vand.u32 2147483648, %v6112_v6  ;;  %v3068_v28 = vand.u32 2147483647, %v6112_v6 }
 0x44a   : > { %v3055_v38 = vand.u32 2147483648, %v6097_v13 }
 0x44b   : > { %v2942_v2 = vadd.f32 0.0009, %v2936_v14  ;;  %v2929_v14 = vmul.f32 2.0, %v6090_v58  ;;  %vm3069_vm6 = vcmp.eq.f32.partialorder %v3068_v28, 8.507059e+37 }
 0x44c   : > { %v2869_v49 = vpop.permute.xlu0 %2868 }
 0x44d   : > { %v2948_v61 = vmul.f32 %v2942_v2, %v2930_v48  ;;  %v2884_v27 = vadd.f32 %v2869_v49, %v2734_v50  ;;  %v2867_v26 = vpop.permute.xlu1 %2866  ;;  %v2935_v46 = vadd.f32 0.0001, %v2929_v14 }
 0x44e   : > { %v6137_v57 = vpop.eup %3301  ;;  %v2883_v15 = vadd.f32 %v2867_v26, %v2733_v47 }
 0x44f   : > { %v2998_v3 = vmul.f32 %v2997_v63, %v2948_v61  ;;  %v2920_v34 = vsub.f32 %v2884_v27, %v6056_v29  ;;  %v3060_v33 = vmul.f32 %v6137_v57, %v6112_v6  ;;  %v6146_v53 = vpop.eup %3303  ;;  %v3008_v29 = vand.u32 2147483647, %v6058_v43 }
 0x450   : > { %v2919_v12 = vsub.f32 %v2883_v15, %v6046_v52  ;;  %v3045_v0 = vmul.f32 %v6146_v53, %v6097_v13  ;;  %vm3065_vm3 = vweird.f32 %v6137_v57  ;;  %v3071_v27 = vor.u32 1.1754944e-38, %v3070_v42 }
 0x451   : > { %v2938_v62 = vmul.f32 2.0, %v2920_v34  ;;  %v3061_v24 = vsub.f32 1.0, %v3060_v33  ;;  %vm3009_vm1 = vcmp.eq.f32.partialorder %v3008_v29, 8.507059e+37  ;;  %v3075_v31 = vsel %vm3074_vm2, %v2998_v3, 0.0  ;;  %vm3066_vm5 = vmor %vm3064_vm4, %vm3065_vm3 }
 0x452   : > { %v2937_v37 = vmul.f32 2.0, %v2919_v12  ;;  %v3012_v39 = vsel %vm3009_vm1, %v3011_v11, %v3007_v60  ;;  %v3046_v25 = vsub.f32 1.0, %v3045_v0  ;;  %v3080_v15 = vsel %vm3074_vm2, %v6107_v20, 0.0 }
 0x453   : > { %v2944_v43 = vadd.f32 0.0009, %v2938_v62  ;;  %v3062_v16 = vmul.f32 %v6137_v57, %v3061_v24  ;;  %v2928_v6 = vmul.f32 2.0, %v6075_v30  ;;  %vm3050_vm7 = vweird.f32 %v6146_v53 }
 0x454   : > { %v2725_v55 = vpop.permute.xlu0 %2724  ;;  %v2943_v8 = vadd.f32 0.0009, %v2937_v37  ;;  %vm3051_vm9 = vmor %vm3049_vm8, %vm3050_vm7  ;;  %v3056_v12 = vor.u32 1.1754944e-38, %v3055_v38 }
 0x455   : > { %v2950_v36 = vmul.f32 %v2944_v43, %v2932_v51  ;;  %v2737_v35 = vadd.f32 %v2725_v55, %v5948_v41  ;;  %v2723_v22 = vpop.permute.xlu1 %2722  ;;  %v3063_v48 = vadd.f32 %v6137_v57, %v3062_v16  ;;  %v2934_v20 = vadd.f32 0.0001, %v2928_v6 }
 0x456   : > { %v2949_v56 = vmul.f32 %v2943_v8, %v2931_v54  ;;  %v2736_v18 = vadd.f32 %v2723_v22, %v6000_v59 }
 0x457   : > { %v3028_v5 = vmul.f32 %v3027_v7, %v2950_v36  ;;  %v2887_v44 = vadd.f32 %v2875_v9, %v2737_v35  ;;  %v3067_v47 = vsel %vm3066_vm5, %v6137_v57, %v3063_v48 }
 0x458   : > { %v3013_v10 = vmul.f32 %v3012_v39, %v2949_v56  ;;  %v3072_v3 = vsel %vm3069_vm6, %v3071_v27, %v3067_v47 }
 0x459   : > { %v2923_v41 = vsub.f32 %v2887_v44, %v6090_v58  ;;  %v3078_v2 = vsel %vm3074_vm2, %v3028_v5, 0.0  ;;  %v3047_v58 = vmul.f32 %v6146_v53, %v3046_v25 }
 0x45a   : > { %v3076_v50 = vsel %vm3074_vm2, %v3013_v10, 0.0 }
 0x45b   : > { %v2941_v17 = vmul.f32 2.0, %v2923_v41  ;;  %v3077_v1 = vadd.f32 %v3076_v50, %v3075_v31  ;;  %v3048_v34 = vadd.f32 %v6146_v53, %v3047_v58 }
 0x45d   : > { %v2947_v49 = vadd.f32 0.0009, %v2941_v17  ;;  %v2873_v61 = vpop.permute.xlu1 %2872  ;;  %v3079_v26 = vadd.f32 %v3078_v2, %v3077_v1  ;;  %v3052_v54 = vsel %vm3051_vm9, %v6146_v53, %v3048_v34 }
 0x45e   : > { %v2886_v32 = vadd.f32 %v2873_v61, %v2736_v18 }
 0x45f   : > { %v2953_v63 = vmul.f32 %v2947_v49, %v2935_v46  ;;  %v3081_v45 = vadd.f32 %v3080_v15, %v3079_v26 }
 0x460   : > { %v2922_v59 = vsub.f32 %v2886_v32, %v6075_v30  ;;  %v3057_v30 = vsel %vm3054_vm10, %v3056_v12, %v3052_v54 }
 0x461   : > { %v3073_v57 = vmul.f32 %v3072_v3, %v2953_v63 }
 0x462   : > { %v2940_v23 = vmul.f32 2.0, %v2922_v59 }
 0x463   : > { %v3084_v19 = vsel %vm3074_vm2, %v3073_v57, 0.0 }
 0x464   : > { %v2946_v33 = vadd.f32 0.0009, %v2940_v23 }
 0x466   : > { %v2952_v62 = vmul.f32 %v2946_v33, %v2934_v20 }
 0x468   : > { %v3058_v51 = vmul.f32 %v3057_v30, %v2952_v62 }
 0x46a   : > { %v3082_v29 = vsel %vm3074_vm2, %v3058_v51, 0.0 }
 0x46b   : > { %v3083_v24 = vadd.f32 %v3082_v29, %v3081_v45 }
 0x46d   : > { %v3085_v37 = vadd.f32 %v3084_v19, %v3083_v24 }
 0x46f   : > { %3086 = vadd.xlane.f32.xlu0 %v3085_v37 }
 0x4e2   : > { %v3087_v13 = vpop.xlane.xlu0 %3086 }
 0x4e3   : > { %v3088_v52 = vrot.slane %v3087_v13, 4 }
 0x4e5   : > { %v3089_v11 = vadd.f32 %v3088_v52, %v3087_v13 }
 0x4e7   : > { %v3090_v4 = vrot.slane %v3089_v11, 2 }
 0x4e9   : > { %v3091_v53 = vadd.f32 %v3090_v4, %v3089_v11 }
 0x4eb   : > { %v3092_v43 = vrot.slane %v3091_v53, 1 }
 0x4ed   : > { %v3093_v0 = vadd.f32 %v3092_v43, %v3091_v53 }
 0x4ef   : > { %3228 = vpush %v3093_v0 }
 0x520   : > { %s3229_s19 = spop %3228 }
 0x521   : > { %v3095_v60 = vstv %s3229_s19 }
 0x522   : > { %3096 = vst [vmem:[%s207_s8] sm:$0xff] %v3095_v60 }
 0x523   : > { %3447 = shalt.err (!%p3444_p5)
}
 0x524   : > { %3234 = dma.vmem_to_hbm [thread:$0]  (%p3565_p11), %s3111_s28, 128, %s3113_s25, %s3098_s26  }
 0x525 PF: > { %s3124_s22 = sand.u32 1, %s3478_s9   ;;  %p3244_p7 = pnand %p3208_p9, %p3569_p12 }
 0x526   : > { %s3125_s3 = scalar_lea.sflag [#allocation12], %s3124_s22 }
 0x527   : > { %p3245_p8 = pneg %p3244_p7 }
 0x529   : > { %3473 = dma.done.wait (%p3245_p8), %s3125_s3, 128  }
 0x52a   : > { %3475 = vsyncadd (%p3245_p8), %s3125_s3, 4294967168  ;;  %p18_p10 = scmp.ge.s32.totalorder %s3544_s15, 4   ;;  %s6837_s9 = smov %s3482_s10 }
 0x52b   : > { %s6838_s10 = smov %s3486_s11  ;;  %s6839_s11 = smov %s3556_s18 }
 0x52c   : > { %s6840_s12 = smov %s3544_s15  ;;  %20 = sbr.rel (!%p18_p10) target bundleno = 7 (0x7), region = 86 }
 0x531   :  { %3131 = vsyncpa [#allocation11], 1 }
 0x532   :  { %3133 = vsyncpa [#allocation11 + $0x1], 1 }
 0x533   :  { %3134 = vsyncpa [#allocation14], 1 }
 0x534   :  { %3136 = vsyncpa [#allocation14 + $0x1], 1 }
 0x535   :  { %3137 = vsyncpa [#allocation12], 1 }
 0x536   :  { %3139 = vsyncpa [#allocation12 + $0x1], 1 }

</bundles_post_ra>
